<compile_context>
chip_gen: v6e
topology: v6e:2x2x1
jax: 0.10.0
libtpu: 0.0.40
codegen_flags: <defaults>
</compile_context>

<pallas_src>
import jax
import jax.numpy as jnp
from jax.experimental import pallas as pl
from jax.experimental.pallas import tpu as pltpu

VOCAB = 4762
EMB_DIM = 300
D_PAD = 384                      # 300 zero-padded up to a multiple of 128
N_FILTERS = 256
FILTER_SIZES = (2, 3, 4)
N_CLASSES = 10
N_PAD = 128                      # lane-dense FC output width (zero-padded classes)
PAD_IDX = 4761


def textcnn_kernel(emb_ref, w2_ref, b2_ref, w3_ref, b3_ref, w4_ref, b4_ref,
                   fcw_ref, fcb_ref, out_ref):
    emb = emb_ref[...]                                   # (Bt, L, D_PAD) bf16
    Bt, L, Dp = emb.shape

    def conv_relu_maxpool(w_ref, b_ref, k):
        # w_ref: (k*D_PAD, C) bf16 (zero rows in the padded D slots), b_ref: (1, C) f32
        T = L - k + 1
        # im2col unfold: one lane-aligned (Bt*T, k*D_PAD) operand -> single MXU matmul
        x = jnp.concatenate([emb[:, j:j + T, :] for j in range(k)], axis=-1)
        x = x.reshape(Bt * T, k * Dp)
        acc = jnp.dot(x, w_ref[...], preferred_element_type=jnp.float32)   # f32 acc
        acc = jnp.maximum(acc + b_ref[...], 0.0)                           # bias + ReLU
        return jnp.max(acc.reshape(Bt, T, -1), axis=1)                     # (Bt, C)

    p2 = conv_relu_maxpool(w2_ref, b2_ref, 2)
    p3 = conv_relu_maxpool(w3_ref, b3_ref, 3)
    p4 = conv_relu_maxpool(w4_ref, b4_ref, 4)
    feat = jnp.concatenate([p2, p3, p4], axis=1).astype(jnp.bfloat16)      # (Bt, 768)

    # Dropout(0.5) is identity in eval mode.
    logits = jnp.dot(feat, fcw_ref[...], preferred_element_type=jnp.float32)
    out_ref[...] = logits + fcb_ref[...]                 # (Bt, 128) lane-dense store


def init_params(key):
    ks = jax.random.split(key, 10)
    emb = jax.random.normal(ks[0], (VOCAB, EMB_DIM), jnp.float32)
    emb = emb.at[PAD_IDX].set(0.0)                       # padding_idx row is zero
    emb = jnp.pad(emb, ((0, 0), (0, D_PAD - EMB_DIM))).astype(jnp.bfloat16)
    params = {"embedding": emb}
    for i, k in enumerate(FILTER_SIZES):
        fan_in = 1 * k * EMB_DIM
        bound = 1.0 / (fan_in ** 0.5)
        w = jax.random.uniform(ks[1 + 2 * i], (k, EMB_DIM, N_FILTERS),
                               jnp.float32, -bound, bound)
        w = jnp.pad(w, ((0, 0), (0, D_PAD - EMB_DIM), (0, 0)))       # zero-pad D -> 384
        params[f"conv{k}_w"] = w.reshape(k * D_PAD, N_FILTERS).astype(jnp.bfloat16)
        params[f"conv{k}_b"] = jax.random.uniform(ks[2 + 2 * i], (1, N_FILTERS),
                                                  jnp.float32, -bound, bound)
    fan_in = N_FILTERS * len(FILTER_SIZES)
    bound = 1.0 / (fan_in ** 0.5)
    fc_w = jax.random.uniform(ks[7], (fan_in, N_CLASSES), jnp.float32, -bound, bound)
    params["fc_w"] = jnp.pad(fc_w, ((0, 0), (0, N_PAD - N_CLASSES))).astype(jnp.bfloat16)
    fc_b = jax.random.uniform(ks[8], (1, N_CLASSES), jnp.float32, -bound, bound)
    params["fc_b"] = jnp.pad(fc_b, ((0, 0), (0, N_PAD - N_CLASSES)))
    return params


def _pick_b_tile(B, L):
    """Batch tile: aim for >=256 MXU rows per conv matmul, but cap the bf16 emb tile
    (double-buffered) at ~8 MiB so it fits comfortably even on v7x's 64 MiB VMEM."""
    t_min = max(1, L - max(FILTER_SIZES) + 1)
    want = -(-256 // t_min)                                    # ceil(256 / shortest T)
    cap = max(8, (8 * 1024 * 1024) // (2 * 2 * L * D_PAD))     # 2 bufs * 2 B/elem
    target = min(max(8, want), cap, B)
    for bt in range(target, 0, -1):                            # divisor of B, 8-aligned
        if B % bt == 0 and (bt % 8 == 0 or bt == B):
            return bt
    return B


def textcnn_forward(ids, params, b_tile=None):
    B, L = ids.shape
    # Embedding gather stays in plain JAX glue (bf16 table halves the HBM bytes).
    # TODO(synk): fold the gather into the Pallas pipeline (PrefetchScalarGridSpec +
    # per-row DMA) to avoid materializing the (B, L, 384) intermediate in HBM.
    emb = jnp.take(params["embedding"], ids, axis=0)           # (B, L, D_PAD) bf16

    if b_tile is None:
        b_tile = _pick_b_tile(B, L)
    assert B % b_tile == 0

    weight_spec = pl.BlockSpec(memory_space=pltpu.MemorySpace.VMEM)   # resident weights
    out_padded = pl.pallas_call(
        textcnn_kernel,
        out_shape=jax.ShapeDtypeStruct((B, N_PAD), jnp.float32),
        grid=(B // b_tile,),
        in_specs=[pl.BlockSpec((b_tile, L, D_PAD), lambda i: (i, 0, 0))]
                 + [weight_spec] * 8,
        out_specs=pl.BlockSpec((b_tile, N_PAD), lambda i: (i, 0)),
        compiler_params=pltpu.CompilerParams(
            dimension_semantics=("parallel",),                 # split batch across TCs
            vmem_limit_bytes=64 * 1024 * 1024),                # > v5e's 16 MiB default
    )(
        emb,
        params["conv2_w"], params["conv2_b"],
        params["conv3_w"], params["conv3_b"],
        params["conv4_w"], params["conv4_b"],
        params["fc_w"], params["fc_b"],
    )
    return out_padded[:, :N_CLASSES]


if __name__ == "__main__":
    key = jax.random.PRNGKey(0)
    pkey, dkey = jax.random.split(key)
    params = init_params(pkey)

    B, L = 16, 8                                        # small sequence batch
    ids = jax.random.randint(dkey, (B, L), 0, VOCAB, dtype=jnp.int32)

    out = textcnn_forward(ids, params, b_tile=8)        # grid=(2,) exercises pipelining
    out = jax.block_until_ready(out)
    assert out.shape == (B, N_CLASSES) and out.dtype == jnp.float32
    assert bool(jnp.all(jnp.isfinite(out)))
    print("KERNEL_OK")
</pallas_src>

<mosaic_0001>
module attributes {stable_mosaic.version = 11 : i64} {
  func.func @textcnn_kernel(%arg0: i32, %arg1: memref<8x8x384xbf16, #tpu.memory_space<vmem>>, %arg2: memref<768x256xbf16, #tpu.memory_space<vmem>>, %arg3: memref<1x256xf32, #tpu.memory_space<vmem>>, %arg4: memref<1152x256xbf16, #tpu.memory_space<vmem>>, %arg5: memref<1x256xf32, #tpu.memory_space<vmem>>, %arg6: memref<1536x256xbf16, #tpu.memory_space<vmem>>, %arg7: memref<1x256xf32, #tpu.memory_space<vmem>>, %arg8: memref<768x128xbf16, #tpu.memory_space<vmem>>, %arg9: memref<1x128xf32, #tpu.memory_space<vmem>>, %arg10: memref<8x128xf32, #tpu.memory_space<vmem>>) attributes {dimension_semantics = [#tpu.dimension_semantics<parallel>], iteration_bounds = array<i64: 2>, scalar_prefetch = 0 : i64, scratch_operands = 0 : i64, tpu.core_type = #tpu.core_type<tc>, window_params = [{transform_indices = @transform_0, window_bounds = array<i64: 8, 8, 384>}, {pipeline_mode = #tpu.pipeline_mode<synchronous>, transform_indices = @transform_1, window_bounds = array<i64: 768, 256>}, {pipeline_mode = #tpu.pipeline_mode<synchronous>, transform_indices = @transform_2, window_bounds = array<i64: 1, 256>}, {pipeline_mode = #tpu.pipeline_mode<synchronous>, transform_indices = @transform_3, window_bounds = array<i64: 1152, 256>}, {pipeline_mode = #tpu.pipeline_mode<synchronous>, transform_indices = @transform_4, window_bounds = array<i64: 1, 256>}, {pipeline_mode = #tpu.pipeline_mode<synchronous>, transform_indices = @transform_5, window_bounds = array<i64: 1536, 256>}, {pipeline_mode = #tpu.pipeline_mode<synchronous>, transform_indices = @transform_6, window_bounds = array<i64: 1, 256>}, {pipeline_mode = #tpu.pipeline_mode<synchronous>, transform_indices = @transform_7, window_bounds = array<i64: 768, 128>}, {pipeline_mode = #tpu.pipeline_mode<synchronous>, transform_indices = @transform_8, window_bounds = array<i64: 1, 128>}, {transform_indices = @transform_9, window_bounds = array<i64: 8, 128>}]} {
    %c0 = arith.constant 0 : index
    %c0_0 = arith.constant 0 : index
    %c0_1 = arith.constant 0 : index
    %0 = vector.load %arg1[%c0, %c0_0, %c0_1] : memref<8x8x384xbf16, #tpu.memory_space<vmem>>, vector<8x8x384xbf16>
    %1 = vector.extract_strided_slice %0 {offsets = [0, 0, 0], sizes = [8, 7, 384], strides = [1, 1, 1]} : vector<8x8x384xbf16> to vector<8x7x384xbf16>
    %2 = vector.extract_strided_slice %0 {offsets = [0, 1, 0], sizes = [8, 7, 384], strides = [1, 1, 1]} : vector<8x8x384xbf16> to vector<8x7x384xbf16>
    %3 = tpu.concatenate %1, %2 in 2 : vector<8x7x384xbf16>, vector<8x7x384xbf16> -> vector<8x7x768xbf16>
    %4 = vector.shape_cast %3 : vector<8x7x768xbf16> to vector<56x768xbf16>
    %c0_2 = arith.constant 0 : index
    %c0_3 = arith.constant 0 : index
    %5 = vector.load %arg2[%c0_2, %c0_3] : memref<768x256xbf16, #tpu.memory_space<vmem>>, vector<768x256xbf16>
    %cst = arith.constant dense<0.000000e+00> : vector<56x256xf32>
    %6 = tpu.matmul %4, %5, %cst {dimension_numbers = #tpu.dot_dimension_numbers<[1], [0], [0], [1], [0, 0, 1, 1], [], []>} : vector<56x768xbf16>, vector<768x256xbf16>, vector<56x256xf32> -> vector<56x256xf32>
    %c0_4 = arith.constant 0 : index
    %c0_5 = arith.constant 0 : index
    %7 = vector.load %arg3[%c0_4, %c0_5] : memref<1x256xf32, #tpu.memory_space<vmem>>, vector<1x256xf32>
    %8 = vector.broadcast %7 : vector<1x256xf32> to vector<56x256xf32>
    %9 = arith.addf %6, %8 : vector<56x256xf32>
    %cst_6 = arith.constant 0.000000e+00 : f32
    %10 = vector.broadcast %cst_6 : f32 to vector<56x256xf32>
    %11 = arith.maximumf %9, %10 : vector<56x256xf32>
    %12 = vector.shape_cast %11 : vector<56x256xf32> to vector<8x7x256xf32>
    %cst_7 = arith.constant dense<0xFF800000> : vector<8x256xf32>
    %13 = vector.multi_reduction <maximumf>, %12, %cst_7 [1] : vector<8x7x256xf32> to vector<8x256xf32>
    %14 = vector.extract_strided_slice %0 {offsets = [0, 0, 0], sizes = [8, 6, 384], strides = [1, 1, 1]} : vector<8x8x384xbf16> to vector<8x6x384xbf16>
    %15 = vector.extract_strided_slice %0 {offsets = [0, 1, 0], sizes = [8, 6, 384], strides = [1, 1, 1]} : vector<8x8x384xbf16> to vector<8x6x384xbf16>
    %16 = vector.extract_strided_slice %0 {offsets = [0, 2, 0], sizes = [8, 6, 384], strides = [1, 1, 1]} : vector<8x8x384xbf16> to vector<8x6x384xbf16>
    %17 = tpu.concatenate %14, %15, %16 in 2 : vector<8x6x384xbf16>, vector<8x6x384xbf16>, vector<8x6x384xbf16> -> vector<8x6x1152xbf16>
    %18 = vector.shape_cast %17 : vector<8x6x1152xbf16> to vector<48x1152xbf16>
    %c0_8 = arith.constant 0 : index
    %c0_9 = arith.constant 0 : index
    %19 = vector.load %arg4[%c0_8, %c0_9] : memref<1152x256xbf16, #tpu.memory_space<vmem>>, vector<1152x256xbf16>
    %cst_10 = arith.constant dense<0.000000e+00> : vector<48x256xf32>
    %20 = tpu.matmul %18, %19, %cst_10 {dimension_numbers = #tpu.dot_dimension_numbers<[1], [0], [0], [1], [0, 0, 1, 1], [], []>} : vector<48x1152xbf16>, vector<1152x256xbf16>, vector<48x256xf32> -> vector<48x256xf32>
    %c0_11 = arith.constant 0 : index
    %c0_12 = arith.constant 0 : index
    %21 = vector.load %arg5[%c0_11, %c0_12] : memref<1x256xf32, #tpu.memory_space<vmem>>, vector<1x256xf32>
    %22 = vector.broadcast %21 : vector<1x256xf32> to vector<48x256xf32>
    %23 = arith.addf %20, %22 : vector<48x256xf32>
    %cst_13 = arith.constant 0.000000e+00 : f32
    %24 = vector.broadcast %cst_13 : f32 to vector<48x256xf32>
    %25 = arith.maximumf %23, %24 : vector<48x256xf32>
    %26 = vector.shape_cast %25 : vector<48x256xf32> to vector<8x6x256xf32>
    %cst_14 = arith.constant dense<0xFF800000> : vector<8x256xf32>
    %27 = vector.multi_reduction <maximumf>, %26, %cst_14 [1] : vector<8x6x256xf32> to vector<8x256xf32>
    %28 = vector.extract_strided_slice %0 {offsets = [0, 0, 0], sizes = [8, 5, 384], strides = [1, 1, 1]} : vector<8x8x384xbf16> to vector<8x5x384xbf16>
    %29 = vector.extract_strided_slice %0 {offsets = [0, 1, 0], sizes = [8, 5, 384], strides = [1, 1, 1]} : vector<8x8x384xbf16> to vector<8x5x384xbf16>
    %30 = vector.extract_strided_slice %0 {offsets = [0, 2, 0], sizes = [8, 5, 384], strides = [1, 1, 1]} : vector<8x8x384xbf16> to vector<8x5x384xbf16>
    %31 = vector.extract_strided_slice %0 {offsets = [0, 3, 0], sizes = [8, 5, 384], strides = [1, 1, 1]} : vector<8x8x384xbf16> to vector<8x5x384xbf16>
    %32 = tpu.concatenate %28, %29, %30, %31 in 2 : vector<8x5x384xbf16>, vector<8x5x384xbf16>, vector<8x5x384xbf16>, vector<8x5x384xbf16> -> vector<8x5x1536xbf16>
    %33 = vector.shape_cast %32 : vector<8x5x1536xbf16> to vector<40x1536xbf16>
    %c0_15 = arith.constant 0 : index
    %c0_16 = arith.constant 0 : index
    %34 = vector.load %arg6[%c0_15, %c0_16] : memref<1536x256xbf16, #tpu.memory_space<vmem>>, vector<1536x256xbf16>
    %cst_17 = arith.constant dense<0.000000e+00> : vector<40x256xf32>
    %35 = tpu.matmul %33, %34, %cst_17 {dimension_numbers = #tpu.dot_dimension_numbers<[1], [0], [0], [1], [0, 0, 1, 1], [], []>} : vector<40x1536xbf16>, vector<1536x256xbf16>, vector<40x256xf32> -> vector<40x256xf32>
    %c0_18 = arith.constant 0 : index
    %c0_19 = arith.constant 0 : index
    %36 = vector.load %arg7[%c0_18, %c0_19] : memref<1x256xf32, #tpu.memory_space<vmem>>, vector<1x256xf32>
    %37 = vector.broadcast %36 : vector<1x256xf32> to vector<40x256xf32>
    %38 = arith.addf %35, %37 : vector<40x256xf32>
    %cst_20 = arith.constant 0.000000e+00 : f32
    %39 = vector.broadcast %cst_20 : f32 to vector<40x256xf32>
    %40 = arith.maximumf %38, %39 : vector<40x256xf32>
    %41 = vector.shape_cast %40 : vector<40x256xf32> to vector<8x5x256xf32>
    %cst_21 = arith.constant dense<0xFF800000> : vector<8x256xf32>
    %42 = vector.multi_reduction <maximumf>, %41, %cst_21 [1] : vector<8x5x256xf32> to vector<8x256xf32>
    %43 = tpu.concatenate %13, %27, %42 in 1 : vector<8x256xf32>, vector<8x256xf32>, vector<8x256xf32> -> vector<8x768xf32>
    %44 = arith.truncf %43 : vector<8x768xf32> to vector<8x768xbf16>
    %c0_22 = arith.constant 0 : index
    %c0_23 = arith.constant 0 : index
    %45 = vector.load %arg8[%c0_22, %c0_23] : memref<768x128xbf16, #tpu.memory_space<vmem>>, vector<768x128xbf16>
    %cst_24 = arith.constant dense<0.000000e+00> : vector<8x128xf32>
    %46 = tpu.matmul %44, %45, %cst_24 {dimension_numbers = #tpu.dot_dimension_numbers<[1], [0], [0], [1], [0, 0, 1, 1], [], []>} : vector<8x768xbf16>, vector<768x128xbf16>, vector<8x128xf32> -> vector<8x128xf32>
    %c0_25 = arith.constant 0 : index
    %c0_26 = arith.constant 0 : index
    %47 = vector.load %arg9[%c0_25, %c0_26] : memref<1x128xf32, #tpu.memory_space<vmem>>, vector<1x128xf32>
    %48 = vector.broadcast %47 : vector<1x128xf32> to vector<8x128xf32>
    %49 = arith.addf %46, %48 : vector<8x128xf32>
    %c0_27 = arith.constant 0 : index
    %c0_28 = arith.constant 0 : index
    %50 = vector.load %arg10[%c0_27, %c0_28] : memref<8x128xf32, #tpu.memory_space<vmem>>, vector<8x128xf32>
    tpu.vector_store %arg10[%c0_27, %c0_28], %49 {strides = array<i32>} : memref<8x128xf32, #tpu.memory_space<vmem>>, vector<8x128xf32>,
    return
  }
  func.func @transform_0(%arg0: i32) -> (i32, i32, i32) {
    %c0_i32 = arith.constant 0 : i32
    %c0_i32_0 = arith.constant 0 : i32
    %c0_i32_1 = arith.constant 0 : i32
    return %arg0, %c0_i32, %c0_i32_0 : i32, i32, i32
  }
  func.func @transform_1(%arg0: i32) -> (i32, i32) {
    %c0_i32 = arith.constant 0 : i32
    %c0_i32_0 = arith.constant 0 : i32
    %c0_i32_1 = arith.constant 0 : i32
    return %c0_i32, %c0_i32_0 : i32, i32
  }
  func.func @transform_2(%arg0: i32) -> (i32, i32) {
    %c0_i32 = arith.constant 0 : i32
    %c0_i32_0 = arith.constant 0 : i32
    %c0_i32_1 = arith.constant 0 : i32
    return %c0_i32, %c0_i32_0 : i32, i32
  }
  func.func @transform_3(%arg0: i32) -> (i32, i32) {
    %c0_i32 = arith.constant 0 : i32
    %c0_i32_0 = arith.constant 0 : i32
    %c0_i32_1 = arith.constant 0 : i32
    return %c0_i32, %c0_i32_0 : i32, i32
  }
  func.func @transform_4(%arg0: i32) -> (i32, i32) {
    %c0_i32 = arith.constant 0 : i32
    %c0_i32_0 = arith.constant 0 : i32
    %c0_i32_1 = arith.constant 0 : i32
    return %c0_i32, %c0_i32_0 : i32, i32
  }
  func.func @transform_5(%arg0: i32) -> (i32, i32) {
    %c0_i32 = arith.constant 0 : i32
    %c0_i32_0 = arith.constant 0 : i32
    %c0_i32_1 = arith.constant 0 : i32
    return %c0_i32, %c0_i32_0 : i32, i32
  }
  func.func @transform_6(%arg0: i32) -> (i32, i32) {
    %c0_i32 = arith.constant 0 : i32
    %c0_i32_0 = arith.constant 0 : i32
    %c0_i32_1 = arith.constant 0 : i32
    return %c0_i32, %c0_i32_0 : i32, i32
  }
  func.func @transform_7(%arg0: i32) -> (i32, i32) {
    %c0_i32 = arith.constant 0 : i32
    %c0_i32_0 = arith.constant 0 : i32
    %c0_i32_1 = arith.constant 0 : i32
    return %c0_i32, %c0_i32_0 : i32, i32
  }
  func.func @transform_8(%arg0: i32) -> (i32, i32) {
    %c0_i32 = arith.constant 0 : i32
    %c0_i32_0 = arith.constant 0 : i32
    %c0_i32_1 = arith.constant 0 : i32
    return %c0_i32, %c0_i32_0 : i32, i32
  }
  func.func @transform_9(%arg0: i32) -> (i32, i32) {
    %c0_i32 = arith.constant 0 : i32
    %c0_i32_0 = arith.constant 0 : i32
    return %arg0, %c0_i32 : i32, i32
  }
}

</mosaic_0001>

<bundles_post_ra>
// kernel: tpu_custom_call.1
= control target key start
LH: loop header
LB: loop body
LE: loop exit
PB: predicated region body
PF: predicated region fallthrough
CT: control target
= control target key end

     0   :  { %s14883_s0 = inlined_call_operand.hbm [shape: bf16[16,8,384], index: 0, kind: input, shape index: {}]   ;;  %s14884_s1 = inlined_call_operand.hbm [shape: bf16[768,256], index: 1, kind: input, shape index: {}]   ;;  %s14885_s2 = inlined_call_operand.vmem [shape: f32[1,256], index: 2, kind: input, shape index: {}]   ;;  %s14886_s3 = inlined_call_operand.hbm [shape: bf16[1152,256], index: 3, kind: input, shape index: {}]   ;;  %s14887_s4 = inlined_call_operand.vmem [shape: f32[1,256], index: 4, kind: input, shape index: {}]   ;;  %s14888_s5 = inlined_call_operand.hbm [shape: bf16[1536,256], index: 5, kind: input, shape index: {}]   ;;  %s14889_s6 = inlined_call_operand.vmem [shape: f32[1,256], index: 6, kind: input, shape index: {}]   ;;  %s14890_s7 = inlined_call_operand.hbm [shape: bf16[768,128], index: 7, kind: input, shape index: {}]   ;;  %s14891_s8 = inlined_call_operand.vmem [shape: f32[1,128], index: 8, kind: input, shape index: {}]   ;;  %s14892_s9 = inlined_call_operand.hbm [shape: f32[16,128], index: 9, kind: output, shape index: {}]  }
   0x1   :  { %15089 = sst [smem:[#allocation62_spill]] %s14884_s1 }
   0x2   :  { %15090 = sst [smem:[#allocation63_spill]] %s14886_s3 }
   0x3   :  { %15091 = sst [smem:[#allocation64_spill]] %s14888_s5 }
   0x4   :  { %14 = vsyncpa [#allocation3], 0 }
   0x5   :  { %16 = vsyncpa [#allocation3 + $0x1], 0 }
   0x6   :  { %17 = vsyncpa [#allocation6], 0 }
   0x7   :  { %18 = vsyncpa [#allocation9], 0 }
   0x8   :  { %19 = vsyncpa [#allocation4], 0 }
   0x9   :  { %21 = vsyncpa [#allocation4 + $0x1], 0  ;;  %s12035_s30 = smov 0   ;;  %s12037_s10 = smov 0  }
   0xa   :  { %s12039_s11 = smov 0   ;;  %s12041_s12 = smov 0  }
   0xb LB: > { %s12056_s13 = sadd.s32 4294967295, %s11968_s12   ;;  %s10252_s14 = sadd.s32 4294967294, %s11968_s12   ;;  %s11968_s12 = sphi %s12041_s12, %s15446_s12   ;;  %s11964_s11 = sphi %s12039_s11, %s15445_s11   ;;  %s11960_s10 = sphi %s12037_s10, %s15444_s10   ;;  %s11956_s30 = sphi %s12035_s30, %s15443_s30  }
   0xc   : > { %p47_p0 = scmp.ne.s32.totalorder %s11960_s10, %s11956_s30  ;;  %p14893_p1 = scmp.eq.s32.totalorder %s12056_s13, 0 }
   0xd   : > { %p245_p3 = scmp.eq.s32.totalorder %s10252_s14, 1  ;;  %p10253_p5 = scmp.ge.s32.totalorder %s11968_s12, 1 }
   0xe   : > { %p12065_p4 = por %p14893_p1, %p47_p0  ;;  %p252_p7 = scmp.lt.s32.totalorder %s11968_s12, 3 }
   0xf   : > { %p12070_p6 = por %p245_p3, %p47_p0  ;;  %s11970_s18 = smov [#allocation5]  }
  0x10   : > { %s15092_s15 = scalar_select %p12065_p4, 1, 0 }
  0x11   : > { %s15093_s16 = scalar_select %p12070_p6, 1, 0 }
  0x12   : > { %p12075_p8 = pnand %p10253_p5, %p252_p7  ;;  %s264_s19 = sshll.u32 %s11970_s18, 4  ;;  %s265_s19 = int_to_ptr.vmem [resolvable:$true] %s264_s19 }
  0x13   : > { %s11971_s21 = smov [#allocation8]   ;;  %s11972_s23 = smov [#allocation7]  }
  0x14   : > { %s15094_s17 = scalar_select %p12075_p8, 1, 0 }
  0x15   : > { %p10968_p9 = pneg %p12075_p8  ;;  %s296_s22 = sshll.u32 %s11971_s21, 4  ;;  %s297_s22 = int_to_ptr.vmem [resolvable:$true] %s296_s22 }
  0x16   : > { %s280_s24 = sshll.u32 %s11972_s23, 4  ;;  %s11775_s25 = scalar_lea.vmem %s265_s19, 12288  ;;  %s281_s24 = int_to_ptr.vmem [resolvable:$true] %s280_s24 }
  0x17   : > { %p12084_p11 = pnand %p10968_p9, %p14893_p1  ;;  %p11776_p13 = scmp.ne.s32.totalorder %s265_s19, %s11775_s25 }
  0x18   : > { %p11783_p5 = scmp.lt.s32.totalorder %s265_s19, %s265_s19  ;;  %p11784_p7 = scmp.lt.s32.totalorder %s11775_s25, %s11775_s25 }
  0x19   : > { %p11766_p12 = pneg %p12084_p11 }
  0x1a   : > { %p11785_p9 = por %p11784_p7, %p11783_p5 }
  0x1b   : > { %p11778_p0 = pnand %p11776_p13, %p11766_p12 }
  0x1d   : > { %p11779_p3 = pneg %p11778_p0 }
  0x1f   : > { %p11786_p10 = pnand %p11785_p9, %p11779_p3 }
  0x21   : > { %11789 = shalt.err (!%p11786_p10)
}
  0x22   : > { %s11973_s26 = smov 128   ;;  %s11974_s27 = smov 8  }
  0x23   : > { %s15096_s1 = sld [smem:[#allocation62_spill]]  ;;  %s11801_s14 = scalar_lea.vmem %s297_s22, 24576 }
  0x24   : > { %p11802_p1 = scmp.ne.s32.totalorder %s297_s22, %s11801_s14  ;;  %p11809_p2 = scmp.lt.s32.totalorder %s297_s22, %s297_s22 }
  0x25   : > { %p11810_p6 = scmp.lt.s32.totalorder %s11801_s14, %s11801_s14 }
  0x26   : > { %p11804_p13 = pnand %p11802_p1, %p11766_p12 }
  0x27   : > { %p11811_p5 = por %p11810_p6, %p11809_p2 }
  0x28   : > { %p11805_p0 = pneg %p11804_p13 }
  0x29   : > { %10971 = dma.hbm_to_vmem [thread:$0]  (!%p12084_p11), %s15096_s1, 12288, %s265_s19, [#allocation6], %s11973_s26, %s11973_s26, %s11974_s27  }
  0x2a   : > { %p11812_p3 = pnand %p11811_p5, %p11805_p0 }
  0x2c   : > { %11815 = shalt.err (!%p11812_p3)
}
  0x2d   : > { %s15097_s5 = sld [smem:[#allocation64_spill]]  ;;  %s11827_s19 = scalar_lea.vmem %s281_s24, 18432 }
  0x2e   : > { %p11828_p10 = scmp.ne.s32.totalorder %s281_s24, %s11827_s19  ;;  %p11835_p9 = scmp.lt.s32.totalorder %s281_s24, %s281_s24 }
  0x2f   : > { %p11836_p13 = scmp.lt.s32.totalorder %s11827_s19, %s11827_s19 }
  0x30   : > { %p11830_p7 = pnand %p11828_p10, %p11766_p12 }
  0x31   : > { %p11837_p4 = por %p11836_p13, %p11835_p9 }
  0x32   : > { %p11831_p1 = pneg %p11830_p7 }
  0x33   : > { %10977 = dma.hbm_to_vmem [thread:$0]  (!%p12084_p11), %s15097_s5, 24576, %s297_s22, [#allocation9], %s11973_s26, %s11973_s26, %s11974_s27  }
  0x34   : > { %p11838_p2 = pnand %p11837_p4, %p11831_p1 }
  0x36   : > { %11841 = shalt.err (!%p11838_p2)
}
  0x37   : > { %s15098_s3 = sld [smem:[#allocation63_spill]]  ;;  %s11975_s22 = smov [#allocation10]  }
  0x38   : > { %s312_s28 = sshll.u32 %s11975_s22, 4  ;;  %s313_s28 = int_to_ptr.vmem [resolvable:$true] %s312_s28 }
  0x39   : > { %s11853_s29 = scalar_lea.vmem %s313_s28, 6144  ;;  %p11861_p3 = scmp.lt.s32.totalorder %s313_s28, %s313_s28 }
  0x3a   : > { %p11854_p6 = scmp.ne.s32.totalorder %s313_s28, %s11853_s29  ;;  %p11862_p10 = scmp.lt.s32.totalorder %s11853_s29, %s11853_s29 }
  0x3c   : > { %p11856_p0 = pnand %p11854_p6, %p11766_p12  ;;  %p11863_p4 = por %p11862_p10, %p11861_p3 }
  0x3d   : > { %10974 = dma.hbm_to_vmem [thread:$0]  (!%p12084_p11), %s15098_s3, 18432, %s281_s24, [#allocation6], %s11973_s26, %s11973_s26, %s11974_s27  }
  0x3e   : > { %p11857_p5 = pneg %p11856_p0 }
  0x40   : > { %p11864_p7 = pnand %p11863_p4, %p11857_p5 }
  0x42   : > { %11867 = shalt.err (!%p11864_p7)
}
  0x43   : > { %s11976_s14 = smov 64   ;;  %s11977_s24 = smov 4  }
  0x44   : > { %10980 = dma.hbm_to_vmem [thread:$0]  (!%p12084_p11), %s14890_s7, 6144, %s313_s28, [#allocation9], %s11976_s14, %s11976_s14, %s11977_s24  }
  0x45   : > { %s12123_s18 = sadd.s32 1, %s11968_s12   ;;  %s34_s19 = sadd.s32 1, %s11964_s11 }
  0x46   : > { %s31_s21 = ssub.s32 %s11968_s12, %s12123_s18  ;;  %p41_p1 = scmp.ne.s32.totalorder %s11964_s11, %s11960_s10 }
  0x47   : > { %p32_p12 = scmp.eq.s32.totalorder %s31_s21, 0  ;;  %p42_p9 = scmp.eq.s32.totalorder %s11968_s12, 0 }
  0x48   : > { %p15099_p2 = scmp.eq.s32.totalorder %s12056_s13, 1  ;;  %p10993_p0 = scmp.lt.s32.totalorder %s11968_s12, 2 }
  0x49   : > { %s12132_s23 = scalar_select %p32_p12, %s11964_s11, %s34_s19  }
  0x4a   : > { %p43_p13 = por %p42_p9, %p41_p1  ;;  %p12136_p6 = por %p15099_p2, %p41_p1 }
  0x4b   : > { %s329_s20 = sand.u32 1, %s11964_s11   ;;  %s10946_s28 = smul.u32 1536, %s11968_s12 }
  0x4c   : > { %s15100_s25 = scalar_select %p12136_p6, 1, 0 }
  0x4d   : > { %s10945_s22 = smul.u32 96, %s329_s20  ;;  %p12143_p11 = pnand %p10993_p0, %p43_p13 }
  0x4e   : > { %s12150_s26 = scalar_lea.hbm %s14883_s0, %s10946_s28  ;;  %s12154_s19 = scalar_lea.sflag [#allocation3], %s329_s20 }
  0x4f   : > { %s333_s27 = scalar_lea.vmem [#allocation2], %s10945_s22  ;;  %s11868_s1 = scalar_lea.hbm %s12150_s26, 1536 }
  0x50   : > { %s341_s21 = sshll.u32 %s333_s27, 4  ;;  %p11869_p5 = scmp.ne.s32.totalorder %s12150_s26, %s11868_s1  ;;  %s12152_s21 = int_to_ptr.vmem [resolvable:$true] %s341_s21 }
  0x51   : > { %p11870_p3 = pneg %p12143_p11  ;;  %s11873_s28 = scalar_lea.hbm %s14883_s0, 3072 }
  0x52   : > { %p11874_p7 = scmp.lt.s32.totalorder %s12150_s26, %s14883_s0  ;;  %p11875_p12 = scmp.lt.s32.totalorder %s11873_s28, %s11868_s1 }
  0x53   : > { %p11871_p10 = pnand %p11870_p3, %p11869_p5 }
  0x54   : > { %p11876_p1 = por %p11875_p12, %p11874_p7 }
  0x55   : > { %p11872_p4 = pneg %p11871_p10 }
  0x57   : > { %p11877_p9 = pnand %p11876_p1, %p11872_p4 }
  0x59   : > { %11880 = shalt.err (!%p11877_p9)
}
  0x5a   : > { %s11881_s20 = scalar_lea.vmem %s12152_s21, 1536  ;;  %s11978_s22 = smov [#allocation2]  }
  0x5b   : > { %p11882_p13 = scmp.ne.s32.totalorder %s12152_s21, %s11881_s20  ;;  %s11886_s27 = sshll.u32 %s11978_s22, 4  ;;  %s11887_s27 = int_to_ptr.vmem [resolvable:$false] %s11886_s27 }
  0x5c   : > { %s11888_s3 = scalar_lea.vmem %s11887_s27, 3072  ;;  %p11889_p5 = scmp.lt.s32.totalorder %s12152_s21, %s11887_s27 }
  0x5d   : > { %p11884_p2 = pnand %p11882_p13, %p11870_p3  ;;  %p11890_p10 = scmp.lt.s32.totalorder %s11888_s3, %s11881_s20 }
  0x5f   : > { %p11885_p0 = pneg %p11884_p2  ;;  %p11891_p6 = por %p11890_p10, %p11889_p5 }
  0x61   : > { %p11892_p8 = pnand %p11891_p6, %p11885_p0 }
  0x63   : > { %11895 = shalt.err (!%p11892_p8)
}
  0x64   : > { %s11979_s1 = smov 192   ;;  %s11980_s5 = smov 12  }
  0x65   : > { %10984 = dma.hbm_to_vmem [thread:$0]  (!%p12143_p11), %s12150_s26, 1536, %s12152_s21, %s12154_s19, %s11979_s1, %s11979_s1, %s11980_s5  }
  0x66   : > { %p15102_p3 = scmp.ne.s32.totalorder %s15094_s17, 0 }
  0x68   : > { %353 = sbr.rel (%p15102_p3) target bundleno = 1120 (0x460), region = 56 }
  0x6d   : > { %s12178_s14 = sand.u32 1, %s11960_s10   ;;  %p15103_p8 = scmp.ne.s32.totalorder %s15092_s15, 0 }
  0x6e   : > { %s10947_s28 = smul.u32 96, %s12178_s14  ;;  %s356_s24 = scalar_lea.sflag [#allocation3], %s12178_s14 }
  0x70   : > { %s12182_s20 = scalar_lea.vmem [#allocation2], %s10947_s28 }
  0x71   : > { %11939 = dma.done.wait (%p15103_p8), %s356_s24, 1536  }
  0x72   : > { %11941 = vsyncadd (%p15103_p8), %s356_s24, 4294965760  ;;  %p15104_p6 = scmp.eq.s32.totalorder %s12056_s13, 0 }
  0x74   : > { %11943 = dma.done.wait (%p15104_p6), [#allocation6], 30720   ;;  %p15105_p11 = pmov %p15104_p6 }
  0x75   : > { %p15106_p4 = pmov %p15104_p6 }
  0x76   : > { %11945 = vsyncadd (%p15105_p11), [#allocation6], 4294936576 }
  0x77   : > { %11947 = dma.done.wait (%p15106_p4), [#allocation9], 30720   ;;  %p15107_p7 = pmov %p15106_p4 }
  0x78   : > { %v11044_v0 = vld [vmem:[#allocation5 + $0x74] ss:$8 sps:$4 sm:$0xff]   ;;  %v11048_v2 = vld [vmem:[#allocation5 + $0x70] ss:$8 sps:$4 sm:$0xff]   ;;  %v11050_v4 = vld [vmem:[#allocation5 + $0x64] ss:$8 sps:$4 sm:$0xff]   ;;  %v666_v40 = vlaneseq }
  0x79   : > { %11949 = vsyncadd (%p15107_p7), [#allocation9], 4294936576  ;;  %v11046_v1 = vld [vmem:[#allocation5 + $0x174] ss:$8 sps:$4 sm:$0xff]   ;;  %2296 = vmatprep.subr.bf16.mxu0 %v11044_v0  ;;  %v11049_v3 = vld [vmem:[#allocation5 + $0x170] ss:$8 sps:$4 sm:$0xff]  }
  0x7a   : > { %2367 = vmatprep.subr.bf16.mxu1 %v11046_v1  ;;  %2297 = vmatpush1.bf16.msra.mxu0 %v11048_v2  ;;  %v11052_v5 = vld [vmem:[#allocation5 + $0x164] ss:$8 sps:$4 sm:$0xff]   ;;  %v11054_v6 = vld [vmem:[#allocation5 + $0x60] ss:$8 sps:$4 sm:$0xff]   ;;  %v11056_v8 = vld [vmem:[#allocation5 + $0x54] ss:$8 sps:$4 sm:$0xff]  }
  0x7b   : > { %2368 = vmatpush1.bf16.msra.mxu1 %v11049_v3  ;;  %2298 = vmatprep.subr.bf16.mxu0 %v11050_v4  ;;  %v11055_v7 = vld [vmem:[#allocation5 + $0x160] ss:$8 sps:$4 sm:$0xff]   ;;  %v11058_v9 = vld [vmem:[#allocation5 + $0x154] ss:$8 sps:$4 sm:$0xff]   ;;  %v11060_v10 = vld [vmem:[#allocation5 + $0x50] ss:$8 sps:$4 sm:$0xff]  }
  0x7c   : > { %2369 = vmatprep.subr.bf16.mxu1 %v11052_v5  ;;  %v11061_v11 = vld [vmem:[#allocation5 + $0x150] ss:$8 sps:$4 sm:$0xff]   ;;  %v11062_v12 = vld [vmem:[#allocation5 + $0x44] ss:$8 sps:$4 sm:$0xff]   ;;  %v11066_v14 = vld [vmem:[#allocation5 + $0x40] ss:$8 sps:$4 sm:$0xff]  }
  0x7d   : > { %v11064_v13 = vld [vmem:[#allocation5 + $0x144] ss:$8 sps:$4 sm:$0xff]   ;;  %v11067_v15 = vld [vmem:[#allocation5 + $0x140] ss:$8 sps:$4 sm:$0xff]   ;;  %v11068_v16 = vld [vmem:[#allocation5 + $0x34] ss:$8 sps:$4 sm:$0xff]  }
  0x7e   : > { %2299 = vmatpush1.bf16.msra.mxu0 %v11054_v6  ;;  %v11070_v17 = vld [vmem:[#allocation5 + $0x134] ss:$8 sps:$4 sm:$0xff]   ;;  %v11072_v18 = vld [vmem:[#allocation5 + $0x30] ss:$8 sps:$4 sm:$0xff]   ;;  %v11074_v20 = vld [vmem:[#allocation5 + $0x24] ss:$8 sps:$4 sm:$0xff]  }
  0x7f   : > { %2370 = vmatpush1.bf16.msra.mxu1 %v11055_v7  ;;  %2300 = vmatprep.subr.bf16.mxu0 %v11056_v8  ;;  %v11073_v19 = vld [vmem:[#allocation5 + $0x130] ss:$8 sps:$4 sm:$0xff]   ;;  %v11076_v21 = vld [vmem:[#allocation5 + $0x124] ss:$8 sps:$4 sm:$0xff]   ;;  %v11078_v22 = vld [vmem:[#allocation5 + $0x20] ss:$8 sps:$4 sm:$0xff]  }
  0x80   : > { %2371 = vmatprep.subr.bf16.mxu1 %v11058_v9  ;;  %v11079_v23 = vld [vmem:[#allocation5 + $0x120] ss:$8 sps:$4 sm:$0xff]   ;;  %v11080_v24 = vld [vmem:[#allocation5 + $0x14] ss:$8 sps:$4 sm:$0xff]   ;;  %v11084_v26 = vld [vmem:[#allocation5 + $0x10] ss:$8 sps:$4 sm:$0xff]  }
  0x81   : > { %v11082_v25 = vld [vmem:[#allocation5 + $0x114] ss:$8 sps:$4 sm:$0xff]   ;;  %v11085_v27 = vld [vmem:[#allocation5 + $0x110] ss:$8 sps:$4 sm:$0xff]   ;;  %v11086_v28 = vld [vmem:[#allocation5 + $0x4] ss:$8 sps:$4 sm:$0xff]  }
  0x82   : > { %2301 = vmatpush1.bf16.msra.mxu0 %v11060_v10  ;;  %v11088_v29 = vld [vmem:[#allocation5 + $0x104] ss:$8 sps:$4 sm:$0xff]   ;;  %v11090_v30 = vld [vmem:[#allocation5] ss:$8 sps:$4 sm:$0xff]   ;;  %v11092_v32 = vld [vmem:[#allocation5 + $0xf4] ss:$8 sps:$4 sm:$0xff]  }
  0x83   : > { %2372 = vmatpush1.bf16.msra.mxu1 %v11061_v11  ;;  %2302 = vmatprep.subr.bf16.mxu0 %v11062_v12  ;;  %v11091_v31 = vld [vmem:[#allocation5 + $0x100] ss:$8 sps:$4 sm:$0xff]   ;;  %v11094_v33 = vld [vmem:[#allocation5 + $0x1f4] ss:$8 sps:$4 sm:$0xff]   ;;  %v11096_v34 = vld [vmem:[#allocation5 + $0xf0] ss:$8 sps:$4 sm:$0xff]  }
  0x84   : > { %2373 = vmatprep.subr.bf16.mxu1 %v11064_v13  ;;  %v11097_v35 = vld [vmem:[#allocation5 + $0x1f0] ss:$8 sps:$4 sm:$0xff]   ;;  %v11098_v36 = vld [vmem:[#allocation5 + $0xe4] ss:$8 sps:$4 sm:$0xff]   ;;  %v11981_v38 = vmov 1966171168  }
  0x85   : > { %v11100_v37 = vld [vmem:[#allocation5 + $0x1e4] ss:$8 sps:$4 sm:$0xff]   ;;  %v664_v39 = vunpack.c.l.s4 %v11981_v38  ;;  %v11102_v41 = vld [vmem:[#allocation5 + $0xe0] ss:$8 sps:$4 sm:$0xff]   ;;  %v11104_v43 = vld [vmem:[#allocation5 + $0xd4] ss:$8 sps:$4 sm:$0xff]  }
  0x86   : > { %2303 = vmatpush1.bf16.msra.mxu0 %v11066_v14  ;;  %v11103_v42 = vld [vmem:[#allocation5 + $0x1e0] ss:$8 sps:$4 sm:$0xff]   ;;  %v11106_v44 = vld [vmem:[#allocation5 + $0x1d4] ss:$8 sps:$4 sm:$0xff]   ;;  %v12196_v46 = vshrl.u32 %v666_v40, 7  ;;  %v414_v56 = vld [vmem:[%s12182_s20 + $0xc] sm:$0xff] }
  0x87   : > { %2374 = vmatpush1.bf16.msra.mxu1 %v11067_v15  ;;  %2304 = vmatprep.subr.bf16.mxu0 %v11068_v16  ;;  %v665_v45 = vunpack.c.0.s8 %v664_v39  ;;  %v11108_v47 = vld [vmem:[#allocation5 + $0xd0] ss:$8 sps:$4 sm:$0xff]   ;;  %v11110_v49 = vld [vmem:[#allocation5 + $0xc4] ss:$8 sps:$4 sm:$0xff]   ;;  %v11114_v52 = vld [vmem:[#allocation5 + $0xc0] ss:$8 sps:$4 sm:$0xff]   ;;  %v12221_v0 = vcombine.low %v414_v56, %v414_v56  ;;  %v12223_v1 = vcombine.high %v414_v56, %v414_v56 }
  0x88   : > { %2375 = vmatprep.subr.bf16.mxu1 %v11070_v17  ;;  %15108 = vst [vmem:[#allocation16_spill] sm:$0xff] %v12196_v46  ;;  %v11109_v48 = vld [vmem:[#allocation5 + $0x1d0] ss:$8 sps:$4 sm:$0xff]   ;;  %v11112_v50 = vld [vmem:[#allocation5 + $0x1c4] ss:$8 sps:$4 sm:$0xff]   ;;  %vm3423_vm0 = vcmask 1046528  }
  0x89   : > { %v12199_v51 = vsub.s32 %v665_v45, %v12196_v46  ;;  %v11115_v53 = vld [vmem:[#allocation5 + $0x1c0] ss:$8 sps:$4 sm:$0xff]   ;;  %v12207_v57 = vld [vmem:[%s12182_s20 + $0x14] sm:$0xf]  ;;  %v416_v62 = vld [vmem:[%s12182_s20 + $0x18] sm:$0xff]  ;;  %15112 = vst [vmem:[#allocation20_spill] sm:$0xff] %v12221_v0 }
  0x8a   : > { %2305 = vmatpush1.bf16.msra.mxu0 %v11072_v18  ;;  %v412_v54 = vld [vmem:[%s12182_s20] sm:$0xff]  ;;  %v12203_v55 = vld [vmem:[%s12182_s20 + $0x8] sm:$0xf]  ;;  %v11116_v61 = vld [vmem:[#allocation5 + $0xb4] ss:$8 sps:$4 sm:$0xff]   ;;  %15113 = vst [vmem:[#allocation21_spill] sm:$0xff] %v12223_v1  ;;  %v12227_v3 = vcombine.low %v12207_v57, %v12207_v57  ;;  %v12229_v4 = vcombine.low %v416_v62, %v416_v62 }
  0x8b   : > { %2376 = vmatpush1.bf16.msra.mxu1 %v11073_v19  ;;  %2306 = vmatprep.subr.bf16.mxu0 %v11074_v20  ;;  %v12209_v58 = vcombine.low %v412_v54, %v412_v54  ;;  %v12211_v59 = vcombine.high %v412_v54, %v412_v54  ;;  %v12214_v60 = vrot.slane %v412_v54, %v12199_v51  ;;  %v11118_v2 = vld [vmem:[#allocation5 + $0x1b4] ss:$8 sps:$4 sm:$0xff]   ;;  %v11120_v7 = vld [vmem:[#allocation5 + $0xb0] ss:$8 sps:$4 sm:$0xff]   ;;  %v14908_v14 = vshrl.u32 %v12221_v0, 16  ;;  %s10267_s3 = sshll.u32 %s12178_s14, 3 }
  0x8c   : > { %2377 = vmatprep.subr.bf16.mxu1 %v11076_v21  ;;  %v12219_v63 = vcombine.low %v12203_v55, %v12203_v55  ;;  %15114 = vst [vmem:[#allocation22_spill] sm:$0xff] %v12227_v3  ;;  %15115 = vst [vmem:[#allocation23_spill] sm:$0xff] %v12229_v4  ;;  %v11121_v8 = vld [vmem:[#allocation5 + $0x1b0] ss:$8 sps:$4 sm:$0xff]   ;;  %v14907_v15 = vshll.u32 %v12221_v0, 16  ;;  %v14906_v16 = vshrl.u32 %v12223_v1, 16 }
  0x8d   : > { %15109 = vst [vmem:[#allocation17_spill] sm:$0xff] %v12209_v58  ;;  %15110 = vst [vmem:[#allocation18_spill] sm:$0xff] %v12211_v59  ;;  %v14920_v5 = vshrl.u32 %v12209_v58, 16  ;;  %v14919_v6 = vshll.u32 %v12209_v58, 16  ;;  %v14918_v9 = vshrl.u32 %v12211_v59, 16  ;;  %v14917_v10 = vshll.u32 %v12211_v59, 16 }
  0x8e   : > { %2307 = vmatpush1.bf16.msra.mxu0 %v11078_v22  ;;  %15111 = vst [vmem:[#allocation19_spill] sm:$0xff] %v12219_v63  ;;  %v14916_v11 = vshrl.u32 %v12219_v63, 16  ;;  %v14910_v12 = vshll.u32 %v12219_v63, 16  ;;  %v11122_v17 = vld [vmem:[#allocation5 + $0xa4] ss:$8 sps:$4 sm:$0xff]   ;;  %v14905_v20 = vshll.u32 %v12223_v1, 16 }
  0x8f   : > { %2378 = vmatpush1.bf16.msra.mxu1 %v11079_v23  ;;  %2308 = vmatprep.subr.bf16.mxu0 %v11080_v24  ;;  %v497_v13 = vrot.slane %v14919_v6, 1  ;;  %v504_v18 = vrot.slane %v14917_v10, 1  ;;  %v14904_v21 = vshrl.u32 %v12227_v3, 16  ;;  %v11124_v22 = vld [vmem:[#allocation5 + $0x1a4] ss:$8 sps:$4 sm:$0xff]   ;;  %v518_v24 = vrot.slane %v14907_v15, 1 }
  0x90   : > { %2379 = vmatprep.subr.bf16.mxu1 %v11082_v25  ;;  %v511_v19 = vrot.slane %v14910_v12, 1  ;;  %v14903_v25 = vshll.u32 %v12227_v3, 16  ;;  %v12460_v10 = vld [vmem:[%s12182_s20 + $0x48] sm:$0xff]  ;;  %vm9525_vm1 = vcmask 1041409   ;;  %vm9527_vm2 = vcmask 1042434   ;;  %s10876_s1 = sshll.u32 %s12056_s13, 7 }
  0x91   : > { %v498_v23 = vor.u32 %v497_v13, %v14920_v5  ;;  %v11134_v13 = vld [vmem:[#allocation5 + $0x84] ss:$8 sps:$4 sm:$0xff]   ;;  %vm9529_vm3 = vcmask 1043459   ;;  %vm9531_vm4 = vcmask 1044484   ;;  %vm9533_vm5 = vcmask 1045509   ;;  %s409_s5 = scalar_lea.vmem [#allocation11], %s10267_s3  ;;  %s14846_s15 = scalar_lea.hbm %s14892_s9, %s10876_s1 }
  0x92   : > { %2309 = vmatpush1.bf16.msra.mxu0 %v11084_v26  ;;  %v14902_v26 = vshrl.u32 %v12229_v4, 16  ;;  %vm9535_vm6 = vcmask 1046534   ;;  %vm9537_vm7 = vcmask 1047559   ;;  %vm6017_vm8 = vcmask 1045504   ;;  %s10144_s28 = sshll.u32 %s409_s5, 4  ;;  %s10131_s17 = scalar_lea.sflag [#allocation4], %s12178_s14  ;;  %s10145_s28 = int_to_ptr.vmem [resolvable:$true] %s10144_s28 }
  0x93   : > { %2380 = vmatpush1.bf16.msra.mxu1 %v11085_v27  ;;  %2310 = vmatprep.subr.bf16.mxu0 %v11086_v28  ;;  %v11126_v27 = vld [vmem:[#allocation5 + $0xa0] ss:$8 sps:$4 sm:$0xff]   ;;  %v505_v28 = vor.u32 %v504_v18, %v14918_v9  ;;  %vm9396_vm9 = vcmask 1044480   ;;  %s11896_s29 = scalar_lea.vmem %s10145_s28, 128  ;;  %p15440_p1 = scmp.ne.s32.totalorder %s15100_s25, 0 }
  0x94   : > { %2381 = vmatprep.subr.bf16.mxu1 %v11088_v29  ;;  %v512_v29 = vor.u32 %v511_v19, %v14916_v11  ;;  %v11167_v11 = vld [vmem:[#allocation5 + $0x244] ss:$8 sps:$4 sm:$0xff]   ;;  %p11897_p12 = scmp.ne.s32.totalorder %s10145_s28, %s11896_s29  ;;  %s11984_s13 = smov [#allocation11]  }
  0x95   : > { %s11900_s26 = sshll.u32 %s11984_s13, 4  ;;  %s11901_s26 = int_to_ptr.vmem [resolvable:$false] %s11900_s26 }
  0x96   : > { %2311 = vmatpush1.bf16.msra.mxu0 %v11090_v30  ;;  %v525_v30 = vrot.slane %v14905_v20, 1  ;;  %v662_v40 = vcombine.low %v505_v28, %v512_v29  ;;  %v11138_v29 = vld [vmem:[#allocation5 + $0x80] ss:$8 sps:$4 sm:$0xff]   ;;  %v11155_v20 = vld [vmem:[#allocation5 + $0x264] ss:$8 sps:$4 sm:$0xff]   ;;  %p11898_p9 = pnand %p11897_p12, %p15440_p1  ;;  %s11902_s21 = scalar_lea.vmem %s11901_s26, 256 }
  0x97   : > { %2382 = vmatpush1.bf16.msra.mxu1 %v11091_v31  ;;  %2312 = vmatprep.subr.bf16.mxu0 %v11092_v32  ;;  %v14901_v31 = vshll.u32 %v12229_v4, 16  ;;  %v11127_v32 = vld [vmem:[#allocation5 + $0x1a0] ss:$8 sps:$4 sm:$0xff]   ;;  %p11903_p2 = scmp.lt.s32.totalorder %s10145_s28, %s11901_s26  ;;  %p11904_p0 = scmp.lt.s32.totalorder %s11902_s21, %s11896_s29 }
  0x98   : > { %2383 = vmatprep.subr.bf16.mxu1 %v11094_v33  ;;  %v519_v33 = vor.u32 %v518_v24, %v14908_v14  ;;  %v526_v38 = vor.u32 %v525_v30, %v14906_v16  ;;  %v11158_v16 = vld [vmem:[#allocation7 + $0x64] ss:$8 sps:$4 sm:$0xff]   ;;  %p11899_p13 = pneg %p11898_p9 }
  0x99   : > { %v539_v39 = vrot.slane %v14901_v31, 1  ;;  %p11905_p5 = por %p11904_p0, %p11903_p2 }
  0x9a   : > { %2313 = vmatpush2.bf16.msra.mxu0 %v11096_v34  ;;  %v532_v34 = vrot.slane %v14903_v25, 1 }
  0x9b   : > { %2384 = vmatpush2.bf16.msra.mxu1 %v11097_v35  ;;  %2314 = vmatprep.subr.bf16.mxu0 %v11098_v36  ;;  %v10292_v35 = vcombine.low %v12203_v55, %v498_v23  ;;  %v728_v36 = vrot.slane %v414_v56, %v12199_v51  ;;  %p11906_p10 = pnand %p11905_p5, %p11899_p13 }
  0x9c   : > { %2385 = vmatprep.subr.bf16.mxu1 %v11100_v37  ;;  %v11128_v37 = vld [vmem:[#allocation5 + $0x94] ss:$8 sps:$4 sm:$0xff]  }
  0x9d   : > { %v676_v45 = vrot.slane %v10292_v35, %v12199_v51  ;;  %v11139_v35 = vld [vmem:[#allocation5 + $0x180] ss:$8 sps:$4 sm:$0xff]  }
  0x9e   : > { %2315 = vmatpush2.bf16.msra.mxu0 %v11102_v41  ;;  %v12272_v41 = vrot.slane %v416_v62, %v12199_v51 }
  0x9f   : > { %2386 = vmatpush2.bf16.msra.mxu1 %v11103_v42  ;;  %2316 = vmatprep.subr.bf16.mxu0 %v11104_v43  ;;  %v11130_v42 = vld [vmem:[#allocation5 + $0x194] ss:$8 sps:$4 sm:$0xff]   ;;  %v417_v43 = vld [vmem:[%s12182_s20 + $0x20] sm:$0xf]  ;;  %v684_v54 = vcombine.low %v12214_v60, %v676_v45  ;;  %v685_v55 = vcombine.high %v12214_v60, %v676_v45  ;;  %v11136_v60 = vld [vmem:[#allocation5 + $0x184] ss:$8 sps:$4 sm:$0xff]  }
  0xa0   : > { %2387 = vmatprep.subr.bf16.mxu1 %v11106_v44  ;;  %v533_v44 = vor.u32 %v532_v34, %v14904_v21  ;;  %v3536_v34 = vrot.slane %v12209_v58, 1  ;;  %v11152_v45 = vld [vmem:[#allocation7 + $0x74] ss:$8 sps:$4 sm:$0xff]   ;;  %v11150_v21 = vld [vmem:[#allocation7 + $0x70] ss:$8 sps:$4 sm:$0xff]  }
  0xa1   : > { %v700_v18 = vrot.slane %v685_v55, %v12199_v51 }
  0xa2   : > { %2317 = vmatpush2.bf16.msra.mxu0 %v11108_v47  ;;  %v10293_v47 = vcombine.low %v12207_v57, %v519_v33  ;;  %v721_v56 = vcombine.low %v526_v38, %v533_v44  ;;  %v11133_v57 = vld [vmem:[#allocation5 + $0x190] ss:$8 sps:$4 sm:$0xff]   ;;  %v11149_v44 = vld [vmem:[#allocation5 + $0x274] ss:$8 sps:$4 sm:$0xff]  }
  0xa3   : > { %2388 = vmatpush2.bf16.msra.mxu1 %v11109_v48  ;;  %2318 = vmatprep.subr.bf16.mxu0 %v11110_v49  ;;  %v540_v48 = vor.u32 %v539_v39, %v14902_v26  ;;  %v12282_v49 = vrot.slane %v662_v40, %v12199_v51 }
  0xa4   : > { %2389 = vmatprep.subr.bf16.mxu1 %v11112_v50  ;;  %v12284_v50 = vcombine.high %v416_v62, %v416_v62  ;;  %v12303_v19 = vrot.slane %v721_v56, %v12199_v51 }
  0xa5   : > { %v12295_v62 = vrot.slane %v12282_v49, %v12199_v51 }
  0xa6   : > { %2319 = vmatpush2.bf16.msra.mxu0 %v11114_v52  ;;  %15116 = vst [vmem:[#allocation24_spill] sm:$0xff] %v12284_v50  ;;  %v12286_v52 = vcombine.low %v417_v43, %v417_v43  ;;  %v766_v33 = vrot.slane %v12303_v19, %v12199_v51 }
  0xa7   : > { %2390 = vmatpush2.bf16.msra.mxu1 %v11115_v53  ;;  %2320 = vmatprep.subr.bf16.mxu0 %v11116_v61  ;;  %v11132_v53 = vld [vmem:[#allocation5 + $0x90] ss:$8 sps:$4 sm:$0xff]   ;;  %v735_v61 = vrot.slane %v10293_v47, %v12199_v51 }
  0xa8   : > { %2391 = vmatprep.subr.bf16.mxu1 %v11118_v2  ;;  %15117 = vst [vmem:[#allocation25_spill] sm:$0xff] %v12286_v52  ;;  %v686_v2 = vcombine.high %v12282_v49, %v12282_v49  ;;  %v14898_v47 = vshrl.u32 %v12286_v52, 16  ;;  %v14897_v55 = vshll.u32 %v12286_v52, 16 }
  0xa9   : > { %v743_v24 = vcombine.low %v728_v36, %v735_v61 }
  0xaa   : > { %2321 = vmatpush2.bf16.msra.mxu0 %v11120_v7  ;;  %v10294_v7 = vcombine.low %v417_v43, %v540_v48  ;;  %v714_v23 = vrot.slane %v686_v2, %v12199_v51 }
  0xab   : > { %2392 = vmatpush2.bf16.msra.mxu1 %v11121_v8  ;;  %2322 = vmatprep.subr.bf16.mxu0 %v11122_v17  ;;  %v14900_v8 = vshrl.u32 %v12284_v50, 16  ;;  %v12299_v17 = vrot.slane %v684_v54, %v12199_v51 }
  0xac   : > { %2393 = vmatprep.subr.bf16.mxu1 %v11124_v22  ;;  %v14899_v22 = vshll.u32 %v12284_v50, 16  ;;  %v794_v28 = vrot.slane %v10294_v7, %v12199_v51 }
  0xad   : > { %v716_v30 = vcombine.high %v12299_v17, %v12295_v62  ;;  %v10316_v43 = vcombine.low %v12299_v17, %v700_v18 }
  0xae   : > { %2323 = vmatpush2.bf16.msra.mxu0 %v11126_v27  ;;  %v744_v27 = vcombine.high %v728_v36, %v735_v61  ;;  %v12316_v36 = vrot.slane %v743_v24, %v12199_v51  ;;  %v546_v39 = vrot.slane %v14899_v22, 1  ;;  %v803_v2 = vcombine.high %v12272_v41, %v794_v28 }
  0xaf   : > { %2394 = vmatpush2.bf16.msra.mxu1 %v11127_v32  ;;  %2324 = vmatprep.subr.bf16.mxu0 %v11128_v37  ;;  %v745_v32 = vcombine.high %v12303_v19, %v12303_v19  ;;  %v718_v37 = vcombine.high %v700_v18, %v714_v23  ;;  %v553_v18 = vrot.slane %v14897_v55, 1 }
  0xb0   : > { %2395 = vmatprep.subr.bf16.mxu1 %v11130_v42  ;;  %v12319_v38 = vrot.slane %v744_v27, %v12199_v51  ;;  %v802_v42 = vcombine.low %v12272_v41, %v794_v28  ;;  %v774_v48 = vcombine.low %v12316_v36, %v766_v33  ;;  %v547_v54 = vor.u32 %v546_v39, %v14900_v8 }
  0xb1   : > { %v773_v40 = vrot.slane %v745_v32, %v12199_v51  ;;  %v12341_v27 = vrot.slane %v10316_v43, %v12199_v51  ;;  %v10317_v32 = vcombine.low %v12295_v62, %v714_v23 }
  0xb2   : > { %2325 = vmatpush2.bf16.msra.mxu0 %v11132_v53  ;;  %v775_v53 = vcombine.high %v12316_v36, %v766_v33  ;;  %v1140_v7 = vunpack.i.h.s16 %v774_v48  ;;  %v3537_v33 = vrot.slane %v12211_v59, 1  ;;  %v11176_v59 = vld [vmem:[#allocation7 + $0x34] ss:$8 sps:$4 sm:$0xff]  }
  0xb3   : > { %2396 = vmatpush2.bf16.msra.mxu1 %v11133_v57  ;;  %2326 = vmatprep.subr.bf16.mxu0 %v11134_v13  ;;  %v776_v56 = vcombine.low %v12319_v38, %v773_v40  ;;  %v777_v61 = vcombine.high %v12319_v38, %v773_v40  ;;  %v12335_v57 = vrot.slane %v802_v42, %v12199_v51 }
  0xb4   : > { %2397 = vmatprep.subr.bf16.mxu1 %v11136_v60  ;;  %v1144_v13 = vunpack.i.h.s16 %v775_v53  ;;  %v10300_v60 = vpack.i.b16 %v774_v48, %v718_v37  ;;  %15118 = vst [vmem:[#allocation26_spill] sm:$0xff] %v12341_v27  ;;  %v12351_v40 = vrot.slane %v10317_v32, %v12199_v51 }
  0xb5   : > { %v1142_v24 = vunpack.i.h.s16 %v776_v56  ;;  %v10301_v39 = vpack.i.b16 %v776_v56, %v1140_v7 }
  0xb6   : > { %2327 = vmatpush2.bf16.msra.mxu0 %v11138_v29  ;;  %v12345_v41 = vpack.i.b16 %v777_v61, %v1144_v13  ;;  %v1326_v28 = vcombine.low %v716_v30, %v10300_v60  ;;  %v554_v29 = vor.u32 %v553_v18, %v14898_v47  ;;  %v10318_v37 = vcombine.high %v12295_v62, %v10300_v60  ;;  %v419_v13 = vld [vmem:[%s12182_s20 + $0x2c] sm:$0xf]  ;;  %v12374_v60 = vld [vmem:[%s12182_s20 + $0x30] sm:$0xff] }
  0xb7   : > { %2398 = vmatpush2.bf16.msra.mxu1 %v11139_v35  ;;  %2438 = vmatprep.subr.bf16.mxu0 %v11149_v44  ;;  %v10302_v35 = vpack.i.b16 %v775_v53, %v1142_v24  ;;  %v12357_v30 = vrot.slane %v803_v2, %v12199_v51  ;;  %v12362_v62 = vcombine.low %v3536_v34, %v3537_v33  ;;  %v418_v2 = vld [vmem:[%s12182_s20 + $0x24] sm:$0xff] }
  0xb8   : > { %5418 = vmatprep.subr.bf16.mxu1 %v11152_v45  ;;  %v10319_v23 = vcombine.low %v12345_v41, %v12335_v57  ;;  %v1352_v42 = vrot.slane %v1326_v28, %v12199_v51  ;;  %v780_v43 = vcombine.low %v547_v54, %v554_v29  ;;  %v12360_v48 = vrot.slane %v10318_v37, %v12199_v51 }
  0xb9   : > { %15119 = vst [vmem:[#allocation27_spill] sm:$0xff] %v12357_v30  ;;  %v1328_v44 = vcombine.low %v10301_v39, %v10302_v35  ;;  %v1329_v45 = vcombine.high %v10301_v39, %v10302_v35  ;;  %v12385_v39 = vcombine.low %v418_v2, %v418_v2  ;;  %v12387_v28 = vcombine.high %v418_v2, %v418_v2 }
  0xba   : > { %v1380_v53 = vrot.slane %v10319_v23, %v12199_v51  ;;  %v1389_v56 = vcombine.high %v12341_v27, %v1352_v42  ;;  %v1388_v61 = vcombine.low %v12341_v27, %v1352_v42  ;;  %v12368_v7 = vrot.slane %v780_v43, %v12199_v51 }
  0xbb   : > { %v1366_v54 = vrot.slane %v1328_v44, %v12199_v51  ;;  %v12377_v18 = vrot.slane %v1329_v45, %v12199_v51  ;;  %15121 = vst [vmem:[#allocation29_spill] sm:$0xff] %v12385_v39  ;;  %15122 = vst [vmem:[#allocation30_spill] sm:$0xff] %v12387_v28  ;;  %v12389_v37 = vcombine.low %v419_v13, %v419_v13  ;;  %v14922_v42 = vshrl.u32 %v12385_v39, 16 }
  0xbc   : > { %15120 = vst [vmem:[#allocation28_spill] sm:$0xff] %v12368_v7  ;;  %v1416_v32 = vrot.slane %v1389_v56, %v12199_v51  ;;  %v1402_v33 = vrot.slane %v1388_v61, %v12199_v51  ;;  %v12393_v23 = vcombine.low %v12374_v60, %v12374_v60  ;;  %v14921_v43 = vshll.u32 %v12385_v39, 16 }
  0xbd   : > { %v1393_v29 = vcombine.high %v1366_v54, %v1380_v53  ;;  %v1392_v35 = vcombine.low %v1366_v54, %v1380_v53  ;;  %15123 = vst [vmem:[#allocation31_spill] sm:$0xff] %v12389_v37  ;;  %v14913_v44 = vshrl.u32 %v12387_v28, 16  ;;  %v14909_v45 = vshll.u32 %v12387_v28, 16 }
  0xbe   : > { %15124 = vst [vmem:[#allocation32_spill] sm:$0xff] %v12393_v23  ;;  %v14915_v53 = vshrl.u32 %v12389_v37, 16  ;;  %v14912_v54 = vshll.u32 %v12389_v37, 16  ;;  %v560_v55 = vrot.slane %v14921_v43, 1  ;;  %v14914_v22 = vshrl.u32 %v12393_v23, 16 }
  0xbf   : > { %v1444_v56 = vrot.slane %v1393_v29, %v12199_v51  ;;  %v1430_v61 = vrot.slane %v1392_v35, %v12199_v51  ;;  %v567_v47 = vrot.slane %v14909_v45, 1  ;;  %v14911_v8 = vshll.u32 %v12393_v23, 16  ;;  %v11147_v29 = vld [vmem:[#allocation5 + $0x270] ss:$8 sps:$4 sm:$0xff]   ;;  %v11168_v43 = vld [vmem:[#allocation7 + $0x40] ss:$8 sps:$4 sm:$0xff]  }
  0xc0   : > { %v561_v15 = vor.u32 %v560_v55, %v14922_v42  ;;  %v574_v45 = vrot.slane %v14912_v54, 1  ;;  %v846_v55 = vrot.slane %v418_v2, %v12199_v51  ;;  %v11161_v54 = vld [vmem:[#allocation5 + $0x254] ss:$8 sps:$4 sm:$0xff]   ;;  %v905_v2 = vrot.slane %v12374_v60, %v12199_v51 }
  0xc1   : > { %v1455_v31 = vcombine.low %v1416_v32, %v1444_v56  ;;  %v1452_v26 = vcombine.low %v1402_v33, %v1430_v61  ;;  %v1456_v25 = vcombine.high %v1416_v32, %v1444_v56  ;;  %v1453_v35 = vcombine.high %v1402_v33, %v1430_v61  ;;  %v11153_v32 = vld [vmem:[#allocation5 + $0x260] ss:$8 sps:$4 sm:$0xff]  }
  0xc2   : > { %v568_v14 = vor.u32 %v567_v47, %v14913_v44  ;;  %v581_v12 = vrot.slane %v14911_v8, 1  ;;  %v804_v33 = vcombine.high %v12368_v7, %v12368_v7  ;;  %v12421_v56 = vrot.slane %v12368_v7, %v12199_v51  ;;  %v421_v47 = vld [vmem:[%s12182_s20 + $0x38] sm:$0xf]  ;;  %v11156_v8 = vld [vmem:[#allocation7 + $0x60] ss:$8 sps:$4 sm:$0xff]  }
  0xc3   : > { %2328 = vmatprep.mubr.bf16.mxu0 %v1455_v31  ;;  %2399 = vmatprep.mubr.bf16.mxu1 %v1456_v25  ;;  %v575_v61 = vor.u32 %v574_v45, %v14915_v53  ;;  %v10295_v31 = vcombine.low %v419_v13, %v561_v15  ;;  %v11164_v45 = vld [vmem:[#allocation7 + $0x54] ss:$8 sps:$4 sm:$0xff]   ;;  %v11159_v13 = vld [vmem:[#allocation5 + $0x250] ss:$8 sps:$4 sm:$0xff]   ;;  %v12454_v53 = vld [vmem:[%s12182_s20 + $0x44] sm:$0xf] }
  0xc4   : > { %2329 = vmatmul.mubr.bf16.vlgmr.msra.gmra.mxu0 %v1452_v26  ;;  %2400 = vmatmul.mubr.bf16.vlgmr.msra.gmra.mxu1 %v1453_v35  ;;  %v582_v25 = vor.u32 %v581_v12, %v14914_v22  ;;  %v12430_v44 = vrot.slane %v804_v33, %v12199_v51  ;;  %v834_v26 = vcombine.high %v12335_v57, %v12421_v56 }
  0xc5   : > { %2439 = vmatpush1.bf16.msra.mxu0 %v11147_v29  ;;  %5419 = vmatpush1.bf16.msra.mxu1 %v11150_v21  ;;  %v839_v35 = vcombine.low %v568_v14, %v575_v61  ;;  %v853_v12 = vrot.slane %v10295_v31, %v12199_v51  ;;  %v12438_v21 = vld [vmem:[%s12182_s20 + $0x3c] sm:$0xff]  ;;  %v11162_v29 = vld [vmem:[#allocation7 + $0x50] ss:$8 sps:$4 sm:$0xff]  }
  0xc6   : > { %2440 = vmatprep.subr.bf16.mxu0 %v11155_v20  ;;  %5420 = vmatprep.subr.bf16.mxu1 %v11158_v16  ;;  %v10296_v15 = vcombine.low %v421_v47, %v582_v25  ;;  %v836_v33 = vcombine.high %v12357_v30, %v12430_v44  ;;  %v10320_v22 = vcombine.low %v12357_v30, %v834_v26 }
  0xc7   : > { %v12445_v16 = vcombine.high %v12374_v60, %v12374_v60  ;;  %v12447_v20 = vcombine.low %v421_v47, %v421_v47  ;;  %v12450_v14 = vrot.slane %v839_v35, %v12199_v51  ;;  %v861_v61 = vcombine.low %v846_v55, %v853_v12  ;;  %v12463_v60 = vld [vmem:[%s12182_s20 + $0x50] sm:$0xf] }
  0xc8   : > { %v862_v25 = vcombine.high %v846_v55, %v853_v12  ;;  %v912_v31 = vrot.slane %v10296_v15, %v12199_v51  ;;  %v12457_v26 = vrot.slane %v10320_v22, %v12199_v51  ;;  %v12467_v47 = vcombine.low %v12438_v21, %v12438_v21 }
  0xc9   : > { %15125 = vst [vmem:[#allocation33_spill] sm:$0xff] %v12445_v16  ;;  %15126 = vst [vmem:[#allocation34_spill] sm:$0xff] %v12447_v20  ;;  %2441 = vmatpush1.bf16.msra.mxu0 %v11153_v32  ;;  %5421 = vmatpush1.bf16.msra.mxu1 %v11156_v8  ;;  %v12471_v55 = vcombine.high %v12438_v21, %v12438_v21  ;;  %v11170_v8 = vld [vmem:[#allocation7 + $0x44] ss:$8 sps:$4 sm:$0xff]   ;;  %v863_v22 = vcombine.high %v12450_v14, %v12450_v14  ;;  %v14935_v15 = vshll.u32 %v12445_v16, 16 }
  0xca   : > { %15127 = vst [vmem:[#allocation35_spill] sm:$0xff] %v12450_v14  ;;  %15128 = vst [vmem:[#allocation36_spill] sm:$0xff] %v12467_v47  ;;  %2442 = vmatprep.subr.bf16.mxu0 %v11161_v54  ;;  %5422 = vmatprep.subr.bf16.mxu1 %v11164_v45  ;;  %v12477_v32 = vrot.slane %v861_v61, %v12199_v51  ;;  %v12480_v12 = vrot.slane %v862_v25, %v12199_v51  ;;  %v11165_v45 = vld [vmem:[#allocation5 + $0x240] ss:$8 sps:$4 sm:$0xff]  }
  0xcb   : > { %15129 = vst [vmem:[#allocation37_spill] sm:$0xff] %v12471_v55  ;;  %v884_v9 = vrot.slane %v12450_v14, %v12199_v51  ;;  %v920_v6 = vcombine.low %v905_v2, %v912_v31  ;;  %v921_v5 = vcombine.high %v905_v2, %v912_v31  ;;  %v12487_v54 = vcombine.low %v12454_v53, %v12454_v53  ;;  %v11173_v2 = vld [vmem:[#allocation5 + $0x234] ss:$8 sps:$4 sm:$0xff]  }
  0xcc   : > { %15130 = vst [vmem:[#allocation38_spill] sm:$0xff] %v12477_v32  ;;  %15131 = vst [vmem:[#allocation39_spill] sm:$0xff] %v12480_v12  ;;  %v891_v42 = vrot.slane %v863_v22, %v12199_v51  ;;  %v12492_v61 = vcombine.low %v12460_v10, %v12460_v10  ;;  %v12496_v25 = vcombine.high %v12460_v10, %v12460_v10  ;;  %v588_v35 = vrot.slane %v14935_v15, 1 }
  0xcd   : > { %15132 = vst [vmem:[#allocation40_spill] sm:$0xff] %v12487_v54  ;;  %v12500_v34 = vcombine.low %v12463_v60, %v12463_v60  ;;  %2443 = vmatpush1.bf16.msra.mxu0 %v11159_v13  ;;  %5423 = vmatpush1.bf16.msra.mxu1 %v11162_v29  ;;  %v892_v31 = vcombine.low %v12477_v32, %v884_v9  ;;  %v11174_v29 = vld [vmem:[#allocation7 + $0x30] ss:$8 sps:$4 sm:$0xff]   ;;  %v15144_v7 = vshll.u32 %v12487_v54, 16 }
  0xce   : > { %15133 = vst [vmem:[#allocation41_spill] sm:$0xff] %v12492_v61  ;;  %15134 = vst [vmem:[#allocation42_spill] sm:$0xff] %v12496_v25  ;;  %v893_v24 = vcombine.high %v12477_v32, %v884_v9  ;;  %v12505_v22 = vrot.slane %v920_v6, %v12199_v51  ;;  %2444 = vmatprep.subr.bf16.mxu0 %v11167_v11  ;;  %5424 = vmatprep.subr.bf16.mxu1 %v11170_v8  ;;  %v15137_v6 = vshrl.u32 %v12445_v16, 16  ;;  %v11171_v11 = vld [vmem:[#allocation5 + $0x230] ss:$8 sps:$4 sm:$0xff]  }
  0xcf   : > { %15135 = vst [vmem:[#allocation43_spill] sm:$0xff] %v12500_v34  ;;  %v894_v58 = vcombine.low %v12480_v12, %v891_v42  ;;  %v895_v46 = vcombine.high %v12480_v12, %v891_v42  ;;  %v12512_v13 = vrot.slane %v921_v5, %v12199_v51  ;;  %v1154_v37 = vunpack.i.h.s16 %v892_v31  ;;  %v11182_v12 = vld [vmem:[#allocation7 + $0x24] ss:$8 sps:$4 sm:$0xff]   ;;  %v11180_v5 = vld [vmem:[#allocation7 + $0x20] ss:$8 sps:$4 sm:$0xff]  }
  0xd0   : > { %15136 = vst [vmem:[#allocation44_spill] sm:$0xff] %v12505_v22  ;;  %v1158_v9 = vunpack.i.h.s16 %v893_v24  ;;  %v12515_v52 = vpack.i.b16 %v892_v31, %v836_v33  ;;  %v12519_v3 = vor.u32 %v588_v35, %v15137_v6  ;;  %v14942_v31 = vshll.u32 %v12467_v47, 16  ;;  %v11179_v6 = vld [vmem:[#allocation5 + $0x224] ss:$8 sps:$4 sm:$0xff]  }
  0xd1   : > { %v1156_v8 = vunpack.i.h.s16 %v894_v58  ;;  %v10322_v15 = vcombine.low %v12505_v22, %v12512_v13  ;;  %2445 = vmatpush1.bf16.msra.mxu0 %v11165_v45  ;;  %5425 = vmatpush1.bf16.msra.mxu1 %v11168_v43  ;;  %v12525_v63 = vpack.i.b16 %v894_v58, %v1154_v37  ;;  %v15141_v43 = vshll.u32 %v12447_v20, 16 }
  0xd2   : > { %v12527_v33 = vpack.i.b16 %v895_v46, %v1158_v9  ;;  %2446 = vmatprep.subr.bf16.mxu0 %v11173_v2  ;;  %5426 = vmatprep.subr.bf16.mxu1 %v11176_v59  ;;  %v14951_v58 = vshll.u32 %v12471_v55, 16  ;;  %v602_v37 = vrot.slane %v14942_v31, 1  ;;  %v15142_v9 = vshrl.u32 %v12447_v20, 16  ;;  %v11185_v31 = vld [vmem:[#allocation5 + $0x214] ss:$8 sps:$4 sm:$0xff]  }
  0xd3   : > { %v12531_v32 = vpack.i.b16 %v893_v24, %v1156_v8  ;;  %v12534_v42 = vrot.slane %v10322_v15, %v12199_v51  ;;  %v595_v45 = vrot.slane %v15141_v43, 1  ;;  %v1460_v46 = vcombine.low %v12515_v52, %v12525_v63  ;;  %v11177_v24 = vld [vmem:[#allocation5 + $0x220] ss:$8 sps:$4 sm:$0xff]  }
  0xd4   : > { %15138 = vst [vmem:[#allocation45_spill] sm:$0xff] %v12527_v33  ;;  %v609_v43 = vrot.slane %v14951_v58, 1  ;;  %v15143_v2 = vshrl.u32 %v12467_v47, 16  ;;  %v616_v27 = vrot.slane %v15144_v7, 1  ;;  %v14953_v20 = vshll.u32 %v12492_v61, 16 }
  0xd5   : > { %15139 = vst [vmem:[#allocation46_spill] sm:$0xff] %v12531_v32  ;;  %15140 = vst [vmem:[#allocation47_spill] sm:$0xff] %v12534_v42  ;;  %v1462_v15 = vcombine.low %v12531_v32, %v12527_v33  ;;  %v596_v8 = vor.u32 %v595_v45, %v15142_v9  ;;  %2447 = vmatpush1.bf16.msra.mxu0 %v11171_v11  ;;  %5427 = vmatpush1.bf16.msra.mxu1 %v11174_v29  ;;  %v11188_v45 = vld [vmem:[#allocation7 + $0x14] ss:$8 sps:$4 sm:$0xff]   ;;  %v15145_v11 = vshrl.u32 %v12471_v55, 16 }
  0xd6   : > { %v1486_v59 = vrot.slane %v1460_v46, %v12199_v51  ;;  %v603_v14 = vor.u32 %v602_v37, %v15143_v2  ;;  %2448 = vmatprep.subr.bf16.mxu0 %v11179_v6  ;;  %5428 = vmatprep.subr.bf16.mxu1 %v11182_v12  ;;  %v14958_v46 = vshll.u32 %v12496_v25, 16  ;;  %v15146_v7 = vshrl.u32 %v12487_v54, 16  ;;  %v11183_v6 = vld [vmem:[#allocation5 + $0x210] ss:$8 sps:$4 sm:$0xff]  }
  0xd7   : > { %v1500_v9 = vrot.slane %v1462_v15, %v12199_v51  ;;  %v610_v29 = vor.u32 %v609_v43, %v15145_v11  ;;  %v623_v12 = vrot.slane %v14953_v20, 1  ;;  %v11186_v32 = vld [vmem:[#allocation7 + $0x10] ss:$8 sps:$4 sm:$0xff]   ;;  %v14964_v54 = vshll.u32 %v12500_v34, 16 }
  0xd8   : > { %v1523_v35 = vcombine.high %v12457_v26, %v1486_v59  ;;  %v1522_v37 = vcombine.low %v12457_v26, %v1486_v59  ;;  %v617_v2 = vor.u32 %v616_v27, %v15146_v7  ;;  %v630_v11 = vrot.slane %v14958_v46, 1  ;;  %v11191_v26 = vld [vmem:[#allocation5 + $0x204] ss:$8 sps:$4 sm:$0xff]  }
  0xd9   : > { %v1527_v15 = vcombine.high %v1500_v9, %v12534_v42  ;;  %v1526_v43 = vcombine.low %v1500_v9, %v12534_v42  ;;  %2449 = vmatpush1.bf16.msra.mxu0 %v11177_v24  ;;  %5429 = vmatpush1.bf16.msra.mxu1 %v11180_v5  ;;  %v15147_v7 = vshrl.u32 %v12492_v61, 16  ;;  %v11194_v9 = vld [vmem:[#allocation7 + $0x4] ss:$8 sps:$4 sm:$0xff]   ;;  %v15148_v24 = vshrl.u32 %v12496_v25, 16  ;;  %v11192_v61 = vld [vmem:[#allocation7] ss:$8 sps:$4 sm:$0xff]  }
  0xda   : > { %v1550_v59 = vrot.slane %v1523_v35, %v12199_v51  ;;  %v1536_v27 = vrot.slane %v1522_v37, %v12199_v51  ;;  %2450 = vmatprep.subr.bf16.mxu0 %v11185_v31  ;;  %5430 = vmatprep.subr.bf16.mxu1 %v11188_v45  ;;  %v637_v35 = vrot.slane %v14964_v54, 1  ;;  %v898_v37 = vcombine.low %v12519_v3, %v596_v8  ;;  %v11213_v54 = vld [vmem:[#allocation5 + $0x2d0] ss:$8 sps:$4 sm:$0xff]  }
  0xdb   : > { %v624_v20 = vor.u32 %v623_v12, %v15147_v7  ;;  %v1578_v42 = vrot.slane %v1527_v15, %v12199_v51  ;;  %v1564_v46 = vrot.slane %v1526_v43, %v12199_v51  ;;  %v631_v5 = vor.u32 %v630_v11, %v15148_v24  ;;  %v11189_v7 = vld [vmem:[#allocation5 + $0x200] ss:$8 sps:$4 sm:$0xff]   ;;  %v11197_v15 = vld [vmem:[#allocation5 + $0x2f4] ss:$8 sps:$4 sm:$0xff]  }
  0xdc   : > { %v10297_v58 = vcombine.low %v12454_v53, %v603_v14  ;;  %v957_v12 = vcombine.low %v610_v29, %v617_v2  ;;  %v15149_v43 = vshrl.u32 %v12500_v34, 16  ;;  %v12590_v24 = vrot.slane %v898_v37, %v12199_v51  ;;  %v11200_v53 = vld [vmem:[#allocation7 + $0xf4] ss:$8 sps:$4 sm:$0xff]   ;;  %v11198_v2 = vld [vmem:[#allocation7 + $0xf0] ss:$8 sps:$4 sm:$0xff]  }
  0xdd   : > { %v1589_v31 = vcombine.low %v1550_v59, %v1578_v42  ;;  %v1586_v45 = vcombine.low %v1536_v27, %v1564_v46  ;;  %v1590_v33 = vcombine.high %v1550_v59, %v1578_v42  ;;  %v1587_v55 = vcombine.high %v1536_v27, %v1564_v46  ;;  %2451 = vmatpush1.bf16.msra.mxu0 %v11183_v6  ;;  %v11195_v46 = vld [vmem:[#allocation5 + $0x2f0] ss:$8 sps:$4 sm:$0xff]   ;;  %v11210_v37 = vld [vmem:[#allocation7 + $0xe0] ss:$8 sps:$4 sm:$0xff]  }
  0xde   : > { %5431 = vmatpush1.bf16.msra.mxu1 %v11186_v32  ;;  %v638_v11 = vor.u32 %v637_v35, %v15149_v43  ;;  %15150 = vst [vmem:[#allocation48_spill] sm:$0xff] %v12590_v24  ;;  %v964_v3 = vrot.slane %v12438_v21, %v12199_v51  ;;  %2452 = vmatprep.subr.bf16.mxu0 %v11191_v26  ;;  %v11207_v35 = vld [vmem:[#allocation5 + $0x2e0] ss:$8 sps:$4 sm:$0xff]  }
  0xdf   : > { %5432 = vmatprep.subr.bf16.mxu1 %v11194_v9  ;;  %v971_v14 = vrot.slane %v10297_v58, %v12199_v51  ;;  %v12596_v42 = vrot.slane %v957_v12, %v12199_v51  ;;  %v10298_v32 = vcombine.low %v12463_v60, %v624_v20  ;;  %2338 = vmatprep.mubr.bf16.mxu0 %v1589_v31  ;;  %v11209_v20 = vld [vmem:[#allocation5 + $0x2e4] ss:$8 sps:$4 sm:$0xff]   ;;  %v11227_v34 = vld [vmem:[#allocation5 + $0x2c0] ss:$8 sps:$4 sm:$0xff]  }
  0xe0   : > { %2409 = vmatprep.mubr.bf16.mxu1 %v1590_v33  ;;  %v922_v8 = vcombine.high %v12590_v24, %v12590_v24  ;;  %v12603_v29 = vrot.slane %v12590_v24, %v12199_v51  ;;  %v1016_v21 = vcombine.low %v631_v5, %v638_v11  ;;  %2339 = vmatmul.mubr.bf16.gmra.mxu0 %v1586_v45  ;;  %v11216_v5 = vld [vmem:[#allocation7 + $0xd0] ss:$8 sps:$4 sm:$0xff]   ;;  %v11238_v24 = vld [vmem:[#allocation7 + $0xb4] ss:$8 sps:$4 sm:$0xff]  }
  0xe1   : > { %15151 = vst [vmem:[#allocation49_spill] sm:$0xff] %v12596_v42  ;;  %2410 = vmatmul.mubr.bf16.gmra.mxu1 %v1587_v55  ;;  %v979_v58 = vcombine.low %v964_v3, %v971_v14  ;;  %v980_v6 = vcombine.high %v964_v3, %v971_v14  ;;  %v981_v26 = vcombine.high %v12596_v42, %v12596_v42  ;;  %v11212_v55 = vld [vmem:[#allocation7 + $0xe4] ss:$8 sps:$4 sm:$0xff]   ;;  %v426_v14 = vld [vmem:[%s12182_s20 + $0x54] sm:$0xff] }
  0xe2   : > { %2453 = vmatpush1.bf16.msra.mxu0 %v11189_v7  ;;  %5433 = vmatpush1.bf16.msra.mxu1 %v11192_v61  ;;  %v12608_v60 = vrot.slane %v922_v8, %v12199_v51  ;;  %v952_v33 = vcombine.high %v12505_v22, %v12603_v29  ;;  %v1002_v59 = vrot.slane %v12596_v42, %v12199_v51 }
  0xe3   : > { %2454 = vmatprep.subr.bf16.mxu0 %v11197_v15  ;;  %5434 = vmatprep.subr.bf16.mxu1 %v11200_v53  ;;  %v12615_v27 = vrot.slane %v979_v58, %v12199_v51  ;;  %v12618_v9 = vrot.slane %v980_v6, %v12199_v51  ;;  %v1009_v61 = vrot.slane %v981_v26, %v12199_v51  ;;  %v11215_v15 = vld [vmem:[#allocation5 + $0x2d4] ss:$8 sps:$4 sm:$0xff]  }
  0xe4   : > { %v954_v12 = vcombine.high %v12512_v13, %v12608_v60  ;;  %v1023_v7 = vrot.slane %v12460_v10, %v12199_v51  ;;  %v1030_v31 = vrot.slane %v10298_v32, %v12199_v51  ;;  %v12628_v45 = vrot.slane %v1016_v21, %v12199_v51  ;;  %v11218_v13 = vld [vmem:[#allocation7 + $0xd4] ss:$8 sps:$4 sm:$0xff]  }
  0xe5   : > { %15152 = vst [vmem:[#allocation50_spill] sm:$0xff] %v12615_v27  ;;  %15153 = vst [vmem:[#allocation51_spill] sm:$0xff] %v12618_v9  ;;  %v1010_v43 = vcombine.low %v12615_v27, %v1002_v59  ;;  %v1011_v11 = vcombine.high %v12615_v27, %v1002_v59  ;;  %v1012_v3 = vcombine.low %v12618_v9, %v1009_v61  ;;  %v11235_v27 = vld [vmem:[#allocation5 + $0x2b4] ss:$8 sps:$4 sm:$0xff]  }
  0xe6   : > { %15154 = vst [vmem:[#allocation52_spill] sm:$0xff] %v12628_v45  ;;  %v1013_v53 = vcombine.high %v12618_v9, %v1009_v61  ;;  %2455 = vmatpush2.bf16.msra.mxu0 %v11195_v46  ;;  %5435 = vmatpush2.bf16.msra.mxu1 %v11198_v2  ;;  %v1038_v10 = vcombine.low %v1023_v7, %v1030_v31  ;;  %v427_v61 = vld [vmem:[%s12182_s20 + $0x5c] sm:$0xf] }
  0xe7   : > { %v1039_v8 = vcombine.high %v1023_v7, %v1030_v31  ;;  %v12637_v32 = vrot.slane %v12628_v45, %v12199_v51  ;;  %2456 = vmatprep.subr.bf16.mxu0 %v11209_v20  ;;  %5436 = vmatprep.subr.bf16.mxu1 %v11212_v55  ;;  %v1168_v58 = vunpack.i.h.s16 %v1010_v43  ;;  %v1170_v6 = vunpack.i.h.s16 %v1012_v3 }
  0xe8   : > { %v1172_v26 = vunpack.i.h.s16 %v1011_v11  ;;  %v12640_v59 = vpack.i.b16 %v1010_v43, %v954_v12  ;;  %v12644_v46 = vrot.slane %v1038_v10, %v12199_v51  ;;  %v12649_v7 = vcombine.low %v426_v14, %v426_v14  ;;  %v11229_v10 = vld [vmem:[#allocation5 + $0x2c4] ss:$8 sps:$4 sm:$0xff]  }
  0xe9   : > { %v12647_v2 = vrot.slane %v1039_v8, %v12199_v51  ;;  %v12651_v31 = vcombine.high %v426_v14, %v426_v14  ;;  %v12653_v20 = vpack.i.b16 %v1012_v3, %v1168_v58  ;;  %v12655_v55 = vpack.i.b16 %v1011_v11, %v1170_v6  ;;  %v11230_v3 = vld [vmem:[#allocation7 + $0xc0] ss:$8 sps:$4 sm:$0xff]  }
  0xea   : > { %15156 = vst [vmem:[#allocation54_spill] sm:$0xff] %v12649_v7  ;;  %v12657_v21 = vpack.i.b16 %v1013_v53, %v1172_v26  ;;  %v1592_v12 = vcombine.low %v952_v33, %v12640_v59  ;;  %2457 = vmatpush2.bf16.msra.mxu0 %v11207_v35  ;;  %5437 = vmatpush2.bf16.msra.mxu1 %v11210_v37  ;;  %v14971_v9 = vshll.u32 %v12649_v7, 16  ;;  %v11232_v37 = vld [vmem:[#allocation7 + $0xc4] ss:$8 sps:$4 sm:$0xff]  }
  0xeb   : > { %15155 = vst [vmem:[#allocation53_spill] sm:$0xff] %v12647_v2  ;;  %15157 = vst [vmem:[#allocation55_spill] sm:$0xff] %v12651_v31  ;;  %v1070_v43 = vcombine.high %v12644_v46, %v12637_v32  ;;  %v12662_v8 = vcombine.low %v427_v61, %v427_v61  ;;  %2458 = vmatprep.subr.bf16.mxu0 %v11215_v15  ;;  %5438 = vmatprep.subr.bf16.mxu1 %v11218_v13  ;;  %v15161_v15 = vshll.u32 %v12651_v31, 16 }
  0xec   : > { %15158 = vst [vmem:[#allocation56_spill] sm:$0xff] %v12657_v21  ;;  %v1594_v11 = vcombine.low %v12653_v20, %v12655_v55  ;;  %v10325_v33 = vcombine.low %v12657_v21, %v12644_v46  ;;  %v1606_v35 = vrot.slane %v1592_v12, %v12199_v51  ;;  %v644_v58 = vrot.slane %v14971_v9, 1 }
  0xed   : > { %15159 = vst [vmem:[#allocation57_spill] sm:$0xff] %v12662_v8  ;;  %v10326_v53 = vcombine.low %v12647_v2, %v1070_v43  ;;  %v1040_v12 = vcombine.high %v12628_v45, %v12628_v45  ;;  %v15160_v9 = vshrl.u32 %v12649_v7, 16  ;;  %v651_v22 = vrot.slane %v15161_v15, 1 }
  0xee   : > { %v1620_v13 = vrot.slane %v1594_v11, %v12199_v51  ;;  %v1634_v26 = vrot.slane %v10325_v33, %v12199_v51  ;;  %2459 = vmatpush2.bf16.msra.mxu0 %v11213_v54  ;;  %5439 = vmatpush2.bf16.msra.mxu1 %v11216_v5  ;;  %v1082_v11 = vrot.slane %v426_v14, %v12199_v51  ;;  %v15162_v54 = vshll.u32 %v12662_v8, 16 }
  0xef   : > { %v1648_v43 = vrot.slane %v10326_v53, %v12199_v51  ;;  %v645_v6 = vor.u32 %v644_v58, %v15160_v9  ;;  %2460 = vmatprep.subr.bf16.mxu0 %v11229_v10  ;;  %5440 = vmatprep.subr.bf16.mxu1 %v11232_v37  ;;  %v12691_v53 = vrot.slane %v1040_v12, %v12199_v51  ;;  %v15163_v9 = vshrl.u32 %v12651_v31, 16 }
  0xf0   : > { %v1657_v33 = vcombine.high %v1606_v35, %v1620_v13  ;;  %v1656_v42 = vcombine.low %v1606_v35, %v1620_v13  ;;  %v658_v5 = vrot.slane %v15162_v54, 1  ;;  %v15164_v10 = vshrl.u32 %v12662_v8, 16  ;;  %v11265_v8 = vld [vmem:[#allocation7 + $0x274] ss:$8 sps:$4 sm:$0xff]  }
  0xf1   : > { %v1661_v45 = vcombine.high %v1634_v26, %v1648_v43  ;;  %v1660_v21 = vcombine.low %v1634_v26, %v1648_v43  ;;  %v652_v58 = vor.u32 %v651_v22, %v15163_v9  ;;  %v10299_v15 = vcombine.low %v427_v61, %v645_v6  ;;  %v11233_v61 = vld [vmem:[#allocation5 + $0x2b0] ss:$8 sps:$4 sm:$0xff]  }
  0xf2   : > { %v1684_v14 = vrot.slane %v1657_v33, %v12199_v51  ;;  %v1670_v35 = vrot.slane %v1656_v42, %v12199_v51  ;;  %v659_v37 = vor.u32 %v658_v5, %v15164_v10  ;;  %v1072_v13 = vcombine.high %v12647_v2, %v12691_v53  ;;  %2461 = vmatpush2.bf16.msra.mxu0 %v11227_v34  ;;  %v11236_v9 = vld [vmem:[#allocation7 + $0xb0] ss:$8 sps:$4 sm:$0xff]   ;;  %v11247_v10 = vld [vmem:[#allocation7 + $0xa4] ss:$8 sps:$4 sm:$0xff]  }
  0xf3   : > { %v1712_v54 = vrot.slane %v1661_v45, %v12199_v51  ;;  %v1698_v12 = vrot.slane %v1660_v21, %v12199_v51  ;;  %5441 = vmatpush2.bf16.msra.mxu1 %v11230_v3  ;;  %v1089_v26 = vrot.slane %v10299_v15, %v12199_v51  ;;  %2462 = vmatprep.subr.bf16.mxu0 %v11235_v27  ;;  %v11244_v15 = vld [vmem:[#allocation5 + $0x2a4] ss:$8 sps:$4 sm:$0xff]  }
  0xf4   : > { %5442 = vmatprep.subr.bf16.mxu1 %v11238_v24  ;;  %v1075_v42 = vcombine.low %v652_v58, %v659_v37  ;;  %v833_v6 = vcombine.low %v12335_v57, %v12421_v56  ;;  %v15165_v43 = vcombine.high %v12351_v40, %v12360_v48 }
  0xf5   : > { %v1723_v21 = vcombine.low %v1684_v14, %v1712_v54  ;;  %v1720_v3 = vcombine.low %v1670_v35, %v1698_v12  ;;  %v1724_v33 = vcombine.high %v1684_v14, %v1712_v54  ;;  %v1721_v5 = vcombine.high %v1670_v35, %v1698_v12 }
  0xf6   : > { %v12711_v45 = vrot.slane %v15165_v43, %v12199_v51  ;;  %v12715_v24 = vrot.slane %v1075_v42, %v12199_v51  ;;  %v1097_v27 = vcombine.low %v1082_v11, %v1089_v26  ;;  %v1098_v58 = vcombine.high %v1082_v11, %v1089_v26  ;;  %2463 = vmatpush2.bf16.msra.mxu0 %v11233_v61 }
  0xf7   : > { %v1331_v37 = vcombine.high %v12345_v41, %v833_v6  ;;  %2348 = vmatprep.mubr.bf16.mxu0 %v1723_v21  ;;  %2419 = vmatprep.mubr.bf16.mxu1 %v1724_v33  ;;  %v15166_v43 = vcombine.low %v12351_v40, %v12360_v48  ;;  %v12726_v14 = vrot.slane %v12362_v62, %v12199_v51  ;;  %v15167_v35 = vrot.slane %v12223_v1, 1  ;;  %v11242_v62 = vld [vmem:[#allocation5 + $0x2a0] ss:$8 sps:$4 sm:$0xff]   ;;  %v11250_v21 = vld [vmem:[#allocation5 + $0x294] ss:$8 sps:$4 sm:$0xff]  }
  0xf8   : > { %v15168_v54 = vrot.slane %v12221_v0, 1  ;;  %2349 = vmatmul.mubr.bf16.gmra.mxu0 %v1720_v3  ;;  %2420 = vmatmul.mubr.bf16.gmra.mxu1 %v1721_v5  ;;  %v1099_v41 = vcombine.high %v12715_v24, %v12715_v24  ;;  %v12736_v40 = vrot.slane %v1097_v27, %v12199_v51  ;;  %v12739_v48 = vrot.slane %v1098_v58, %v12199_v51  ;;  %v11245_v6 = vld [vmem:[#allocation7 + $0xa0] ss:$8 sps:$4 sm:$0xff]   ;;  %v11253_v58 = vld [vmem:[#allocation7 + $0x94] ss:$8 sps:$4 sm:$0xff]  }
  0xf9   : > { %v12722_v22 = vrot.slane %v15166_v43, %v12199_v51  ;;  %5443 = vmatpush2.bf16.msra.mxu1 %v11236_v9  ;;  %v1120_v42 = vrot.slane %v12715_v24, %v12199_v51  ;;  %v1387_v3 = vrot.slane %v1331_v37, %v12199_v51  ;;  %v3568_v33 = vcombine.low %v12282_v49, %v12726_v14 }
  0xfa   : > { %v3610_v11 = vcombine.low %v15168_v54, %v15167_v35  ;;  %15169 = vst [vmem:[#allocation58_spill] sm:$0xff] %v12739_v48  ;;  %v1127_v27 = vrot.slane %v1099_v41, %v12199_v51  ;;  %2464 = vmatprep.subr.bf16.mxu0 %v11244_v15  ;;  %5444 = vmatprep.subr.bf16.mxu1 %v11247_v10  ;;  %v11248_v41 = vld [vmem:[#allocation5 + $0x290] ss:$8 sps:$4 sm:$0xff]  }
  0xfb   : > { %v10436_v9 = vcombine.low %v12335_v57, %v12357_v30  ;;  %v1128_v37 = vcombine.low %v12736_v40, %v1120_v42  ;;  %v1129_v35 = vcombine.high %v12736_v40, %v1120_v42  ;;  %v1394_v54 = vcombine.low %v12377_v18, %v1387_v3  ;;  %2465 = vmatpush2.bf16.msra.mxu0 %v11242_v62 }
  0xfc   : > { %v12750_v61 = vrot.slane %v3610_v11, %v12199_v51  ;;  %v1395_v5 = vcombine.high %v12377_v18, %v1387_v3  ;;  %v1130_v15 = vcombine.low %v12739_v48, %v1127_v27  ;;  %v1131_v10 = vcombine.high %v12739_v48, %v1127_v27  ;;  %v11251_v18 = vld [vmem:[#allocation7 + $0x90] ss:$8 sps:$4 sm:$0xff]   ;;  %v11256_v3 = vld [vmem:[#allocation5 + $0x284] ss:$8 sps:$4 sm:$0xff]   ;;  %2466 = vmatprep.subr.bf16.mxu0 %v11250_v21 }
  0xfd   : > { %v12762_v11 = vrot.slane %v3568_v33, %v12199_v51  ;;  %v1182_v43 = vunpack.i.h.s16 %v1128_v37  ;;  %v1186_v26 = vunpack.i.h.s16 %v1129_v35  ;;  %v12769_v42 = vpack.i.b16 %v1128_v37, %v1072_v13  ;;  %5445 = vmatpush2.bf16.msra.mxu1 %v11245_v6  ;;  %v11259_v33 = vld [vmem:[#allocation7 + $0x84] ss:$8 sps:$4 sm:$0xff]   ;;  %v15173_v37 = vld [vmem:[#allocation37_spill] sm:$0xff] }
  0xfe   : > { %v3618_v12 = vcombine.low %v12303_v19, %v12750_v61  ;;  %v12772_v27 = vrot.slane %v1395_v5, %v12199_v51  ;;  %v1184_v34 = vunpack.i.h.s16 %v1130_v15  ;;  %5446 = vmatprep.subr.bf16.mxu1 %v11253_v58  ;;  %v12775_v1 = vrot.slane %v1394_v54, %v12199_v51  ;;  %v11257_v54 = vld [vmem:[#allocation7 + $0x80] ss:$8 sps:$4 sm:$0xff]  }
  0xff   : > { %15170 = vst [vmem:[#allocation59_spill] sm:$0xff] %v12762_v11  ;;  %v12779_v0 = vcombine.high %v12299_v17, %v12762_v11  ;;  %v12784_v62 = vpack.i.b16 %v1130_v15, %v1182_v43  ;;  %v12786_v6 = vpack.i.b16 %v1131_v10, %v1186_v26  ;;  %v4172_v21 = vrot.slane %v10436_v9, %v12199_v51  ;;  %v11254_v43 = vld [vmem:[#allocation5 + $0x280] ss:$8 sps:$4 sm:$0xff]  }
 0x100   : > { %v12782_v13 = vrot.slane %v3618_v12, %v12199_v51  ;;  %v12791_v58 = vpack.i.b16 %v1129_v35, %v1184_v34  ;;  %2467 = vmatpush2.bf16.msra.mxu0 %v11248_v41  ;;  %v835_v34 = vcombine.low %v12357_v30, %v12430_v44  ;;  %v1461_v9 = vcombine.high %v12515_v52, %v12525_v63  ;;  %v15174_v52 = vld [vmem:[#allocation45_spill] sm:$0xff]  ;;  %v15175_v35 = vld [vmem:[#allocation46_spill] sm:$0xff] }
 0x101   : > { %15171 = vst [vmem:[#allocation60_spill] sm:$0xff] %v12779_v0  ;;  %v10432_v12 = vcombine.low %v12779_v0, %v12316_v36  ;;  %v1726_v26 = vcombine.low %v12769_v42, %v12784_v62  ;;  %5447 = vmatpush2.bf16.msra.mxu1 %v11251_v18  ;;  %2468 = vmatprep.subr.bf16.mxu0 %v11256_v3  ;;  %v11262_v18 = vld [vmem:[#allocation7 + $0x174] ss:$8 sps:$4 sm:$0xff]   ;;  %v15176_v0 = vld [vmem:[#allocation26_spill] sm:$0xff] }
 0x102   : > { %v12797_v17 = vcombine.high %v12316_v36, %v12782_v13  ;;  %v1728_v15 = vcombine.low %v12791_v58, %v12786_v6  ;;  %5448 = vmatprep.subr.bf16.mxu1 %v11259_v33  ;;  %v10321_v63 = vcombine.high %v835_v34, %v12421_v56  ;;  %v1463_v30 = vcombine.high %v15175_v35, %v15174_v52  ;;  %v15177_v35 = vld [vmem:[#allocation41_spill] sm:$0xff] }
 0x103   : > { %v4144_v41 = vrot.slane %v10432_v12, %v12199_v51  ;;  %v1736_v44 = vrot.slane %v1726_v26, %v12199_v51  ;;  %v10323_v3 = vcombine.low %v12603_v29, %v12608_v60  ;;  %v1493_v56 = vrot.slane %v1461_v9, %v12199_v51 }
 0x104   : > { %15172 = vst [vmem:[#allocation61_spill] sm:$0xff] %v12797_v17  ;;  %v10434_v10 = vcombine.low %v12319_v38, %v12797_v17  ;;  %v1750_v33 = vrot.slane %v1728_v15, %v12199_v51  ;;  %2469 = vmatpush2.bf16.msra.mxu0 %v11254_v43  ;;  %v1479_v26 = vrot.slane %v10321_v63, %v12199_v51  ;;  %v3554_v52 = vrot.slane %v15177_v35, 1 }
 0x105   : > { %v4180_v12 = vcombine.low %v15176_v0, %v4144_v41  ;;  %v4181_v11 = vcombine.high %v15176_v0, %v4144_v41  ;;  %5449 = vmatpush2.bf16.msra.mxu1 %v11257_v54  ;;  %v1507_v34 = vrot.slane %v1463_v30, %v12199_v51  ;;  %5481 = vmatprep.subr.bf16.mxu0 %v11262_v18 }
 0x106   : > { %v4158_v17 = vrot.slane %v10434_v10, %v12199_v51  ;;  %v1759_v5 = vcombine.high %v1736_v44, %v1750_v33  ;;  %v1758_v60 = vcombine.low %v1736_v44, %v1750_v33  ;;  %5544 = vmatprep.subr.bf16.mxu1 %v11265_v8  ;;  %v1521_v54 = vrot.slane %v10323_v3, %v12199_v51 }
 0x107   : > { %v12829_v10 = vrot.slane %v4181_v11, %v12199_v51  ;;  %v12832_v43 = vrot.slane %v4180_v12, %v12199_v51  ;;  %v1525_v41 = vcombine.high %v1479_v26, %v1493_v56  ;;  %v1524_v11 = vcombine.low %v1479_v26, %v1493_v56 }
 0x108   : > { %v4184_v48 = vcombine.low %v4158_v17, %v4172_v21  ;;  %v4185_v15 = vcombine.high %v4158_v17, %v4172_v21  ;;  %v1782_v9 = vrot.slane %v1759_v5, %v12199_v51  ;;  %v1768_v30 = vrot.slane %v1758_v60, %v12199_v51  ;;  %v15190_v5 = vld [vmem:[#allocation35_spill] sm:$0xff] }
 0x109   : > { %v1529_v17 = vcombine.high %v1507_v34, %v1521_v54  ;;  %v1528_v18 = vcombine.low %v1507_v34, %v1521_v54  ;;  %v3555_v8 = vrot.slane %v12496_v25, 1  ;;  %v1069_v26 = vcombine.low %v12644_v46, %v12637_v32 }
 0x10a   : > { %v12838_v63 = vrot.slane %v4185_v15, %v12199_v51  ;;  %v12841_v21 = vrot.slane %v4184_v48, %v12199_v51  ;;  %2358 = vmatprep.mubr.bf16.mxu0 %v1782_v9  ;;  %v1791_v44 = vcombine.high %v1782_v9, %v1782_v9  ;;  %v1790_v33 = vcombine.high %v1768_v30, %v1768_v30 }
 0x10b   : > { %2359 = vmatmul.mubr.bf16.gmra.mxu0 %v1768_v30  ;;  %v1557_v48 = vrot.slane %v1525_v41, %v12199_v51  ;;  %v1585_v60 = vrot.slane %v1529_v17, %v12199_v51  ;;  %v15178_v56 = vcombine.low %v12711_v45, %v12772_v27  ;;  %v1071_v34 = vcombine.low %v12647_v2, %v12691_v53  ;;  %v15179_v45 = vld [vmem:[#allocation56_spill] sm:$0xff] }
 0x10c   : > { %v4248_v3 = vcombine.low %v12829_v10, %v12838_v63  ;;  %v4244_v12 = vcombine.low %v12832_v43, %v12841_v21  ;;  %2429 = vmatprep.mubr.bf16.mxu1 %v1791_v44  ;;  %v10324_v15 = vcombine.high %v12603_v29, %v12640_v59  ;;  %v1595_v54 = vcombine.high %v12653_v20, %v12655_v55 }
 0x10d   : > { %2470 = vmatprep.mubr.bf16.mxu0 %v15178_v56  ;;  %v3558_v41 = vrot.slane %v12651_v31, 1  ;;  %2430 = vmatmul.mubr.bf16.gmra.mxu1 %v1790_v33  ;;  %v12864_v9 = vrot.slane %v1524_v11, %v12199_v51  ;;  %v12867_v30 = vrot.slane %v1528_v18, %v12199_v51  ;;  %v1597_v27 = vcombine.high %v15179_v45, %v1069_v26  ;;  %v11280_v31 = vld [vmem:[#allocation7 + $0x144] ss:$8 sps:$4 sm:$0xff]  }
 0x10e   : > { %v1727_v53 = vcombine.high %v12769_v42, %v12784_v62  ;;  %5450 = vmatprep.mubr.bf16.mxu1 %v4248_v3  ;;  %v10327_v29 = vcombine.high %v1071_v34, %v12637_v32  ;;  %v1613_v59 = vrot.slane %v10324_v15, %v12199_v51  ;;  %v1627_v20 = vrot.slane %v1595_v54, %v12199_v51  ;;  %v11260_v3 = vld [vmem:[#allocation7 + $0x170] ss:$8 sps:$4 sm:$0xff]  }
 0x10f   : > { %v1729_v55 = vcombine.high %v12791_v58, %v12786_v6  ;;  %v1641_v17 = vrot.slane %v1597_v27, %v12199_v51  ;;  %v15180_v18 = vrot.slane %v12284_v50, 1  ;;  %v15181_v44 = vrot.slane %v12229_v4, 1  ;;  %v11268_v58 = vld [vmem:[#allocation7 + $0x164] ss:$8 sps:$4 sm:$0xff]   ;;  %v11289_v4 = vld [vmem:[#allocation7 + $0x234] ss:$8 sps:$4 sm:$0xff]  }
 0x110   : > { %v1743_v11 = vrot.slane %v1727_v53, %v12199_v51  ;;  %v15182_v42 = vrot.slane %v12387_v28, 1  ;;  %v15183_v32 = vrot.slane %v12385_v39, 1  ;;  %v1591_v26 = vcombine.low %v1557_v48, %v1585_v60 }
 0x111   : > { %v3660_v33 = vcombine.low %v15181_v44, %v15180_v18  ;;  %v1655_v56 = vrot.slane %v10327_v29, %v12199_v51  ;;  %v1659_v34 = vcombine.high %v1613_v59, %v1627_v20  ;;  %v1757_v6 = vrot.slane %v1729_v55, %v12199_v51  ;;  %v11263_v44 = vld [vmem:[#allocation7 + $0x270] ss:$8 sps:$4 sm:$0xff]  }
 0x112   : > { %v3710_v62 = vcombine.low %v15183_v32, %v15182_v42  ;;  %v1658_v15 = vcombine.low %v1613_v59, %v1627_v20  ;;  %v15184_v27 = vrot.slane %v12445_v16, 1  ;;  %v15185_v53 = vrot.slane %v12393_v23, 1  ;;  %v11271_v42 = vld [vmem:[#allocation7 + $0x264] ss:$8 sps:$4 sm:$0xff]  }
 0x113   : > { %v12890_v54 = vrot.slane %v3660_v33, %v12199_v51  ;;  %v1588_v48 = vcombine.low %v12864_v9, %v12867_v30  ;;  %v1663_v60 = vcombine.high %v1641_v17, %v1655_v56  ;;  %v1662_v29 = vcombine.low %v1641_v17, %v1655_v56  ;;  %v11266_v30 = vld [vmem:[#allocation7 + $0x160] ss:$8 sps:$4 sm:$0xff]  }
 0x114   : > { %v12893_v45 = vrot.slane %v3710_v62, %v12199_v51  ;;  %v3760_v18 = vcombine.low %v15185_v53, %v15184_v27  ;;  %v15186_v55 = vrot.slane %v15173_v37, 1  ;;  %v15187_v59 = vrot.slane %v12467_v47, 1  ;;  %v15189_v27 = vld [vmem:[#allocation28_spill] sm:$0xff]  ;;  %v15198_v37 = vld [vmem:[#allocation50_spill] sm:$0xff] }
 0x115   : > { %v15188_v33 = vcombine.low %v12722_v22, %v12775_v1  ;;  %v1761_v32 = vcombine.high %v1743_v11, %v1757_v6  ;;  %v1760_v62 = vcombine.low %v1743_v11, %v1757_v6  ;;  %v3668_v53 = vcombine.low %v15189_v27, %v12890_v54  ;;  %5451 = vmatmul.mubr.bf16.vlgmr.msra.gmra.mxu1 %v4244_v12  ;;  %v11274_v1 = vld [vmem:[#allocation7 + $0x154] ss:$8 sps:$4 sm:$0xff]   ;;  %v11292_v47 = vld [vmem:[#allocation7 + $0x124] ss:$8 sps:$4 sm:$0xff]  }
 0x116   : > { %v3810_v20 = vcombine.low %v15187_v59, %v15186_v55  ;;  %v3718_v9 = vcombine.low %v15190_v5, %v12893_v45  ;;  %v1691_v17 = vrot.slane %v1659_v34, %v12199_v51  ;;  %v1719_v56 = vrot.slane %v1663_v60, %v12199_v51  ;;  %5545 = vmatpush1.bf16.msra.mxu1 %v11263_v44 }
 0x117   : > { %2471 = vmatmul.mubr.bf16.vlgmr.msra.gmra.mxu0 %v15188_v33  ;;  %v12915_v55 = vrot.slane %v3760_v18, %v12199_v51  ;;  %v12918_v22 = vrot.slane %v1658_v15, %v12199_v51  ;;  %v12921_v11 = vrot.slane %v1662_v29, %v12199_v51  ;;  %v12927_v34 = vrot.slane %v1761_v32, %v12199_v51  ;;  %v11277_v18 = vld [vmem:[#allocation7 + $0x254] ss:$8 sps:$4 sm:$0xff]   ;;  %v11272_v32 = vld [vmem:[#allocation7 + $0x150] ss:$8 sps:$4 sm:$0xff]  }
 0x118   : > { %5482 = vmatpush1.bf16.msra.mxu0 %v11260_v3  ;;  %2480 = vmatprep.mubr.bf16.mxu0 %v1591_v26  ;;  %v12924_v3 = vrot.slane %v3668_v53, %v12199_v51  ;;  %v11269_v26 = vld [vmem:[#allocation7 + $0x260] ss:$8 sps:$4 sm:$0xff]   ;;  %v12930_v6 = vrot.slane %v1760_v62, %v12199_v51  ;;  %v12933_v12 = vrot.slane %v3718_v9, %v12199_v51  ;;  %v15192_v59 = vrot.slane %v12649_v7, 1 }
 0x119   : > { %5483 = vmatprep.subr.bf16.mxu0 %v11268_v58  ;;  %v15191_v58 = vld [vmem:[#allocation48_spill] sm:$0xff]  ;;  %5546 = vmatprep.subr.bf16.mxu1 %v11271_v42  ;;  %v12942_v44 = vrot.slane %v3810_v20, %v12199_v51  ;;  %v3860_v29 = vcombine.low %v3554_v52, %v3555_v8  ;;  %v1725_v62 = vcombine.low %v1691_v17, %v1719_v56  ;;  %v15193_v42 = vld [vmem:[#allocation38_spill] sm:$0xff]  ;;  %v15194_v8 = vld [vmem:[#allocation49_spill] sm:$0xff] }
 0x11a   : > { %v3768_v15 = vcombine.low %v15191_v58, %v12915_v55  ;;  %v12939_v60 = vcombine.high %v12335_v57, %v12924_v3  ;;  %v3910_v33 = vcombine.low %v15192_v59, %v3558_v41  ;;  %v12952_v53 = vcombine.high %v15193_v42, %v12933_v12  ;;  %5547 = vmatpush1.bf16.msra.mxu1 %v11269_v26  ;;  %v11275_v56 = vld [vmem:[#allocation7 + $0x250] ss:$8 sps:$4 sm:$0xff]   ;;  %v15196_v7 = vld [vmem:[#allocation39_spill] sm:$0xff] }
 0x11b   : > { %v10448_v20 = vcombine.low %v12644_v46, %v12647_v2  ;;  %v3818_v41 = vcombine.low %v15194_v8, %v12942_v44  ;;  %5548 = vmatprep.subr.bf16.mxu1 %v11277_v18  ;;  %v11286_v18 = vld [vmem:[#allocation7 + $0x134] ss:$8 sps:$4 sm:$0xff]   ;;  %v3669_v2 = vcombine.high %v15189_v27, %v12890_v54 }
 0x11c   : > { %5484 = vmatpush1.bf16.msra.mxu0 %v11266_v30  ;;  %v12955_v9 = vrot.slane %v3768_v15, %v12199_v51  ;;  %v10438_v52 = vcombine.low %v12939_v60, %v15193_v42  ;;  %v12964_v30 = vrot.slane %v3860_v29, %v12199_v51  ;;  %v12967_v17 = vrot.slane %v3910_v33, %v12199_v51  ;;  %v11283_v29 = vld [vmem:[#allocation7 + $0x244] ss:$8 sps:$4 sm:$0xff]   ;;  %v11298_v27 = vld [vmem:[#allocation7 + $0x114] ss:$8 sps:$4 sm:$0xff]  }
 0x11d   : > { %5485 = vmatprep.subr.bf16.mxu0 %v11274_v1  ;;  %v1722_v15 = vcombine.low %v12918_v22, %v12921_v11  ;;  %v15195_v1 = vld [vmem:[#allocation44_spill] sm:$0xff]  ;;  %v10440_v25 = vcombine.low %v15196_v7, %v12952_v53  ;;  %v12978_v35 = vrot.slane %v10448_v20, %v12199_v51  ;;  %v12982_v26 = vrot.slane %v3818_v41, %v12199_v51 }
 0x11e   : > { %v12973_v59 = vcombine.high %v15195_v1, %v12955_v9  ;;  %v4315_v33 = vrot.slane %v10438_v52, %v12199_v51  ;;  %v15197_v22 = vld [vmem:[#allocation52_spill] sm:$0xff]  ;;  %v11278_v1 = vld [vmem:[#allocation7 + $0x140] ss:$8 sps:$4 sm:$0xff]   ;;  %5549 = vmatpush1.bf16.msra.mxu1 %v11275_v56 }
 0x11f   : > { %2481 = vmatmul.mubr.bf16.gmra.mxu0 %v1588_v48  ;;  %v3868_v11 = vcombine.low %v15197_v22, %v12964_v30  ;;  %v4329_v20 = vrot.slane %v10440_v25, %v12199_v51  ;;  %v3918_v48 = vcombine.low %v12715_v24, %v12967_v17  ;;  %v12993_v52 = vcombine.high %v15198_v37, %v12982_v26  ;;  %v11281_v25 = vld [vmem:[#allocation7 + $0x240] ss:$8 sps:$4 sm:$0xff]  }
 0x120   : > { %5486 = vmatpush1.bf16.msra.mxu0 %v11272_v32  ;;  %2490 = vmatprep.mubr.bf16.mxu0 %v1725_v62  ;;  %v10444_v16 = vcombine.low %v12973_v59, %v15198_v37  ;;  %v3569_v32 = vcombine.high %v12282_v49, %v12726_v14  ;;  %v3619_v62 = vcombine.high %v12303_v19, %v12750_v61  ;;  %v15201_v49 = vld [vmem:[#allocation51_spill] sm:$0xff] }
 0x121   : > { %5487 = vmatprep.subr.bf16.mxu0 %v11280_v31  ;;  %v12996_v41 = vrot.slane %v3868_v11, %v12199_v51  ;;  %v4366_v28 = vcombine.high %v4315_v33, %v4329_v20  ;;  %v4365_v31 = vcombine.low %v4315_v33, %v4329_v20  ;;  %v13004_v50 = vrot.slane %v3918_v48, %v12199_v51  ;;  %v15202_v56 = vld [vmem:[#allocation47_spill] sm:$0xff] }
 0x122   : > { %v4357_v23 = vrot.slane %v10444_v16, %v12199_v51  ;;  %5550 = vmatprep.subr.bf16.mxu1 %v11283_v29  ;;  %v10446_v14 = vcombine.low %v15201_v49, %v12993_v52  ;;  %v3583_v19 = vrot.slane %v3569_v32, %v12199_v51  ;;  %v3633_v61 = vrot.slane %v3619_v62, %v12199_v51  ;;  %v11284_v16 = vld [vmem:[#allocation7 + $0x130] ss:$8 sps:$4 sm:$0xff]  }
 0x123   : > { %15199 = vst [vmem:[#allocation45_spill] sm:$0xff] %v12996_v41  ;;  %v13008_v11 = vcombine.high %v12644_v46, %v12996_v41  ;;  %v13016_v20 = vrot.slane %v4366_v28, %v12199_v51  ;;  %v13020_v48 = vrot.slane %v4365_v31, %v12199_v51  ;;  %v13024_v39 = vcombine.high %v12736_v40, %v13004_v50 }
 0x124   : > { %5488 = vmatpush1.bf16.msra.mxu0 %v11278_v1  ;;  %v4370_v33 = vcombine.high %v15202_v56, %v4357_v23  ;;  %v4369_v29 = vcombine.low %v15202_v56, %v4357_v23  ;;  %v4500_v32 = vrot.slane %v10446_v14, %v12199_v51  ;;  %v13031_v28 = vcombine.low %v12316_v36, %v12782_v13  ;;  %v11287_v23 = vld [vmem:[#allocation7 + $0x230] ss:$8 sps:$4 sm:$0xff]   ;;  %v11295_v14 = vld [vmem:[#allocation7 + $0x224] ss:$8 sps:$4 sm:$0xff]   ;;  %v11290_v56 = vld [vmem:[#allocation7 + $0x120] ss:$8 sps:$4 sm:$0xff]  }
 0x125   : > { %15200 = vst [vmem:[#allocation46_spill] sm:$0xff] %v13008_v11  ;;  %5489 = vmatprep.subr.bf16.mxu0 %v11286_v18  ;;  %15203 = vst [vmem:[#allocation26_spill] sm:$0xff] %v13024_v39  ;;  %v10450_v1 = vcombine.low %v13008_v11, %v12736_v40  ;;  %5551 = vmatpush1.bf16.msra.mxu1 %v11281_v25  ;;  %v13040_v31 = vcombine.low %v12319_v38, %v3633_v61  ;;  %v15204_v36 = vld [vmem:[#allocation58_spill] sm:$0xff] }
 0x126   : > { %v13034_v62 = vrot.slane %v4370_v33, %v12199_v51  ;;  %v13037_v18 = vrot.slane %v4369_v29, %v12199_v51  ;;  %5552 = vmatprep.subr.bf16.mxu1 %v11289_v4  ;;  %v10452_v11 = vcombine.low %v15204_v36, %v13024_v39  ;;  %v4551_v33 = vcombine.high %v4500_v32, %v12978_v35  ;;  %v15205_v29 = vld [vmem:[#allocation59_spill] sm:$0xff] }
 0x127   : > { %2491 = vmatmul.mubr.bf16.gmra.mxu0 %v1722_v15  ;;  %v4528_v25 = vrot.slane %v10450_v1, %v12199_v51  ;;  %v4550_v4 = vcombine.low %v4500_v32, %v12978_v35  ;;  %v11293_v1 = vld [vmem:[#allocation7 + $0x220] ss:$8 sps:$4 sm:$0xff]   ;;  %v10435_v35 = vcombine.high %v13040_v31, %v12782_v13 }
 0x128   : > { %5490 = vmatpush1.bf16.msra.mxu0 %v11284_v16  ;;  %2500 = vmatprep.mubr.bf16.mxu0 %v12927_v34  ;;  %v4433_v38 = vcombine.low %v13016_v20, %v13034_v62  ;;  %v4429_v54 = vcombine.low %v13020_v48, %v13037_v18  ;;  %v4542_v15 = vrot.slane %v10452_v11, %v12199_v51  ;;  %v11301_v11 = vld [vmem:[#allocation7 + $0x214] ss:$8 sps:$4 sm:$0xff]  }
 0x129   : > { %5491 = vmatprep.subr.bf16.mxu0 %v11292_v47  ;;  %v13056_v61 = vrot.slane %v4551_v33, %v12199_v51  ;;  %v13059_v16 = vrot.slane %v3669_v2, %v12199_v51  ;;  %v10431_v34 = vcombine.low %v15205_v29, %v3583_v19  ;;  %5553 = vmatpush1.bf16.msra.mxu1 %v11287_v23  ;;  %v11296_v23 = vld [vmem:[#allocation7 + $0x110] ss:$8 sps:$4 sm:$0xff]  }
 0x12a   : > { %5460 = vmatprep.mubr.bf16.mxu1 %v4433_v38  ;;  %v13063_v39 = vrot.slane %v4550_v4, %v12199_v51  ;;  %v10433_v47 = vcombine.high %v15205_v29, %v13031_v28  ;;  %5554 = vmatprep.subr.bf16.mxu1 %v11295_v14  ;;  %v4555_v32 = vcombine.high %v4528_v25, %v4542_v15  ;;  %v11304_v14 = vld [vmem:[#allocation7 + $0x104] ss:$8 sps:$4 sm:$0xff]  }
 0x12b   : > { %5461 = vmatmul.mubr.bf16.gmra.mxu1 %v4429_v54  ;;  %v4554_v2 = vcombine.low %v4528_v25, %v4542_v15  ;;  %v10437_v19 = vcombine.low %v12924_v3, %v13059_v16  ;;  %v4249_v33 = vcombine.high %v12829_v10, %v12838_v63  ;;  %v13074_v38 = vrot.slane %v10431_v34, %v12199_v51  ;;  %v11299_v15 = vld [vmem:[#allocation7 + $0x210] ss:$8 sps:$4 sm:$0xff]   ;;  %v11307_v34 = vld [vmem:[#allocation7 + $0x204] ss:$8 sps:$4 sm:$0xff]  }
 0x12c   : > { %5492 = vmatpush1.bf16.msra.mxu0 %v11290_v56  ;;  %v4151_v4 = vrot.slane %v10433_v47, %v12199_v51  ;;  %v4165_v13 = vrot.slane %v10435_v35, %v12199_v51  ;;  %v13079_v54 = vrot.slane %v4555_v32, %v12199_v51  ;;  %v3719_v29 = vcombine.high %v15190_v5, %v12893_v45  ;;  %v11302_v32 = vld [vmem:[#allocation7 + $0x100] ss:$8 sps:$4 sm:$0xff]  }
 0x12d   : > { %15206 = vst [vmem:[#allocation56_spill] sm:$0xff] %v13074_v38  ;;  %5493 = vmatprep.subr.bf16.mxu0 %v11298_v27  ;;  %v13082_v25 = vrot.slane %v4554_v2, %v12199_v51  ;;  %v4179_v56 = vrot.slane %v10437_v19, %v12199_v51  ;;  %5555 = vmatpush1.bf16.msra.mxu1 %v11293_v1 }
 0x12e   : > { %v4182_v10 = vcombine.low %v13074_v38, %v4151_v4  ;;  %v4183_v63 = vcombine.high %v13074_v38, %v4151_v4  ;;  %v13091_v27 = vcombine.low %v15193_v42, %v12933_v12  ;;  %5556 = vmatprep.subr.bf16.mxu1 %v11301_v11  ;;  %v4618_v47 = vcombine.low %v13056_v61, %v13079_v54  ;;  %v11373_v38 = vld [vmem:[#allocation7 + $0x454] ss:$8 sps:$4 sm:$0xff]  }
 0x12f   : > { %2501 = vmatmul.mubr.bf16.gmra.mxu0 %v12930_v6  ;;  %v4614_v1 = vcombine.low %v13063_v39, %v13082_v25  ;;  %v4186_v35 = vcombine.low %v4165_v13, %v4179_v56  ;;  %v4187_v2 = vcombine.high %v4165_v13, %v4179_v56  ;;  %v11310_v6 = vld [vmem:[#allocation7 + $0x1f4] ss:$8 sps:$4 sm:$0xff]   ;;  %v3733_v11 = vrot.slane %v3719_v29, %v12199_v51 }
 0x130   : > { %5494 = vmatpush1.bf16.msra.mxu0 %v11296_v23  ;;  %5513 = vmatprep.mubr.bf16.mxu0 %v4249_v33  ;;  %v13099_v5 = vrot.slane %v4183_v63, %v12199_v51  ;;  %v13102_v45 = vrot.slane %v4182_v10, %v12199_v51  ;;  %v3769_v19 = vcombine.high %v15191_v58, %v12915_v55  ;;  %v11305_v23 = vld [vmem:[#allocation7 + $0x200] ss:$8 sps:$4 sm:$0xff]   ;;  %v11316_v63 = vld [vmem:[#allocation7 + $0x1e4] ss:$8 sps:$4 sm:$0xff]  }
 0x131   : > { %5495 = vmatprep.subr.bf16.mxu0 %v11304_v14  ;;  %5470 = vmatprep.mubr.bf16.mxu1 %v4618_v47  ;;  %v13105_v42 = vrot.slane %v4186_v35, %v12199_v51  ;;  %v13111_v33 = vrot.slane %v4187_v2, %v12199_v51  ;;  %v13115_v4 = vcombine.low %v15198_v37, %v12982_v26  ;;  %v11313_v14 = vld [vmem:[#allocation7 + $0x2f4] ss:$8 sps:$4 sm:$0xff]   ;;  %v11311_v47 = vld [vmem:[#allocation7 + $0x2f0] ss:$8 sps:$4 sm:$0xff]  }
 0x132   : > { %5557 = vmatpush1.bf16.msra.mxu1 %v11299_v15  ;;  %v10439_v13 = vcombine.high %v12924_v3, %v13091_v27  ;;  %v13122_v55 = vcombine.low %v15196_v7, %v3733_v11  ;;  %v3783_v58 = vrot.slane %v3769_v19, %v12199_v51  ;;  %v11308_v15 = vld [vmem:[#allocation7 + $0x1f0] ss:$8 sps:$4 sm:$0xff]   ;;  %v3919_v35 = vcombine.high %v12715_v24, %v12967_v17  ;;  %v11322_v11 = vld [vmem:[#allocation7 + $0x1d4] ss:$8 sps:$4 sm:$0xff]   ;;  %v11317_v24 = vld [vmem:[#allocation7 + $0x2e0] ss:$8 sps:$4 sm:$0xff]  }
 0x133   : > { %5558 = vmatprep.subr.bf16.mxu1 %v11307_v34  ;;  %5471 = vmatmul.mubr.bf16.gmra.mxu1 %v4614_v1  ;;  %v4250_v37 = vcombine.low %v13099_v5, %v13111_v33  ;;  %v10445_v10 = vcombine.high %v12955_v9, %v13115_v4 }
 0x134   : > { %5496 = vmatpush1.bf16.msra.mxu0 %v11302_v32  ;;  %v10441_v29 = vcombine.high %v13122_v55, %v12933_v12  ;;  %v10443_v34 = vcombine.low %v12955_v9, %v3783_v58  ;;  %v4322_v7 = vrot.slane %v10439_v13, %v12199_v51  ;;  %v11319_v32 = vld [vmem:[#allocation7 + $0x2e4] ss:$8 sps:$4 sm:$0xff]   ;;  %v11314_v12 = vld [vmem:[#allocation7 + $0x1e0] ss:$8 sps:$4 sm:$0xff]   ;;  %v3933_v9 = vrot.slane %v3919_v35, %v12199_v51 }
 0x135   : > { %5497 = vmatprep.subr.bf16.mxu0 %v11310_v6  ;;  %5576 = vmatprep.mubr.bf16.mxu1 %v4250_v37  ;;  %v4364_v1 = vrot.slane %v10445_v10, %v12199_v51 }
 0x136   : > { %5559 = vmatpush1.bf16.msra.mxu1 %v11305_v23  ;;  %v4336_v2 = vrot.slane %v10441_v29, %v12199_v51  ;;  %v13138_v6 = vrot.slane %v10443_v34, %v12199_v51  ;;  %v13144_v17 = vcombine.low %v15204_v36, %v3933_v9  ;;  %v11320_v29 = vld [vmem:[#allocation7 + $0x1d0] ss:$8 sps:$4 sm:$0xff]   ;;  %v11328_v34 = vld [vmem:[#allocation7 + $0x1c4] ss:$8 sps:$4 sm:$0xff]   ;;  %v11329_v9 = vld [vmem:[#allocation7 + $0x2c0] ss:$8 sps:$4 sm:$0xff]  }
 0x137   : > { %5560 = vmatprep.subr.bf16.mxu1 %v11313_v14  ;;  %v11325_v14 = vld [vmem:[#allocation7 + $0x2d4] ss:$8 sps:$4 sm:$0xff]   ;;  %v11353_v36 = vld [vmem:[#allocation7 + $0x280] ss:$8 sps:$4 sm:$0xff]  }
 0x138   : > { %15207 = vst [vmem:[#allocation28_spill] sm:$0xff] %v13138_v6  ;;  %5498 = vmatpush2.bf16.msra.mxu0 %v11308_v15  ;;  %v4368_v19 = vcombine.high %v4322_v7, %v4336_v2  ;;  %v4372_v23 = vcombine.high %v13138_v6, %v4364_v1  ;;  %v4367_v13 = vcombine.low %v4322_v7, %v4336_v2  ;;  %15208 = vst [vmem:[#allocation35_spill] sm:$0xff] %v13144_v17  ;;  %v11334_v2 = vld [vmem:[#allocation7 + $0x1b4] ss:$8 sps:$4 sm:$0xff]  }
 0x139   : > { %5499 = vmatprep.subr.bf16.mxu0 %v11316_v63  ;;  %v4371_v58 = vcombine.low %v13138_v6, %v4364_v1  ;;  %v11331_v1 = vld [vmem:[#allocation7 + $0x2c4] ss:$8 sps:$4 sm:$0xff]  }
 0x13a   : > { %5561 = vmatpush2.bf16.msra.mxu1 %v11311_v47  ;;  %v13147_v15 = vrot.slane %v4368_v19, %v12199_v51  ;;  %v13150_v37 = vrot.slane %v4372_v23, %v12199_v51  ;;  %v13153_v10 = vrot.slane %v4367_v13, %v12199_v51  ;;  %v11323_v47 = vld [vmem:[#allocation7 + $0x2d0] ss:$8 sps:$4 sm:$0xff]   ;;  %v11340_v13 = vld [vmem:[#allocation7 + $0x1a4] ss:$8 sps:$4 sm:$0xff]  }
 0x13b   : > { %5562 = vmatprep.subr.bf16.mxu1 %v11319_v32  ;;  %v13156_v63 = vrot.slane %v4371_v58, %v12199_v51  ;;  %v11326_v32 = vld [vmem:[#allocation7 + $0x1c0] ss:$8 sps:$4 sm:$0xff]   ;;  %v11332_v19 = vld [vmem:[#allocation7 + $0x1b0] ss:$8 sps:$4 sm:$0xff]  }
 0x13c   : > { %5500 = vmatpush2.bf16.msra.mxu0 %v11314_v12  ;;  %v3819_v12 = vcombine.high %v15194_v8, %v12942_v44  ;;  %v6482_v8 = vunpack.i.h.s16 %v13040_v31  ;;  %v11350_v44 = vld [vmem:[#allocation7 + $0x180] ss:$8 sps:$4 sm:$0xff]  }
 0x13d   : > { %5501 = vmatprep.subr.bf16.mxu0 %v11322_v11  ;;  %v11337_v11 = vld [vmem:[#allocation7 + $0x2b4] ss:$8 sps:$4 sm:$0xff]  }
 0x13e   : > { %5563 = vmatpush2.bf16.msra.mxu1 %v11317_v24  ;;  %v3833_v58 = vrot.slane %v3819_v12, %v12199_v51  ;;  %v3869_v24 = vcombine.high %v15197_v22, %v12964_v30  ;;  %v11341_v30 = vld [vmem:[#allocation7 + $0x2a0] ss:$8 sps:$4 sm:$0xff]   ;;  %v13183_v22 = vcombine.low %v12736_v40, %v13004_v50 }
 0x13f   : > { %5564 = vmatprep.subr.bf16.mxu1 %v11325_v14  ;;  %v11335_v14 = vld [vmem:[#allocation7 + $0x2b0] ss:$8 sps:$4 sm:$0xff]   ;;  %v15211_v12 = vld [vmem:[#allocation19_spill] sm:$0xff] }
 0x140   : > { %5502 = vmatpush2.bf16.msra.mxu0 %v11320_v29  ;;  %v11343_v29 = vld [vmem:[#allocation7 + $0x2a4] ss:$8 sps:$4 sm:$0xff]   ;;  %15210 = vst [vmem:[#allocation38_spill] sm:$0xff] %v13183_v22  ;;  %v10451_v40 = vcombine.high %v12996_v41, %v13183_v22 }
 0x141   : > { %5503 = vmatprep.subr.bf16.mxu0 %v11328_v34  ;;  %v11338_v34 = vld [vmem:[#allocation7 + $0x1a0] ss:$8 sps:$4 sm:$0xff]  }
 0x142   : > { %5565 = vmatpush2.bf16.msra.mxu1 %v11323_v47  ;;  %v11346_v47 = vld [vmem:[#allocation7 + $0x194] ss:$8 sps:$4 sm:$0xff]  }
 0x143   : > { %5566 = vmatprep.subr.bf16.mxu1 %v11331_v1  ;;  %v13176_v1 = vcombine.low %v15201_v49, %v3833_v58  ;;  %v11352_v49 = vld [vmem:[#allocation7 + $0x184] ss:$8 sps:$4 sm:$0xff]  }
 0x144   : > { %5504 = vmatpush2.bf16.msra.mxu0 %v11326_v32  ;;  %v13179_v32 = vrot.slane %v3869_v24, %v12199_v51  ;;  %v11347_v24 = vld [vmem:[#allocation7 + $0x290] ss:$8 sps:$4 sm:$0xff]  }
 0x145   : > { %5505 = vmatprep.subr.bf16.mxu0 %v11334_v2  ;;  %v11349_v2 = vld [vmem:[#allocation7 + $0x294] ss:$8 sps:$4 sm:$0xff]  }
 0x146   : > { %5567 = vmatpush2.bf16.msra.mxu1 %v11329_v9  ;;  %15209 = vst [vmem:[#allocation48_spill] sm:$0xff] %v13179_v32  ;;  %v15021_v9 = vrot.slane %v15211_v12, 1  ;;  %v10449_v58 = vcombine.low %v12996_v41, %v13179_v32  ;;  %v11362_v12 = vld [vmem:[#allocation7 + $0x360] ss:$8 sps:$4 sm:$0xff]  }
 0x147   : > { %5568 = vmatprep.subr.bf16.mxu1 %v11337_v11  ;;  %v11344_v11 = vld [vmem:[#allocation7 + $0x190] ss:$8 sps:$4 sm:$0xff]  }
 0x148   : > { %5506 = vmatpush2.bf16.msra.mxu0 %v11332_v19  ;;  %v6478_v19 = vunpack.i.h.s16 %v13031_v28 }
 0x149   : > { %5507 = vmatprep.subr.bf16.mxu0 %v11340_v13  ;;  %v10447_v13 = vcombine.high %v13176_v1, %v12982_v26  ;;  %v3593_v26 = vrot.slane %v15021_v9, %v12199_v51 }
 0x14a   : > { %5569 = vmatpush2.bf16.msra.mxu1 %v11335_v14  ;;  %v10453_v14 = vcombine.high %v13144_v17, %v13004_v50  ;;  %v13205_v35 = vpack.i.b16 %v13040_v31, %v6478_v19  ;;  %v11358_v50 = vld [vmem:[#allocation7 + $0x374] ss:$8 sps:$4 sm:$0xff]   ;;  %v15219_v17 = vcombine.low %v13102_v45, %v13105_v42 }
 0x14b   : > { %5570 = vmatprep.subr.bf16.mxu1 %v11343_v29  ;;  %v15212_v29 = vld [vmem:[#allocation22_spill] sm:$0xff]  ;;  %v13208_v7 = vrot.slane %v10447_v13, %v12199_v51  ;;  %v15214_v31 = vld [vmem:[#allocation61_spill] sm:$0xff] }
 0x14c   : > { %5508 = vmatpush2.bf16.msra.mxu0 %v11338_v34  ;;  %v15022_v34 = vrot.slane %v15212_v29, 1  ;;  %v13217_v9 = vrot.slane %v10453_v14, %v12199_v51  ;;  %v13225_v19 = vpack.i.b16 %v15214_v31, %v6482_v8  ;;  %v11361_v13 = vld [vmem:[#allocation7 + $0x474] ss:$8 sps:$4 sm:$0xff]   ;;  %v4434_v14 = vcombine.high %v13016_v20, %v13034_v62 }
 0x14d   : > { %5509 = vmatprep.subr.bf16.mxu0 %v11346_v47  ;;  %v11355_v47 = vld [vmem:[#allocation7 + $0x284] ss:$8 sps:$4 sm:$0xff]   ;;  %v13236_v8 = vpack.i.b16 %v13091_v27, %v12939_v60  ;;  %v13245_v20 = vrot.slane %v3593_v26, %v12199_v51  ;;  %v11359_v60 = vld [vmem:[#allocation7 + $0x470] ss:$8 sps:$4 sm:$0xff]  }
 0x14e   : > { %5571 = vmatpush2.bf16.msra.mxu1 %v11341_v30  ;;  %v15213_v30 = vld [vmem:[#allocation60_spill] sm:$0xff]  ;;  %v10624_v62 = vcombine.low %v13225_v19, %v12335_v57 }
 0x14f   : > { %5572 = vmatprep.subr.bf16.mxu1 %v11349_v2  ;;  %v13202_v23 = vpack.i.b16 %v13031_v28, %v15213_v30  ;;  %v13211_v2 = vrot.slane %v10449_v58, %v12199_v51  ;;  %v13222_v28 = vrot.slane %v15022_v34, %v12199_v51  ;;  %v15215_v58 = vld [vmem:[#allocation25_spill] sm:$0xff]  ;;  %v15216_v34 = vld [vmem:[#allocation27_spill] sm:$0xff] }
 0x150   : > { %5510 = vmatpush2.bf16.msra.mxu0 %v11344_v11  ;;  %v13214_v11 = vrot.slane %v10451_v40, %v12199_v51  ;;  %v3594_v40 = vcombine.high %v3593_v26, %v3593_v26  ;;  %v11356_v30 = vld [vmem:[#allocation7 + $0x370] ss:$8 sps:$4 sm:$0xff]   ;;  %v11367_v26 = vld [vmem:[#allocation7 + $0x464] ss:$8 sps:$4 sm:$0xff]   ;;  %v6832_v29 = vrot.slane %v10624_v62, %v12199_v51  ;;  %v15217_v32 = vrot.slane %v15215_v58, 1 }
 0x151   : > { %5511 = vmatprep.subr.bf16.mxu0 %v11352_v49  ;;  %v4245_v49 = vcombine.high %v12832_v43, %v12841_v21  ;;  %v11364_v43 = vld [vmem:[#allocation7 + $0x364] ss:$8 sps:$4 sm:$0xff]   ;;  %v10625_v21 = vcombine.low %v15216_v34, %v13236_v8  ;;  %v15221_v58 = vcombine.low %v13147_v15, %v13150_v37 }
 0x152   : > { %5573 = vmatpush2.bf16.msra.mxu1 %v11347_v24  ;;  %v4557_v31 = vcombine.high %v13214_v11, %v13217_v9  ;;  %v13257_v24 = vrot.slane %v3594_v40, %v12199_v51  ;;  %v3693_v6 = vrot.slane %v15217_v32, %v12199_v51  ;;  %v15220_v62 = vld [vmem:[#allocation34_spill] sm:$0xff]  ;;  %v4552_v32 = vcombine.low %v13208_v7, %v13211_v2 }
 0x153   : > { %5574 = vmatprep.subr.bf16.mxu1 %v11355_v47  ;;  %v6792_v47 = vcombine.low %v13202_v23, %v13205_v35 }
 0x154   : > { %5512 = vmatpush2.bf16.msra.mxu0 %v11350_v44  ;;  %v4553_v44 = vcombine.high %v13208_v7, %v13211_v2  ;;  %v3694_v22 = vcombine.high %v3693_v6, %v3693_v6 }
 0x155   : > { %5607 = vmatprep.subr.bf16.mxu0 %v11358_v50  ;;  %v3644_v50 = vcombine.high %v13222_v28, %v13222_v28  ;;  %v6818_v56 = vrot.slane %v6792_v47, %v12199_v51  ;;  %v15218_v47 = vld [vmem:[#allocation31_spill] sm:$0xff] }
 0x156   : > { %5575 = vmatpush2.bf16.msra.mxu1 %v11353_v36  ;;  %v13261_v36 = vrot.slane %v13222_v28, %v12199_v51  ;;  %v11370_v28 = vld [vmem:[#allocation7 + $0x354] ss:$8 sps:$4 sm:$0xff]  }
 0x157   : > { %5514 = vmatmul.mubr.bf16.vlgmr.msra.gmra.mxu0 %v4245_v49  ;;  %5670 = vmatprep.subr.bf16.mxu1 %v11361_v13  ;;  %v6846_v13 = vrot.slane %v10625_v21, %v12199_v51  ;;  %v6854_v40 = vcombine.low %v15176_v0, %v6818_v56  ;;  %v6855_v49 = vcombine.high %v15176_v0, %v6818_v56  ;;  %v11365_v21 = vld [vmem:[#allocation7 + $0x460] ss:$8 sps:$4 sm:$0xff]  }
 0x158   : > { %5608 = vmatpush1.bf16.msra.mxu0 %v11356_v30  ;;  %5523 = vmatprep.mubr.bf16.mxu0 %v4434_v14  ;;  %v13274_v30 = vrot.slane %v4553_v44, %v12199_v51  ;;  %v3609_v14 = vcombine.high %v13245_v20, %v13245_v20  ;;  %v4556_v0 = vcombine.low %v13214_v11, %v13217_v9  ;;  %v15226_v11 = vrot.slane %v15220_v62, 1 }
 0x159   : > { %5577 = vmatmul.mubr.bf16.vlgmr.msra.gmra.mxu1 %v15219_v17  ;;  %5609 = vmatprep.subr.bf16.mxu0 %v11364_v43  ;;  %v13284_v17 = vrot.slane %v4557_v31, %v12199_v51  ;;  %v15222_v43 = vld [vmem:[#allocation40_spill] sm:$0xff]  ;;  %v6858_v44 = vcombine.low %v6832_v29, %v6846_v13  ;;  %v6859_v41 = vcombine.high %v6832_v29, %v6846_v13  ;;  %v11376_v31 = vld [vmem:[#allocation7 + $0x344] ss:$8 sps:$4 sm:$0xff]   ;;  %v15224_v29 = vrot.slane %v15218_v47, 1 }
 0x15a   : > { %5671 = vmatpush1.bf16.msra.mxu1 %v11359_v60  ;;  %5586 = vmatprep.mubr.bf16.mxu1 %v15221_v58  ;;  %v13292_v56 = vrot.slane %v6855_v49, %v12199_v51  ;;  %v13295_v58 = vrot.slane %v6854_v40, %v12199_v51  ;;  %v11368_v60 = vld [vmem:[#allocation7 + $0x350] ss:$8 sps:$4 sm:$0xff]   ;;  %v3658_v9 = vrot.slane %v3644_v50, %v12199_v51 }
 0x15b   : > { %5672 = vmatprep.subr.bf16.mxu1 %v11367_v26  ;;  %v3743_v26 = vrot.slane %v15224_v29, %v12199_v51  ;;  %v13301_v13 = vrot.slane %v6859_v41, %v12199_v51  ;;  %v13304_v7 = vrot.slane %v6858_v44, %v12199_v51  ;;  %v3659_v2 = vcombine.high %v13261_v36, %v13261_v36  ;;  %v11371_v40 = vld [vmem:[#allocation7 + $0x450] ss:$8 sps:$4 sm:$0xff]   ;;  %v11374_v41 = vld [vmem:[#allocation7 + $0x340] ss:$8 sps:$4 sm:$0xff]  }
 0x15c   : > { %15223 = vst [vmem:[#allocation49_spill] sm:$0xff] %v13295_v58  ;;  %5610 = vmatpush1.bf16.msra.mxu0 %v11362_v12  ;;  %v13310_v12 = vrot.slane %v3693_v6, %v12199_v51  ;;  %v3793_v49 = vrot.slane %v15226_v11, %v12199_v51  ;;  %v4620_v44 = vcombine.low %v13274_v30, %v13284_v17  ;;  %v11382_v11 = vld [vmem:[#allocation7 + $0x334] ss:$8 sps:$4 sm:$0xff]  }
 0x15d   : > { %15225 = vst [vmem:[#allocation44_spill] sm:$0xff] %v13304_v7  ;;  %5611 = vmatprep.subr.bf16.mxu0 %v11370_v28  ;;  %v15227_v29 = vcombine.high %v13020_v48, %v13037_v18  ;;  %v13327_v62 = vrot.slane %v4552_v32, %v12199_v51  ;;  %v13330_v47 = vrot.slane %v4556_v0, %v12199_v51 }
 0x15e   : > { %5673 = vmatpush1.bf16.msra.mxu1 %v11365_v21  ;;  %v11379_v21 = vld [vmem:[#allocation7 + $0x444] ss:$8 sps:$4 sm:$0xff]   ;;  %v15228_v50 = vcombine.high %v13056_v61, %v13079_v54  ;;  %v3744_v48 = vcombine.high %v3743_v26, %v3743_v26  ;;  %v3751_v18 = vrot.slane %v3743_v26, %v12199_v51  ;;  %v15229_v32 = vcombine.low %v13153_v10, %v13156_v63  ;;  %v11377_v61 = vld [vmem:[#allocation7 + $0x440] ss:$8 sps:$4 sm:$0xff]   ;;  %v11380_v54 = vld [vmem:[#allocation7 + $0x330] ss:$8 sps:$4 sm:$0xff]  }
 0x15f   : > { %5674 = vmatprep.subr.bf16.mxu1 %v11373_v38  ;;  %5524 = vmatmul.mubr.bf16.gmra.mxu0 %v15227_v29  ;;  %v3708_v38 = vrot.slane %v3694_v22, %v12199_v51  ;;  %v3794_v0 = vcombine.high %v3793_v49, %v3793_v49  ;;  %v13343_v29 = vrot.slane %v3793_v49, %v12199_v51  ;;  %v11391_v26 = vld [vmem:[#allocation7 + $0x424] ss:$8 sps:$4 sm:$0xff]  }
 0x160   : > { %5612 = vmatpush1.bf16.msra.mxu0 %v11368_v60  ;;  %5533 = vmatprep.mubr.bf16.mxu0 %v15228_v50  ;;  %v15230_v60 = vrot.slane %v15222_v43, 1  ;;  %v4252_v22 = vcombine.low %v13245_v20, %v13257_v24  ;;  %v11385_v50 = vld [vmem:[#allocation7 + $0x434] ss:$8 sps:$4 sm:$0xff]   ;;  %v4615_v49 = vcombine.high %v13063_v39, %v13082_v25  ;;  %v4253_v6 = vcombine.low %v3609_v14, %v13261_v36 }
 0x161   : > { %5613 = vmatprep.subr.bf16.mxu0 %v11376_v31  ;;  %5587 = vmatmul.mubr.bf16.gmra.mxu1 %v15229_v32  ;;  %v15231_v31 = vld [vmem:[#allocation43_spill] sm:$0xff]  ;;  %v4254_v43 = vcombine.low %v3658_v9, %v3659_v2  ;;  %v3709_v24 = vcombine.high %v13310_v12, %v13310_v12  ;;  %v3758_v20 = vrot.slane %v3744_v48, %v12199_v51 }
 0x162   : > { %v13348_v28 = vrot.slane %v15230_v60, %v12199_v51  ;;  %5675 = vmatpush1.bf16.msra.mxu1 %v11371_v40  ;;  %5596 = vmatprep.mubr.bf16.mxu1 %v4620_v44  ;;  %v11388_v32 = vld [vmem:[#allocation7 + $0x324] ss:$8 sps:$4 sm:$0xff]   ;;  %v15232_v60 = vld [vmem:[#allocation57_spill] sm:$0xff]  ;;  %v4255_v44 = vcombine.low %v13310_v12, %v3708_v38  ;;  %v4616_v39 = vcombine.low %v13327_v62, %v13330_v47  ;;  %v11386_v9 = vld [vmem:[#allocation7 + $0x320] ss:$8 sps:$4 sm:$0xff]   ;;  %v15233_v12 = vrot.slane %v15231_v31, 1 }
 0x163   : > { %5676 = vmatprep.subr.bf16.mxu1 %v11379_v21  ;;  %v15043_v7 = vrot.slane %v15232_v60, 1  ;;  %v11383_v40 = vld [vmem:[#allocation7 + $0x430] ss:$8 sps:$4 sm:$0xff]   ;;  %v3759_v21 = vcombine.high %v3751_v18, %v3751_v18  ;;  %v3808_v25 = vrot.slane %v3794_v0, %v12199_v51  ;;  %v3809_v36 = vcombine.high %v13343_v29, %v13343_v29 }
 0x164   : > { %5614 = vmatpush1.bf16.msra.mxu0 %v11374_v41  ;;  %v13368_v14 = vrot.slane %v13348_v28, %v12199_v51  ;;  %v4262_v2 = vrot.slane %v4252_v22, %v12199_v51  ;;  %v3893_v41 = vrot.slane %v15233_v12, %v12199_v51  ;;  %v4269_v38 = vrot.slane %v4253_v6, %v12199_v51 }
 0x165   : > { %5615 = vmatprep.subr.bf16.mxu0 %v11382_v11  ;;  %v11394_v11 = vld [vmem:[#allocation7 + $0x314] ss:$8 sps:$4 sm:$0xff]   ;;  %v4276_v48 = vrot.slane %v4254_v43, %v12199_v51  ;;  %v3943_v0 = vrot.slane %v15043_v7, %v12199_v51  ;;  %v4283_v58 = vrot.slane %v4255_v44, %v12199_v51  ;;  %v15234_v22 = vcombine.high %v13099_v5, %v13111_v33 }
 0x166   : > { %5677 = vmatpush1.bf16.msra.mxu1 %v11377_v61  ;;  %v11389_v61 = vld [vmem:[#allocation7 + $0x420] ss:$8 sps:$4 sm:$0xff]   ;;  %v4437_v12 = vcombine.low %v3709_v24, %v3751_v18  ;;  %v4439_v6 = vcombine.low %v13343_v29, %v3808_v25  ;;  %v4440_v43 = vcombine.low %v3809_v36, %v13368_v14  ;;  %v3844_v7 = vcombine.high %v13348_v28, %v13348_v28  ;;  %v11395_v29 = vld [vmem:[#allocation7 + $0x410] ss:$8 sps:$4 sm:$0xff]  }
 0x167   : > { %5678 = vmatprep.subr.bf16.mxu1 %v11385_v50  ;;  %5534 = vmatmul.mubr.bf16.gmra.mxu0 %v4615_v49  ;;  %v4438_v50 = vcombine.low %v3758_v20, %v3759_v21  ;;  %v11397_v49 = vld [vmem:[#allocation7 + $0x414] ss:$8 sps:$4 sm:$0xff]   ;;  %v3894_v44 = vcombine.high %v3893_v41, %v3893_v41  ;;  %v13389_v5 = vrot.slane %v3893_v41, %v12199_v51  ;;  %v11398_v41 = vld [vmem:[#allocation7 + $0x300] ss:$8 sps:$4 sm:$0xff]  }
 0x168   : > { %5616 = vmatpush1.bf16.msra.mxu0 %v11380_v54  ;;  %5639 = vmatprep.mubr.bf16.mxu0 %v15234_v22  ;;  %v11982_v54 = vmov 0   ;;  %v3944_v33 = vcombine.high %v3943_v0, %v3943_v0  ;;  %v3951_v18 = vrot.slane %v3943_v0, %v12199_v51  ;;  %v4284_v24 = vcombine.low %v4262_v2, %v4269_v38 }
 0x169   : > { %5617 = vmatprep.subr.bf16.mxu0 %v11388_v32  ;;  %5597 = vmatmul.mubr.bf16.gmra.mxu1 %v4616_v39  ;;  %v11392_v32 = vld [vmem:[#allocation7 + $0x310] ss:$8 sps:$4 sm:$0xff]   ;;  %v4285_v20 = vcombine.low %v4276_v48, %v4283_v58  ;;  %v4447_v21 = vrot.slane %v4437_v12, %v12199_v51  ;;  %v4454_v28 = vrot.slane %v4438_v50, %v12199_v51  ;;  %v11403_v39 = vld [vmem:[#allocation7 + $0x404] ss:$8 sps:$4 sm:$0xff]   ;;  %v6498_v2 = vunpack.i.h.s16 %v13091_v27  ;;  %v11406_v48 = vld [vmem:[#allocation7 + $0x3f4] ss:$8 sps:$4 sm:$0xff]  }
 0x16a   : > { %5679 = vmatpush1.bf16.msra.mxu1 %v11383_v40  ;;  %5702 = vmatprep.mubr.bf16.mxu1 %v11982_v54  ;;  %v11400_v40 = vld [vmem:[#allocation7 + $0x304] ss:$8 sps:$4 sm:$0xff]   ;;  %v4468_v25 = vrot.slane %v4440_v43, %v12199_v51  ;;  %v3858_v36 = vrot.slane %v3844_v7, %v12199_v51  ;;  %v3908_v58 = vrot.slane %v3894_v44, %v12199_v51  ;;  %v6502_v38 = vunpack.i.h.s16 %v13122_v55 }
 0x16b   : > { %5680 = vmatprep.subr.bf16.mxu1 %v11391_v26  ;;  %v4461_v26 = vrot.slane %v4439_v6, %v12199_v51  ;;  %v3909_v0 = vcombine.high %v13389_v5, %v13389_v5  ;;  %v3958_v7 = vrot.slane %v3944_v33, %v12199_v51  ;;  %v3959_v22 = vcombine.high %v3951_v18, %v3951_v18  ;;  %v11409_v6 = vld [vmem:[#allocation8 + $0x74] ss:$8 sps:$4 sm:$0xff]  }
 0x16c   : > { %5618 = vmatpush1.bf16.msra.mxu0 %v11386_v9  ;;  %v3859_v9 = vcombine.high %v13368_v14, %v13368_v14  ;;  %v6522_v14 = vunpack.i.h.s16 %v13176_v1  ;;  %v13408_v12 = vpack.i.b16 %v13122_v55, %v6498_v2  ;;  %v13411_v27 = vpack.i.b16 %v12952_v53, %v6502_v38  ;;  %v11404_v55 = vld [vmem:[#allocation7 + $0x3f0] ss:$8 sps:$4 sm:$0xff]  }
 0x16d   : > { %5619 = vmatprep.subr.bf16.mxu0 %v11394_v11  ;;  %v6518_v11 = vunpack.i.h.s16 %v13115_v4  ;;  %v13415_v50 = vpack.i.b16 %v13115_v4, %v12973_v59  ;;  %v4292_v43 = vrot.slane %v4284_v24, %v12199_v51  ;;  %v4299_v44 = vrot.slane %v4285_v20, %v12199_v51 }
 0x16e   : > { %5681 = vmatpush1.bf16.msra.mxu1 %v11389_v61  ;;  %v11401_v61 = vld [vmem:[#allocation7 + $0x400] ss:$8 sps:$4 sm:$0xff]   ;;  %v13423_v33 = vpack.i.b16 %v12993_v52, %v6522_v14  ;;  %v4469_v53 = vcombine.low %v4447_v21, %v4454_v28  ;;  %v6994_v59 = vcombine.low %v13408_v12, %v13411_v27  ;;  %v4623_v24 = vcombine.low %v13389_v5, %v3908_v58  ;;  %v11407_v52 = vld [vmem:[#allocation8 + $0x70] ss:$8 sps:$4 sm:$0xff]  }
 0x16f   : > { %5682 = vmatprep.subr.bf16.mxu1 %v11397_v49  ;;  %v13418_v49 = vpack.i.b16 %v13176_v1, %v6518_v11  ;;  %v11412_v1 = vld [vmem:[#allocation7 + $0x3e4] ss:$8 sps:$4 sm:$0xff]   ;;  %v4625_v2 = vcombine.low %v3958_v7, %v3959_v22  ;;  %v11413_v7 = vld [vmem:[#allocation8 + $0x60] ss:$8 sps:$4 sm:$0xff]  }
 0x170   : > { %5620 = vmatpush1.bf16.msra.mxu0 %v11392_v32  ;;  %v4470_v32 = vcombine.low %v4461_v26, %v4468_v25  ;;  %v10628_v20 = vcombine.low %v13423_v33, %v12644_v46  ;;  %v7008_v21 = vrot.slane %v6994_v59, %v12199_v51  ;;  %v4300_v26 = vcombine.low %v4292_v43, %v4299_v44  ;;  %v11415_v25 = vld [vmem:[#allocation8 + $0x64] ss:$8 sps:$4 sm:$0xff]  }
 0x171   : > { %5621 = vmatprep.subr.bf16.mxu0 %v11400_v40  ;;  %v6998_v4 = vcombine.low %v13415_v50, %v13418_v49  ;;  %v4622_v40 = vcombine.low %v3858_v36, %v3859_v9  ;;  %v11410_v36 = vld [vmem:[#allocation7 + $0x3e0] ss:$8 sps:$4 sm:$0xff]   ;;  %v4477_v5 = vrot.slane %v4469_v53, %v12199_v51  ;;  %v4639_v22 = vrot.slane %v4623_v24, %v12199_v51  ;;  %v11416_v53 = vld [vmem:[#allocation7 + $0x3d0] ss:$8 sps:$4 sm:$0xff]   ;;  %v11427_v24 = vld [vmem:[#allocation8 + $0x44] ss:$8 sps:$4 sm:$0xff]  }
 0x172   : > { %5683 = vmatpush1.bf16.msra.mxu1 %v11395_v29  ;;  %v4624_v29 = vcombine.low %v3909_v0, %v3951_v18  ;;  %v4484_v9 = vrot.slane %v4470_v32, %v12199_v51  ;;  %v15235_v58 = vld [vmem:[#allocation47_spill] sm:$0xff]  ;;  %v11418_v18 = vld [vmem:[#allocation7 + $0x3d4] ss:$8 sps:$4 sm:$0xff]  }
 0x173   : > { %5684 = vmatprep.subr.bf16.mxu1 %v11403_v39  ;;  %v7036_v28 = vrot.slane %v6998_v4, %v12199_v51  ;;  %v7050_v39 = vrot.slane %v10628_v20, %v12199_v51  ;;  %v4632_v38 = vrot.slane %v4622_v40, %v12199_v51  ;;  %v7058_v0 = vcombine.low %v7008_v21, %v15235_v58  ;;  %v11421_v32 = vld [vmem:[#allocation8 + $0x54] ss:$8 sps:$4 sm:$0xff]   ;;  %v11424_v40 = vld [vmem:[#allocation7 + $0x3c4] ss:$8 sps:$4 sm:$0xff]  }
 0x174   : > { %5622 = vmatpush1.bf16.msra.mxu0 %v11398_v41  ;;  %v7059_v41 = vcombine.high %v7008_v21, %v15235_v58  ;;  %v4646_v14 = vrot.slane %v4624_v29, %v12199_v51  ;;  %v4485_v20 = vcombine.low %v4477_v5, %v4484_v9  ;;  %v11430_v21 = vld [vmem:[#allocation7 + $0x3b4] ss:$8 sps:$4 sm:$0xff]   ;;  %v1284_v5 = vld [vmem:[%s14885_s2] sm:$0x3]  ;;  %v11436_v9 = vld [vmem:[#allocation7 + $0x3a4] ss:$8 sps:$4 sm:$0xff]  }
 0x175   : > { %5623 = vmatprep.subr.bf16.mxu0 %v11406_v48  ;;  %v7063_v11 = vcombine.high %v7036_v28, %v7050_v39  ;;  %v7062_v48 = vcombine.low %v7036_v28, %v7050_v39  ;;  %v13450_v44 = vrot.slane %v7058_v0, %v12199_v51  ;;  %v4654_v29 = vcombine.low %v4632_v38, %v4639_v22  ;;  %v11425_v28 = vld [vmem:[#allocation8 + $0x40] ss:$8 sps:$4 sm:$0xff]   ;;  %v15236_v58 = vld [vmem:[#allocation16_spill] sm:$0xff]  ;;  %v11439_v38 = vld [vmem:[#allocation8 + $0x24] ss:$8 sps:$4 sm:$0xff]  }
 0x176   : > { %5685 = vmatpush1.bf16.msra.mxu1 %v11401_v61  ;;  %v4653_v61 = vrot.slane %v4625_v2, %v12199_v51  ;;  %v13444_v43 = vrot.slane %v7059_v41, %v12199_v51  ;;  %v13467_v41 = vsub.s32 0, %v15236_v58 }
 0x177   : > { %8296 = vmatprep.subr.bf16.mxu1 %v11409_v6  ;;  %v13447_v6 = vrot.slane %v7063_v11, %v12199_v51  ;;  %v13470_v11 = vsub.s32 1, %v15236_v58 }
 0x178   : > { %5624 = vmatpush2.bf16.msra.mxu0 %v11404_v55  ;;  %v13453_v55 = vrot.slane %v7062_v48, %v12199_v51  ;;  %v4655_v2 = vcombine.low %v4646_v14, %v4653_v61  ;;  %15237 = vst [vmem:[#allocation39_spill] sm:$0xff] %v13467_v41  ;;  %v11434_v48 = vld [vmem:[#allocation7 + $0x3a0] ss:$8 sps:$4 sm:$0xff]   ;;  %v13473_v22 = vrot.slane %v1284_v5, %v13467_v41  ;;  %v11445_v14 = vld [vmem:[#allocation8 + $0x14] ss:$8 sps:$4 sm:$0xff]  }
 0x179   : > { %5703 = vmatmul.mubr.bf16.vlgmr.msra.gmra.mxu1 %v4300_v26  ;;  %5625 = vmatprep.subr.bf16.mxu0 %v11412_v1  ;;  %v7126_v59 = vcombine.low %v13444_v43, %v13447_v6  ;;  %v11419_v1 = vld [vmem:[#allocation8 + $0x50] ss:$8 sps:$4 sm:$0xff]   ;;  %v11433_v26 = vld [vmem:[#allocation8 + $0x34] ss:$8 sps:$4 sm:$0xff]   ;;  %15238 = vst [vmem:[#allocation52_spill] sm:$0xff] %v13470_v11  ;;  %v13476_v61 = vrot.slane %v1284_v5, %v13470_v11 }
 0x17a   : > { %8297 = vmatpush1.bf16.msra.mxu1 %v11407_v52  ;;  %5712 = vmatprep.mubr.bf16.mxu1 %v11982_v54  ;;  %v7122_v4 = vcombine.low %v13450_v44, %v13453_v55  ;;  %v11422_v52 = vld [vmem:[#allocation7 + $0x3c0] ss:$8 sps:$4 sm:$0xff]   ;;  %v4669_v39 = vrot.slane %v4655_v2, %v12199_v51  ;;  %v11443_v2 = vld [vmem:[#allocation8 + $0x10] ss:$8 sps:$4 sm:$0xff]   ;;  %v11457_v5 = vld [vmem:[#allocation8 + $0x174] ss:$8 sps:$4 sm:$0xff]  }
 0x17b   : > { %8298 = vmatprep.subr.bf16.mxu1 %v11415_v25  ;;  %v4662_v25 = vrot.slane %v4654_v29, %v12199_v51 }
 0x17c   : > { %5626 = vmatpush2.bf16.msra.mxu0 %v11410_v36  ;;  %v11428_v36 = vld [vmem:[#allocation7 + $0x3b0] ss:$8 sps:$4 sm:$0xff]  }
 0x17d   : > { %5627 = vmatprep.subr.bf16.mxu0 %v11418_v18  ;;  %v11431_v18 = vld [vmem:[#allocation8 + $0x30] ss:$8 sps:$4 sm:$0xff]   ;;  %v4670_v0 = vcombine.low %v4662_v25, %v4669_v39  ;;  %v11451_v25 = vld [vmem:[#allocation8 + $0x4] ss:$8 sps:$4 sm:$0xff]  }
 0x17e   : > { %8299 = vmatpush1.bf16.msra.mxu1 %v11413_v7  ;;  %v11442_v7 = vld [vmem:[#allocation7 + $0x394] ss:$8 sps:$4 sm:$0xff]  }
 0x17f   : > { %8300 = vmatprep.subr.bf16.mxu1 %v11421_v32 }
 0x180   : > { %5628 = vmatpush2.bf16.msra.mxu0 %v11416_v53  ;;  %v11440_v53 = vld [vmem:[#allocation7 + $0x390] ss:$8 sps:$4 sm:$0xff]  }
 0x181   : > { %5629 = vmatprep.subr.bf16.mxu0 %v11424_v40  ;;  %5713 = vmatmul.mubr.bf16.gmra.mxu1 %v4485_v20  ;;  %v15239_v40 = vcombine.low %v13292_v56, %v13301_v13 }
 0x182   : > { %8301 = vmatpush1.bf16.msra.mxu1 %v11419_v1  ;;  %5722 = vmatprep.mubr.bf16.mxu1 %v11982_v54  ;;  %v11437_v54 = vld [vmem:[#allocation8 + $0x20] ss:$8 sps:$4 sm:$0xff]  }
 0x183   : > { %8302 = vmatprep.subr.bf16.mxu1 %v11427_v24 }
 0x184   : > { %5630 = vmatpush2.bf16.msra.mxu0 %v11422_v52  ;;  %v2330_v32 = vpop.f32.mrf.mxu0  ;;  %v2401_v1 = vpop.f32.mrf.mxu1  ;;  %v11448_v52 = vld [vmem:[#allocation7 + $0x384] ss:$8 sps:$4 sm:$0xff]  }
 0x185   : > { %5631 = vmatprep.subr.bf16.mxu0 %v11430_v21  ;;  %v2331_v24 = vadd.f32 %v2330_v32, %v13473_v22  ;;  %v11454_v32 = vld [vmem:[#allocation8 + $0xf4] ss:$8 sps:$4 sm:$0xff]  }
 0x186   : > { %8303 = vmatpush1.bf16.msra.mxu1 %v11425_v28  ;;  %v2332_v20 = vpop.f32.mrf.mxu0  ;;  %v2403_v29 = vpop.f32.mrf.mxu1 }
 0x187   : > { %8304 = vmatprep.subr.bf16.mxu1 %v11433_v26  ;;  %v2333_v21 = vadd.f32 %v2332_v20, %v13476_v61  ;;  %v13483_v28 = vadd.f32 %v2401_v1, %v2331_v24  ;;  %v11446_v26 = vld [vmem:[#allocation7 + $0x380] ss:$8 sps:$4 sm:$0xff]   ;;  %v11455_v1 = vld [vmem:[#allocation8 + $0x170] ss:$8 sps:$4 sm:$0xff]   ;;  %v11460_v20 = vld [vmem:[#allocation8 + $0xe4] ss:$8 sps:$4 sm:$0xff]  }
 0x188   : > { %5632 = vmatpush2.bf16.msra.mxu0 %v11428_v36  ;;  %v2334_v39 = vpop.f32.mrf.mxu0  ;;  %v2405_v36 = vpop.f32.mrf.mxu1  ;;  %v11452_v24 = vld [vmem:[#allocation8 + $0xf0] ss:$8 sps:$4 sm:$0xff]  }
 0x189   : > { %5633 = vmatprep.subr.bf16.mxu0 %v11436_v9  ;;  %5723 = vmatmul.mubr.bf16.gmra.mxu1 %v4670_v0  ;;  %v2335_v9 = vadd.f32 %v2334_v39, %v13473_v22  ;;  %v11458_v39 = vld [vmem:[#allocation8 + $0xe0] ss:$8 sps:$4 sm:$0xff]  }
 0x18a   : > { %8305 = vmatpush1.bf16.msra.mxu1 %v11431_v18  ;;  %8328 = vmatprep.mubr.bf16.mxu1 %v15239_v40  ;;  %v13486_v18 = vadd.f32 %v2403_v29, %v2333_v21  ;;  %v2407_v0 = vpop.f32.mrf.mxu1  ;;  %v11463_v40 = vld [vmem:[#allocation8 + $0x164] ss:$8 sps:$4 sm:$0xff]   ;;  %v3686_v29 = vcombine.low %v15216_v34, %v13059_v16  ;;  %v6793_v21 = vcombine.high %v13202_v23, %v13205_v35  ;;  %v11469_v16 = vld [vmem:[#allocation8 + $0x154] ss:$8 sps:$4 sm:$0xff]  }
 0x18b   : > { %8306 = vmatprep.subr.bf16.mxu1 %v11439_v38  ;;  %v2336_v38 = vpop.f32.mrf.mxu0  ;;  %v15242_v35 = vld [vmem:[#allocation56_spill] sm:$0xff] }
 0x18c   : > { %5634 = vmatpush2.bf16.msra.mxu0 %v11434_v48  ;;  %v2337_v48 = vadd.f32 %v2336_v38, %v13476_v61  ;;  %v11475_v38 = vld [vmem:[#allocation8 + $0x144] ss:$8 sps:$4 sm:$0xff]  }
 0x18d   : > { %5635 = vmatprep.subr.bf16.mxu0 %v11442_v7  ;;  %v13489_v7 = vadd.f32 %v2405_v36, %v2335_v9  ;;  %v11467_v36 = vld [vmem:[#allocation8 + $0x150] ss:$8 sps:$4 sm:$0xff]   ;;  %v11472_v9 = vld [vmem:[#allocation8 + $0xc4] ss:$8 sps:$4 sm:$0xff]  }
 0x18e   : > { %8307 = vmatpush1.bf16.msra.mxu1 %v11437_v54  ;;  %v11449_v54 = vld [vmem:[#allocation8] ss:$8 sps:$4 sm:$0xff]  }
 0x18f   : > { %8308 = vmatprep.subr.bf16.mxu1 %v11445_v14  ;;  %v13491_v14 = vadd.f32 %v2407_v0, %v2337_v48 }
 0x190   : > { %5636 = vmatpush2.bf16.msra.mxu0 %v11440_v53  ;;  %v3684_v53 = vcombine.low %v12335_v57, %v12924_v3  ;;  %v15241_v57 = vcombine.high %v13147_v15, %v13150_v37  ;;  %v11466_v3 = vld [vmem:[#allocation8 + $0xd4] ss:$8 sps:$4 sm:$0xff]   ;;  %v4621_v15 = vcombine.high %v13274_v30, %v13284_v17  ;;  %v15244_v30 = vcombine.high %v13153_v10, %v13156_v63  ;;  %v11476_v63 = vld [vmem:[#allocation8 + $0xb0] ss:$8 sps:$4 sm:$0xff]  }
 0x191   : > { %5637 = vmatprep.subr.bf16.mxu0 %v11448_v52  ;;  %v11461_v52 = vld [vmem:[#allocation8 + $0x160] ss:$8 sps:$4 sm:$0xff]   ;;  %v4617_v10 = vcombine.high %v13327_v62, %v13330_v47 }
 0x192   : > { %8309 = vmatpush1.bf16.msra.mxu1 %v11443_v2  ;;  %v15240_v2 = vcombine.high %v13102_v45, %v13105_v42  ;;  %v6825_v45 = vrot.slane %v6793_v21, %v12199_v51  ;;  %v6995_v21 = vcombine.high %v13408_v12, %v13411_v27  ;;  %v11482_v27 = vld [vmem:[#allocation8 + $0xa0] ss:$8 sps:$4 sm:$0xff]  }
 0x193   : > { %8310 = vmatprep.subr.bf16.mxu1 %v11451_v25  ;;  %v6797_v25 = vcombine.high %v3686_v29, %v13236_v8  ;;  %v11464_v8 = vld [vmem:[#allocation8 + $0xd0] ss:$8 sps:$4 sm:$0xff]  }
 0x194   : > { %5638 = vmatpush2.bf16.msra.mxu0 %v11446_v26  ;;  %v6795_v26 = vcombine.high %v13225_v19, %v3684_v53  ;;  %v6857_v23 = vcombine.high %v15242_v35, %v6825_v45  ;;  %v6856_v37 = vcombine.low %v15242_v35, %v6825_v45  ;;  %v11481_v53 = vld [vmem:[#allocation8 + $0x134] ss:$8 sps:$4 sm:$0xff]   ;;  %v15246_v45 = vcombine.high %v13292_v56, %v13301_v13  ;;  %v15248_v35 = vld [vmem:[#allocation35_spill] sm:$0xff] }
 0x195   : > { %8357 = vmatprep.subr.bf16.mxu0 %v11457_v5  ;;  %v6853_v34 = vrot.slane %v6797_v25, %v12199_v51  ;;  %v15245_v29 = vld [vmem:[#allocation45_spill] sm:$0xff] }
 0x196   : > { %8311 = vmatpush1.bf16.msra.mxu1 %v11449_v54  ;;  %v6839_v42 = vrot.slane %v6795_v26, %v12199_v51  ;;  %v13515_v0 = vrot.slane %v6857_v23, %v12199_v51  ;;  %v13521_v54 = vrot.slane %v6856_v37, %v12199_v51  ;;  %v6999_v26 = vcombine.high %v13415_v50, %v13418_v49  ;;  %v11485_v50 = vld [vmem:[#allocation8 + $0x120] ss:$8 sps:$4 sm:$0xff]   ;;  %v11493_v37 = vld [vmem:[#allocation8 + $0x114] ss:$8 sps:$4 sm:$0xff]  }
 0x197   : > { %5640 = vmatmul.mubr.bf16.vlgmr.msra.gmra.mxu0 %v15240_v2  ;;  %8312 = vmatprep.subr.bf16.mxu1 %v11454_v32  ;;  %v11479_v2 = vld [vmem:[#allocation8 + $0x130] ss:$8 sps:$4 sm:$0xff]   ;;  %v6542_v23 = vunpack.i.h.s16 %v15248_v35 }
 0x198   : > { %8358 = vmatpush1.bf16.msra.mxu0 %v11455_v1  ;;  %5649 = vmatprep.mubr.bf16.mxu0 %v15241_v57  ;;  %v6861_v19 = vcombine.high %v6839_v42, %v6853_v34  ;;  %v6860_v5 = vcombine.low %v6839_v42, %v6853_v34  ;;  %v11470_v1 = vld [vmem:[#allocation8 + $0xc0] ss:$8 sps:$4 sm:$0xff]   ;;  %v11487_v57 = vld [vmem:[#allocation8 + $0x124] ss:$8 sps:$4 sm:$0xff]   ;;  %v7043_v47 = vrot.slane %v6999_v26, %v12199_v51 }
 0x199   : > { %8359 = vmatprep.subr.bf16.mxu0 %v11463_v40  ;;  %v11473_v40 = vld [vmem:[#allocation8 + $0x140] ss:$8 sps:$4 sm:$0xff]  }
 0x19a   : > { %8313 = vmatpush2.bf16.msra.mxu1 %v11452_v24  ;;  %v13518_v48 = vrot.slane %v6861_v19, %v12199_v51  ;;  %v13524_v32 = vrot.slane %v6860_v5, %v12199_v51  ;;  %v15247_v42 = vld [vmem:[#allocation38_spill] sm:$0xff]  ;;  %v15249_v19 = vld [vmem:[#allocation28_spill] sm:$0xff] }
 0x19b   : > { %8314 = vmatprep.subr.bf16.mxu1 %v11460_v20  ;;  %v11478_v20 = vld [vmem:[#allocation8 + $0xb4] ss:$8 sps:$4 sm:$0xff]   ;;  %v6538_v34 = vunpack.i.h.s16 %v15247_v42 }
 0x19c   : > { %8360 = vmatpush1.bf16.msra.mxu0 %v11461_v52  ;;  %15243 = vst [vmem:[#allocation50_spill] sm:$0xff] %v13524_v32  ;;  %v3884_v52 = vcombine.low %v12644_v46, %v15245_v29 }
 0x19d   : > { %8361 = vmatprep.subr.bf16.mxu0 %v11469_v16  ;;  %v7015_v16 = vrot.slane %v6995_v21, %v12199_v51 }
 0x19e   : > { %8315 = vmatpush2.bf16.msra.mxu1 %v11458_v39  ;;  %v7001_v25 = vcombine.high %v13423_v33, %v3884_v52  ;;  %v11484_v39 = vld [vmem:[#allocation8 + $0xa4] ss:$8 sps:$4 sm:$0xff]  }
 0x19f   : > { %5650 = vmatmul.mubr.bf16.gmra.mxu0 %v15244_v30  ;;  %8316 = vmatprep.subr.bf16.mxu1 %v11466_v3  ;;  %v15279_v52 = vld [vmem:[#allocation18_spill] sm:$0xff] }
 0x1a0   : > { %8362 = vmatpush1.bf16.msra.mxu0 %v11467_v36  ;;  %5659 = vmatprep.mubr.bf16.mxu0 %v4621_v15  ;;  %v2340_v46 = vpop.f32.mrf.mxu0  ;;  %v7057_v62 = vrot.slane %v7001_v25, %v12199_v51  ;;  %v11490_v15 = vld [vmem:[#allocation8 + $0x94] ss:$8 sps:$4 sm:$0xff]   ;;  %v15253_v25 = vld [vmem:[#allocation46_spill] sm:$0xff]  ;;  %v15281_v17 = vshll.u32 %v15279_v52, 16 }
 0x1a1   : > { %8363 = vmatprep.subr.bf16.mxu0 %v11475_v38  ;;  %v2411_v3 = vpop.f32.mrf.mxu1  ;;  %v2341_v12 = vadd.f32 %v2340_v46, %v13473_v22  ;;  %v7060_v38 = vcombine.low %v7015_v16, %v15249_v19 }
 0x1a2   : > { %8317 = vmatpush2.bf16.msra.mxu1 %v11464_v8  ;;  %v2342_v49 = vpop.f32.mrf.mxu0  ;;  %v7061_v8 = vcombine.high %v7015_v16, %v15249_v19  ;;  %v7065_v36 = vcombine.high %v7043_v47, %v7057_v62  ;;  %v7064_v30 = vcombine.low %v7043_v47, %v7057_v62  ;;  %v11499_v16 = vld [vmem:[#allocation8 + $0x104] ss:$8 sps:$4 sm:$0xff]   ;;  %v15256_v19 = vld [vmem:[#allocation48_spill] sm:$0xff] }
 0x1a3   : > { %8318 = vmatprep.subr.bf16.mxu1 %v11472_v9  ;;  %v2413_v33 = vpop.f32.mrf.mxu1  ;;  %v2343_v5 = vadd.f32 %v2342_v49, %v13476_v61  ;;  %v13553_v9 = vadd.f32 %v2411_v3, %v2341_v12  ;;  %v11496_v3 = vld [vmem:[#allocation8 + $0x84] ss:$8 sps:$4 sm:$0xff]   ;;  %v10618_v12 = vpack.i.b16 %v15248_v35, %v6538_v34  ;;  %v11494_v34 = vld [vmem:[#allocation8 + $0x80] ss:$8 sps:$4 sm:$0xff]  }
 0x1a4   : > { %8364 = vmatpush1.bf16.msra.mxu0 %v11473_v40  ;;  %v2344_v56 = vpop.f32.mrf.mxu0  ;;  %v13559_v40 = vrot.slane %v7061_v8, %v12199_v51  ;;  %v13577_v46 = vrot.slane %v7064_v30, %v12199_v51  ;;  %v15257_v8 = vld [vmem:[#allocation53_spill] sm:$0xff] }
 0x1a5   : > { %8365 = vmatprep.subr.bf16.mxu0 %v11481_v53  ;;  %v2415_v13 = vpop.f32.mrf.mxu1  ;;  %v2345_v53 = vadd.f32 %v2344_v56, %v13473_v22  ;;  %v13565_v29 = vadd.f32 %v2413_v33, %v2343_v5 }
 0x1a6   : > { %8319 = vmatpush2.bf16.msra.mxu1 %v11470_v1  ;;  %15250 = vst [vmem:[#allocation51_spill] sm:$0xff] %v13559_v40  ;;  %v2346_v21 = vpop.f32.mrf.mxu0  ;;  %15254 = vst [vmem:[#allocation60_spill] sm:$0xff] %v13577_v46 }
 0x1a7   : > { %5660 = vmatmul.mubr.bf16.gmra.mxu0 %v4617_v10  ;;  %8320 = vmatprep.subr.bf16.mxu1 %v11478_v20  ;;  %v13562_v20 = vrot.slane %v7065_v36, %v12199_v51  ;;  %v13570_v10 = vrot.slane %v7060_v38, %v12199_v51  ;;  %v2417_v26 = vpop.f32.mrf.mxu1  ;;  %v2347_v47 = vadd.f32 %v2346_v21, %v13476_v61 }
 0x1a8   : > { %8366 = vmatpush1.bf16.msra.mxu0 %v11479_v2  ;;  %8389 = vmatprep.mubr.bf16.mxu0 %v15246_v45  ;;  %v11491_v2 = vld [vmem:[#allocation8 + $0x110] ss:$8 sps:$4 sm:$0xff]   ;;  %v13580_v62 = vadd.f32 %v2415_v13, %v2345_v53  ;;  %v3886_v36 = vcombine.low %v15257_v8, %v15256_v19  ;;  %v11505_v53 = vld [vmem:[#allocation8 + $0x274] ss:$8 sps:$4 sm:$0xff]  }
 0x1a9   : > { %8367 = vmatprep.subr.bf16.mxu0 %v11487_v57  ;;  %15251 = vst [vmem:[#allocation58_spill] sm:$0xff] %v13562_v20  ;;  %15252 = vst [vmem:[#allocation59_spill] sm:$0xff] %v13570_v10  ;;  %v10616_v57 = vpack.i.b16 %v15247_v42, %v15253_v25  ;;  %v13586_v45 = vadd.f32 %v2417_v26, %v2347_v47  ;;  %v11497_v42 = vld [vmem:[#allocation8 + $0x100] ss:$8 sps:$4 sm:$0xff]  }
 0x1aa   : > { %8321 = vmatpush2.bf16.msra.mxu1 %v11476_v63  ;;  %v11488_v63 = vld [vmem:[#allocation8 + $0x90] ss:$8 sps:$4 sm:$0xff]  }
 0x1ab   : > { %8322 = vmatprep.subr.bf16.mxu1 %v11484_v39  ;;  %v10629_v5 = vcombine.low %v15257_v8, %v10616_v57  ;;  %v7199_v35 = vcombine.high %v3886_v36, %v10616_v57 }
 0x1ac   : > { %8368 = vmatpush1.bf16.msra.mxu0 %v11485_v50  ;;  %v15255_v50 = vld [vmem:[#allocation26_spill] sm:$0xff] }
 0x1ad   : > { %8369 = vmatprep.subr.bf16.mxu0 %v11493_v37  ;;  %v10620_v49 = vpack.i.b16 %v15255_v50, %v6542_v23  ;;  %v11502_v37 = vld [vmem:[#allocation8 + $0x1f4] ss:$8 sps:$4 sm:$0xff]   ;;  %v13596_v21 = vrot.slane %v7199_v35, %v12199_v51  ;;  %v7208_v47 = vrot.slane %v10629_v5, %v12199_v51  ;;  %v11511_v5 = vld [vmem:[#allocation8 + $0x264] ss:$8 sps:$4 sm:$0xff]   ;;  %v11506_v35 = vld [vmem:[#allocation8 + $0x1e0] ss:$8 sps:$4 sm:$0xff]  }
 0x1ae   : > { %8323 = vmatpush2.bf16.msra.mxu1 %v11482_v27  ;;  %v15258_v23 = vld [vmem:[#allocation29_spill] sm:$0xff] }
 0x1af   : > { %8324 = vmatprep.subr.bf16.mxu1 %v11490_v15  ;;  %v7200_v38 = vcombine.low %v10618_v12, %v10620_v49  ;;  %v7201_v27 = vcombine.high %v10618_v12, %v10620_v49  ;;  %v15259_v30 = vshrl.u32 %v15258_v23, 16  ;;  %v15260_v15 = vshll.u32 %v15258_v23, 16  ;;  %v15265_v23 = vld [vmem:[#allocation44_spill] sm:$0xff] }
 0x1b0   : > { %8370 = vmatpush1.bf16.msra.mxu0 %v11491_v2  ;;  %v11500_v2 = vld [vmem:[#allocation8 + $0x1f0] ss:$8 sps:$4 sm:$0xff]  }
 0x1b1   : > { %8371 = vmatprep.subr.bf16.mxu0 %v11499_v16  ;;  %v6157_v56 = vrot.slane %v15259_v30, 1  ;;  %v6158_v13 = vrot.slane %v15260_v15, 2  ;;  %v13599_v26 = vrot.slane %v7201_v27, %v12199_v51  ;;  %v11508_v16 = vld [vmem:[#allocation8 + $0x1e4] ss:$8 sps:$4 sm:$0xff]   ;;  %v7222_v12 = vrot.slane %v7200_v38, %v12199_v51  ;;  %v15264_v27 = vld [vmem:[#allocation49_spill] sm:$0xff] }
 0x1b2   : > { %8325 = vmatpush2.bf16.msra.mxu1 %v11488_v63  ;;  %v15261_v63 = vld [vmem:[#allocation36_spill] sm:$0xff]  ;;  %v15266_v30 = vcombine.low %v15264_v27, %v15265_v23 }
 0x1b3   : > { %8326 = vmatprep.subr.bf16.mxu1 %v11496_v3  ;;  %v15262_v25 = vshrl.u32 %v15261_v63, 16  ;;  %v11503_v3 = vld [vmem:[#allocation8 + $0x270] ss:$8 sps:$4 sm:$0xff]   ;;  %v7233_v50 = vcombine.high %v13596_v21, %v13599_v26  ;;  %v7232_v49 = vcombine.low %v13596_v21, %v13599_v26  ;;  %v6159_v8 = vor.u32 %v6158_v13, %v6157_v56  ;;  %v11514_v15 = vld [vmem:[#allocation8 + $0x1d4] ss:$8 sps:$4 sm:$0xff]   ;;  %v15267_v21 = vld [vmem:[#allocation31_spill] sm:$0xff] }
 0x1b4   : > { %8372 = vmatpush1.bf16.msra.mxu0 %v11497_v42  ;;  %v15263_v36 = vshll.u32 %v15261_v63, 16  ;;  %v11509_v56 = vld [vmem:[#allocation8 + $0x260] ss:$8 sps:$4 sm:$0xff]   ;;  %v7231_v13 = vcombine.high %v7208_v47, %v7222_v12  ;;  %v15268_v26 = vrot.slane %v15267_v21, 1  ;;  %v15309_v20 = vshll.u32 %v15267_v21, 16 }
 0x1b5   : > { %v6175_v57 = vrot.slane %v15262_v25, 1  ;;  %8373 = vmatprep.subr.bf16.mxu0 %v11502_v37  ;;  %v11512_v25 = vld [vmem:[#allocation8 + $0x1d0] ss:$8 sps:$4 sm:$0xff]  }
 0x1b6   : > { %8327 = vmatpush2.bf16.msra.mxu1 %v11494_v34  ;;  %v6176_v37 = vrot.slane %v15263_v36, 2  ;;  %v6301_v63 = vcombine.low %v15268_v26, %v6159_v8  ;;  %v13632_v8 = vrot.slane %v7231_v13, %v12199_v51 }
 0x1b7   : > { %8418 = vmatprep.subr.bf16.mxu1 %v11505_v53 }
 0x1b8   : > { %8374 = vmatpush2.bf16.msra.mxu0 %v11500_v2  ;;  %v6177_v53 = vor.u32 %v6176_v37, %v6175_v57  ;;  %v11517_v2 = vld [vmem:[#allocation8 + $0x254] ss:$8 sps:$4 sm:$0xff]   ;;  %v2350_v36 = vpop.f32.mrf.mxu0  ;;  %v2421_v34 = vpop.f32.mrf.mxu1  ;;  %v11515_v57 = vld [vmem:[#allocation8 + $0x250] ss:$8 sps:$4 sm:$0xff]  }
 0x1b9   : > { %8329 = vmatmul.mubr.bf16.vlgmr.msra.gmra.mxu1 %v15266_v30  ;;  %8375 = vmatprep.subr.bf16.mxu0 %v11508_v16  ;;  %v7230_v30 = vcombine.low %v7208_v47, %v7222_v12  ;;  %v2351_v16 = vadd.f32 %v2350_v36, %v13473_v22 }
 0x1ba   : > { %8419 = vmatpush1.bf16.msra.mxu1 %v11503_v3  ;;  %8338 = vmatprep.mubr.bf16.mxu1 %v7126_v59  ;;  %v11520_v3 = vld [vmem:[#allocation8 + $0x1c4] ss:$8 sps:$4 sm:$0xff]   ;;  %v4104_v59 = vld [vmem:[%s14887_s4] sm:$0x3]  ;;  %v2352_v37 = vpop.f32.mrf.mxu0  ;;  %v2423_v38 = vpop.f32.mrf.mxu1 }
 0x1bb   : > { %8420 = vmatprep.subr.bf16.mxu1 %v11511_v5  ;;  %v13635_v5 = vrot.slane %v6301_v63, %v12199_v51  ;;  %v2353_v26 = vadd.f32 %v2352_v37, %v13476_v61  ;;  %v13642_v36 = vadd.f32 %v2421_v34, %v2351_v16  ;;  %v13645_v13 = vrot.slane %v7230_v30, %v12199_v51  ;;  %v11521_v16 = vld [vmem:[#allocation8 + $0x240] ss:$8 sps:$4 sm:$0xff]  }
 0x1bc   : > { %8376 = vmatpush2.bf16.msra.mxu0 %v11506_v35  ;;  %v15270_v35 = vld [vmem:[#allocation40_spill] sm:$0xff]  ;;  %v2354_v19 = vpop.f32.mrf.mxu0  ;;  %v2425_v33 = vpop.f32.mrf.mxu1  ;;  %v13648_v63 = vrot.slane %v4104_v59, %v13467_v41  ;;  %v13651_v39 = vrot.slane %v4104_v59, %v13470_v11 }
 0x1bd   : > { %8377 = vmatprep.subr.bf16.mxu0 %v11514_v15  ;;  %15269 = vst [vmem:[#allocation61_spill] sm:$0xff] %v13635_v5  ;;  %v15271_v47 = vrot.slane %v15270_v35, 1  ;;  %v11523_v15 = vld [vmem:[#allocation8 + $0x244] ss:$8 sps:$4 sm:$0xff]   ;;  %15272 = vst [vmem:[#allocation27_spill] sm:$0xff] %v13642_v36  ;;  %v2355_v34 = vadd.f32 %v2354_v19, %v13473_v22  ;;  %v13668_v19 = vrot.slane %v7232_v49, %v12199_v51  ;;  %v15280_v49 = vshrl.u32 %v15279_v52, 16 }
 0x1be   : > { %8421 = vmatpush1.bf16.msra.mxu1 %v11509_v56  ;;  %v11518_v56 = vld [vmem:[#allocation8 + $0x1c0] ss:$8 sps:$4 sm:$0xff]   ;;  %v2356_v59 = vpop.f32.mrf.mxu0  ;;  %v2427_v37 = vpop.f32.mrf.mxu1  ;;  %v11527_v52 = vld [vmem:[#allocation8 + $0x230] ss:$8 sps:$4 sm:$0xff]   ;;  %v11541_v36 = vld [vmem:[#allocation8 + $0x214] ss:$8 sps:$4 sm:$0xff]  }
 0x1bf   : > { %v13639_v12 = vcombine.low %v15271_v47, %v6177_v53  ;;  %8422 = vmatprep.subr.bf16.mxu1 %v11517_v2  ;;  %v13654_v53 = vrot.slane %v7233_v50, %v12199_v51  ;;  %v13657_v2 = vadd.f32 %v2423_v38, %v2353_v26  ;;  %v13673_v47 = vadd.f32 %v2425_v33, %v2355_v34  ;;  %v11524_v50 = vld [vmem:[#allocation8 + $0x1b0] ss:$8 sps:$4 sm:$0xff]  }
 0x1c0   : > { %8378 = vmatpush2.bf16.msra.mxu0 %v11512_v25  ;;  %v11526_v25 = vld [vmem:[#allocation8 + $0x1b4] ss:$8 sps:$4 sm:$0xff]   ;;  %v6133_v1 = vrot.slane %v15280_v49, 1  ;;  %v6134_v38 = vrot.slane %v15281_v17, 2 }
 0x1c1   : > { %15273 = vst [vmem:[#allocation47_spill] sm:$0xff] %v13654_v53  ;;  %8379 = vmatprep.subr.bf16.mxu0 %v11520_v3  ;;  %15274 = vst [vmem:[#allocation56_spill] sm:$0xff] %v13657_v2  ;;  %8339 = vmatmul.mubr.bf16.gmra.mxu1 %v7122_v4  ;;  %v11529_v4 = vld [vmem:[#allocation8 + $0x234] ss:$8 sps:$4 sm:$0xff]   ;;  %v2357_v3 = vadd.f32 %v2356_v59, %v13476_v61  ;;  %v11533_v2 = vld [vmem:[#allocation8 + $0x220] ss:$8 sps:$4 sm:$0xff]  }
 0x1c2   : > { %8423 = vmatpush1.bf16.msra.mxu1 %v11515_v57  ;;  %8348 = vmatprep.mubr.bf16.mxu1 %v13632_v8  ;;  %15275 = vst [vmem:[#allocation45_spill] sm:$0xff] %v13673_v47  ;;  %v15276_v57 = vld [vmem:[#allocation17_spill] sm:$0xff]  ;;  %v6135_v17 = vor.u32 %v6134_v38, %v6133_v1 }
 0x1c3   : > { %8424 = vmatprep.subr.bf16.mxu1 %v11523_v15  ;;  %v15277_v26 = vshrl.u32 %v15276_v57, 16  ;;  %v15278_v42 = vshll.u32 %v15276_v57, 16  ;;  %v15282_v15 = vld [vmem:[#allocation19_spill] sm:$0xff]  ;;  %v13687_v59 = vadd.f32 %v2427_v37, %v2357_v3  ;;  %v15289_v47 = vld [vmem:[#allocation21_spill] sm:$0xff] }
 0x1c4   : > { %8380 = vmatpush2.bf16.msra.mxu0 %v11518_v56  ;;  %v15283_v11 = vshrl.u32 %v15282_v15, 16  ;;  %v15284_v33 = vshll.u32 %v15282_v15, 16  ;;  %v11535_v37 = vld [vmem:[#allocation8 + $0x224] ss:$8 sps:$4 sm:$0xff]  }
 0x1c5   : > { %v6130_v24 = vrot.slane %v15277_v26, 1  ;;  %v6131_v30 = vrot.slane %v15278_v42, 2  ;;  %8381 = vmatprep.subr.bf16.mxu0 %v11526_v25  ;;  %15285 = vst [vmem:[#allocation38_spill] sm:$0xff] %v13687_v59  ;;  %v11532_v26 = vld [vmem:[#allocation8 + $0x1a4] ss:$8 sps:$4 sm:$0xff]   ;;  %v15286_v42 = vld [vmem:[#allocation20_spill] sm:$0xff] }
 0x1c6   : > { %v6136_v41 = vrot.slane %v15283_v11, 1  ;;  %v6137_v34 = vrot.slane %v15284_v33, 2  ;;  %v15287_v56 = vshrl.u32 %v15286_v42, 16  ;;  %v15288_v60 = vshll.u32 %v15286_v42, 16  ;;  %8425 = vmatpush1.bf16.msra.mxu1 %v11521_v16 }
 0x1c7   : > { %v6132_v57 = vor.u32 %v6131_v30, %v6130_v24  ;;  %v15290_v11 = vshrl.u32 %v15289_v47, 16  ;;  %v15291_v33 = vshll.u32 %v15289_v47, 16  ;;  %8426 = vmatprep.subr.bf16.mxu1 %v11529_v4  ;;  %v15292_v24 = vld [vmem:[#allocation22_spill] sm:$0xff]  ;;  %v15298_v47 = vld [vmem:[#allocation24_spill] sm:$0xff] }
 0x1c8   : > { %v6139_v58 = vrot.slane %v15287_v56, 1  ;;  %v6140_v49 = vrot.slane %v15288_v60, 2  ;;  %v6138_v31 = vor.u32 %v6137_v34, %v6136_v41  ;;  %v15293_v30 = vshrl.u32 %v15292_v24, 16  ;;  %v15295_v60 = vld [vmem:[#allocation23_spill] sm:$0xff]  ;;  %8382 = vmatpush2.bf16.msra.mxu0 %v11524_v50 }
 0x1c9   : > { %v6142_v53 = vrot.slane %v15290_v11, 1  ;;  %v6143_v25 = vrot.slane %v15291_v33, 2  ;;  %v15294_v56 = vshll.u32 %v15292_v24, 16  ;;  %v15296_v16 = vshrl.u32 %v15295_v60, 16  ;;  %v11530_v41 = vld [vmem:[#allocation8 + $0x1a0] ss:$8 sps:$4 sm:$0xff]   ;;  %8383 = vmatprep.subr.bf16.mxu0 %v11532_v26  ;;  %8349 = vmatmul.mubr.bf16.gmra.mxu1 %v13645_v13 }
 0x1ca   : > { %v6141_v3 = vor.u32 %v6140_v49, %v6139_v58  ;;  %v6145_v59 = vrot.slane %v15293_v30, 1  ;;  %v15297_v38 = vshll.u32 %v15295_v60, 16  ;;  %v15299_v11 = vshrl.u32 %v15298_v47, 16  ;;  %v11538_v33 = vld [vmem:[#allocation8 + $0x194] ss:$8 sps:$4 sm:$0xff]   ;;  %8427 = vmatpush1.bf16.msra.mxu1 %v11527_v52 }
 0x1cb   : > { %v6146_v42 = vrot.slane %v15294_v56, 2  ;;  %v6148_v46 = vrot.slane %v15296_v16, 1  ;;  %v6144_v1 = vor.u32 %v6143_v25, %v6142_v53  ;;  %v15300_v58 = vshll.u32 %v15298_v47, 16  ;;  %v15301_v56 = vld [vmem:[#allocation25_spill] sm:$0xff]  ;;  %v15304_v25 = vld [vmem:[#allocation30_spill] sm:$0xff]  ;;  %8428 = vmatprep.subr.bf16.mxu1 %v11535_v37 }
 0x1cc   : > { %v6149_v34 = vrot.slane %v15297_v38, 2  ;;  %v6151_v4 = vrot.slane %v15299_v11, 1  ;;  %v15302_v10 = vshrl.u32 %v15301_v56, 16  ;;  %v15303_v50 = vshll.u32 %v15301_v56, 16  ;;  %8384 = vmatpush2.bf16.msra.mxu0 %v11530_v41  ;;  %v11544_v37 = vld [vmem:[#allocation8 + $0x184] ss:$8 sps:$4 sm:$0xff]   ;;  %v2360_v41 = vpop.f32.mrf.mxu0 }
 0x1cd   : > { %v6152_v49 = vrot.slane %v15300_v58, 2  ;;  %v6147_v30 = vor.u32 %v6146_v42, %v6145_v59  ;;  %v15305_v60 = vshrl.u32 %v15304_v25, 16  ;;  %v15306_v47 = vcombine.low %v13515_v0, %v13518_v48  ;;  %8385 = vmatprep.subr.bf16.mxu0 %v11538_v33 }
 0x1ce   : > { %v6154_v16 = vrot.slane %v15302_v10, 1  ;;  %v6155_v53 = vrot.slane %v15303_v50, 2  ;;  %v6150_v26 = vor.u32 %v6149_v34, %v6148_v46  ;;  %v15307_v58 = vshll.u32 %v15304_v25, 16  ;;  %8429 = vmatpush1.bf16.msra.mxu1 %v11533_v2 }
 0x1cf   : > { %v6160_v38 = vrot.slane %v15305_v60, 1  ;;  %8450 = vmatprep.mubr.bf16.mxu1 %v15306_v47  ;;  %v6153_v11 = vor.u32 %v6152_v49, %v6151_v4  ;;  %v15308_v42 = vshrl.u32 %v15267_v21, 16  ;;  %v6164_v60 = vrot.slane %v15309_v20, 2  ;;  %v11536_v47 = vld [vmem:[#allocation8 + $0x190] ss:$8 sps:$4 sm:$0xff]   ;;  %8430 = vmatprep.subr.bf16.mxu1 %v11541_v36 }
 0x1d0   : > { %v6161_v59 = vrot.slane %v15307_v58, 2  ;;  %v6156_v50 = vor.u32 %v6155_v53, %v6154_v16  ;;  %v15310_v52 = vrot.slane %v15282_v15, 1  ;;  %v6203_v32 = vcombine.low %v6135_v17, %v6138_v31  ;;  %v11539_v31 = vld [vmem:[#allocation8 + $0x210] ss:$8 sps:$4 sm:$0xff]   ;;  %8386 = vmatpush2.bf16.msra.mxu0 %v11536_v47  ;;  %v11553_v36 = vld [vmem:[#allocation8 + $0x374] ss:$8 sps:$4 sm:$0xff]  }
 0x1d1   : > { %v6163_v10 = vrot.slane %v15308_v42, 1  ;;  %v15311_v34 = vrot.slane %v15292_v24, 1  ;;  %v6236_v49 = vcombine.low %v6144_v1, %v6147_v30  ;;  %v15312_v25 = vrot.slane %v15301_v56, 1  ;;  %v11547_v1 = vld [vmem:[#allocation8 + $0x204] ss:$8 sps:$4 sm:$0xff]   ;;  %8387 = vmatprep.subr.bf16.mxu0 %v11544_v37 }
 0x1d2   : > { %v6202_v40 = vcombine.low %v15310_v52, %v6132_v57  ;;  %v6162_v46 = vor.u32 %v6161_v59, %v6160_v38  ;;  %v6217_v20 = vrot.slane %v6203_v32, %v12199_v51  ;;  %v6269_v15 = vcombine.low %v6153_v11, %v6156_v50  ;;  %v11542_v56 = vld [vmem:[#allocation8 + $0x180] ss:$8 sps:$4 sm:$0xff]   ;;  %v2362_v11 = vpop.f32.mrf.mxu0  ;;  %v2431_v59 = vpop.f32.mrf.mxu1  ;;  %8431 = vmatpush1.bf16.msra.mxu1 %v11539_v31 }
 0x1d3   : > { %v6235_v4 = vcombine.low %v15311_v34, %v6141_v3  ;;  %v6268_v58 = vcombine.low %v15312_v25, %v6150_v26  ;;  %v6165_v16 = vor.u32 %v6164_v60, %v6163_v10  ;;  %v6250_v3 = vrot.slane %v6236_v49, %v12199_v51  ;;  %v15314_v60 = vld [vmem:[#allocation32_spill] sm:$0xff]  ;;  %8432 = vmatprep.subr.bf16.mxu1 %v11547_v1 }
 0x1d4   : > { %v6210_v21 = vrot.slane %v6202_v40, %v12199_v51  ;;  %v6283_v40 = vrot.slane %v6269_v15, %v12199_v51  ;;  %v2361_v2 = vadd.f32 %v2360_v41, %v13473_v22  ;;  %v13742_v26 = vrot.slane %v13639_v12, %v12199_v51  ;;  %v11545_v12 = vld [vmem:[#allocation8 + $0x200] ss:$8 sps:$4 sm:$0xff]   ;;  %v2364_v49 = vpop.f32.mrf.mxu0  ;;  %v2433_v25 = vpop.f32.mrf.mxu1  ;;  %8388 = vmatpush2.bf16.msra.mxu0 %v11542_v56  ;;  %v11551_v15 = vld [vmem:[#allocation8 + $0x370] ss:$8 sps:$4 sm:$0xff]  }
 0x1d5   : > { %v6243_v17 = vrot.slane %v6235_v4, %v12199_v51  ;;  %v6276_v24 = vrot.slane %v6268_v58, %v12199_v51  ;;  %v6302_v32 = vcombine.low %v6162_v46, %v6165_v16  ;;  %v15315_v52 = vshrl.u32 %v15314_v60, 16  ;;  %v11550_v58 = vld [vmem:[#allocation8 + $0x2f4] ss:$8 sps:$4 sm:$0xff]   ;;  %8479 = vmatprep.subr.bf16.mxu0 %v11553_v36  ;;  %v15327_v49 = vld [vmem:[#allocation34_spill] sm:$0xff] }
 0x1d6   : > { %v6218_v33 = vcombine.low %v6210_v21, %v6217_v20  ;;  %v6219_v30 = vcombine.high %v6210_v21, %v6217_v20  ;;  %15313 = vst [vmem:[#allocation35_spill] sm:$0xff] %v13742_v26  ;;  %v2363_v47 = vadd.f32 %v2362_v11, %v13476_v61  ;;  %v13751_v46 = vadd.f32 %v2431_v59, %v2361_v2  ;;  %v2365_v41 = vpop.f32.mrf.mxu0  ;;  %v15320_v59 = vld [vmem:[#allocation33_spill] sm:$0xff] }
 0x1d7   : > { %v6251_v53 = vcombine.low %v6243_v17, %v6250_v3  ;;  %v6252_v38 = vcombine.high %v6243_v17, %v6250_v3  ;;  %v6284_v50 = vcombine.low %v6276_v24, %v6283_v40  ;;  %v13748_v22 = vrot.slane %v15315_v52, 1  ;;  %8433 = vmatpush1.bf16.msra.mxu1 %v11545_v12 }
 0x1d8   : > { %v6226_v42 = vrot.slane %v6218_v33, %v12199_v51  ;;  %v6233_v10 = vrot.slane %v6219_v30, %v12199_v51  ;;  %v6285_v16 = vcombine.high %v6276_v24, %v6283_v40  ;;  %v13757_v20 = vrot.slane %v6302_v32, %v12199_v51  ;;  %v11559_v33 = vld [vmem:[#allocation8 + $0x364] ss:$8 sps:$4 sm:$0xff]   ;;  %v2435_v30 = vpop.f32.mrf.mxu1  ;;  %v11548_v32 = vld [vmem:[#allocation8 + $0x2f0] ss:$8 sps:$4 sm:$0xff]   ;;  %v2472_v36 = vpop.f32.mrf.mxu0  ;;  %8434 = vmatprep.subr.bf16.mxu1 %v11550_v58 }
 0x1d9   : > { %15316 = vst [vmem:[#allocation28_spill] sm:$0xff] %v13748_v22  ;;  %v6259_v34 = vrot.slane %v6251_v53, %v12199_v51  ;;  %v6266_v4 = vrot.slane %v6252_v38, %v12199_v51  ;;  %v6292_v21 = vrot.slane %v6284_v50, %v12199_v51  ;;  %v13759_v61 = vadd.f32 %v2433_v25, %v2363_v47  ;;  %v11565_v30 = vld [vmem:[#allocation8 + $0x354] ss:$8 sps:$4 sm:$0xff]  }
 0x1da   : > { %v6234_v37 = vcombine.high %v6226_v42, %v6226_v42  ;;  %15317 = vst [vmem:[#allocation46_spill] sm:$0xff] %v13757_v20  ;;  %v6317_v24 = vcombine.low %v13635_v5, %v13757_v20  ;;  %v6926_v2 = vcombine.low %v6226_v42, %v6233_v10  ;;  %v15318_v56 = vshll.u32 %v15314_v60, 16  ;;  %v2436_v42 = vpop.f32.mrf.mxu1  ;;  %v2474_v41 = vpop.f32.mrf.mxu0 }
 0x1db   : > { %v6267_v31 = vcombine.high %v6259_v34, %v6259_v34  ;;  %v6479_v17 = vunpack.i.h.s16 %v6259_v34  ;;  %v6483_v3 = vunpack.i.h.s16 %v6266_v4  ;;  %v6300_v1 = vcombine.high %v6292_v21, %v6292_v21  ;;  %8435 = vmatpush2.bf16.msra.mxu1 %v11548_v32 }
 0x1dc   : > { %v10599_v40 = vpack.i.b16 %v6259_v34, %v6234_v37  ;;  %v13765_v11 = vrot.slane %v15318_v56, 2  ;;  %v15321_v50 = vshrl.u32 %v15320_v59, 16  ;;  %v15323_v47 = vcombine.high %v15264_v27, %v15265_v23  ;;  %v11556_v34 = vld [vmem:[#allocation8 + $0x2e4] ss:$8 sps:$4 sm:$0xff]   ;;  %v11557_v27 = vld [vmem:[#allocation8 + $0x360] ss:$8 sps:$4 sm:$0xff]  }
 0x1dd   : > { %v10601_v53 = vpack.i.b16 %v6266_v4, %v6479_v17  ;;  %v10603_v38 = vpack.i.b16 %v6267_v31, %v6483_v3  ;;  %v6299_v10 = vrot.slane %v6285_v16, %v12199_v51  ;;  %v13776_v12 = vrot.slane %v6317_v24, %v12199_v51  ;;  %v5452_v24 = vpop.f32.mrf.mxu1  ;;  %8436 = vmatprep.subr.bf16.mxu1 %v11556_v34 }
 0x1de   : > { %15319 = vst [vmem:[#allocation26_spill] sm:$0xff] %v13765_v11  ;;  %v13769_v52 = vrot.slane %v15321_v50, 1  ;;  %8390 = vmatmul.mubr.bf16.vlgmr.msra.gmra.mxu0 %v15323_v47  ;;  %v15325_v60 = vshll.u32 %v15320_v59, 16  ;;  %v15328_v25 = vshrl.u32 %v15327_v49, 16  ;;  %v2473_v31 = vadd.f32 %v2472_v36, %v13483_v28  ;;  %v11562_v36 = vld [vmem:[#allocation8 + $0x2d4] ss:$8 sps:$4 sm:$0xff]  }
 0x1df   : > { %15324 = vst [vmem:[#allocation53_spill] sm:$0xff] %v13776_v12  ;;  %8480 = vmatpush1.bf16.msra.mxu0 %v11551_v15  ;;  %v15330_v23 = vcombine.high %v13444_v43, %v13447_v6  ;;  %v6927_v58 = vcombine.low %v10599_v40, %v10601_v53  ;;  %v6928_v16 = vcombine.low %v10603_v38, %v6292_v21  ;;  %v15331_v17 = vshll.u32 %v15327_v49, 16  ;;  %v15333_v15 = vld [vmem:[#allocation37_spill] sm:$0xff]  ;;  %v11554_v40 = vld [vmem:[#allocation8 + $0x2e0] ss:$8 sps:$4 sm:$0xff]   ;;  %v2476_v38 = vpop.f32.mrf.mxu0  ;;  %v5454_v42 = vpop.f32.mrf.mxu1 }
 0x1e0   : > { %15322 = vst [vmem:[#allocation48_spill] sm:$0xff] %v13769_v52  ;;  %v13780_v4 = vrot.slane %v15325_v60, 2  ;;  %v13784_v37 = vrot.slane %v15328_v25, 1  ;;  %8481 = vmatprep.subr.bf16.mxu0 %v11559_v33  ;;  %v10605_v56 = vpack.i.b16 %v13776_v12, %v6300_v1  ;;  %v13796_v28 = vrot.slane %v6926_v2, %v12199_v51  ;;  %8437 = vmatpush2.bf16.msra.mxu1 %v11554_v40  ;;  %v11620_v12 = vld [vmem:[#allocation8 + $0x3b0] ss:$8 sps:$4 sm:$0xff]  }
 0x1e1   : > { %8399 = vmatprep.mubr.bf16.mxu0 %v15330_v23  ;;  %v13792_v3 = vrot.slane %v15331_v17, 2  ;;  %v15334_v59 = vshrl.u32 %v15333_v15, 16  ;;  %v15336_v43 = vshll.u32 %v15333_v15, 16  ;;  %v2475_v21 = vadd.f32 %v2474_v41, %v13486_v18  ;;  %v11563_v23 = vld [vmem:[#allocation8 + $0x350] ss:$8 sps:$4 sm:$0xff]   ;;  %8438 = vmatprep.subr.bf16.mxu1 %v11562_v36 }
 0x1e2   : > { %15326 = vst [vmem:[#allocation29_spill] sm:$0xff] %v13780_v4  ;;  %15329 = vst [vmem:[#allocation36_spill] sm:$0xff] %v13784_v37  ;;  %v6943_v33 = vrot.slane %v6927_v58, %v12199_v51  ;;  %v2509_v53 = vmax.f32 %v2473_v31, 0.0  ;;  %v13813_v47 = vadd.f32 %v5452_v24, %v13648_v63  ;;  %v6929_v32 = vcombine.low %v6299_v10, %v10605_v56  ;;  %v2478_v31 = vpop.f32.mrf.mxu0  ;;  %v11571_v17 = vld [vmem:[#allocation8 + $0x344] ss:$8 sps:$4 sm:$0xff]   ;;  %v5456_v10 = vpop.f32.mrf.mxu1 }
 0x1e3   : > { %15332 = vst [vmem:[#allocation49_spill] sm:$0xff] %v13792_v3  ;;  %v13800_v50 = vrot.slane %v15334_v59, 1  ;;  %v13804_v6 = vrot.slane %v15336_v43, 2  ;;  %v13816_v18 = vrot.slane %v6928_v16, %v12199_v51  ;;  %v2510_v60 = vmax.f32 %v2475_v21, 0.0  ;;  %8482 = vmatpush1.bf16.msra.mxu0 %v11557_v27  ;;  %v11560_v59 = vld [vmem:[#allocation8 + $0x2d0] ss:$8 sps:$4 sm:$0xff]  }
 0x1e4   : > { %v2477_v25 = vadd.f32 %v2476_v38, %v13489_v7  ;;  %8483 = vmatprep.subr.bf16.mxu0 %v11565_v30  ;;  %v13824_v41 = vadd.f32 %v5454_v42, %v13651_v39  ;;  %v13827_v16 = vrot.slane %v6929_v32, %v12199_v51  ;;  %v6958_v7 = vcombine.low %v13796_v28, %v6943_v33  ;;  %v2482_v38 = vpop.f32.mrf.mxu0  ;;  %v11568_v42 = vld [vmem:[#allocation8 + $0x2c4] ss:$8 sps:$4 sm:$0xff]   ;;  %v5458_v34 = vpop.f32.mrf.mxu1 }
 0x1e5   : > { %15335 = vst [vmem:[#allocation44_spill] sm:$0xff] %v13800_v50  ;;  %15337 = vst [vmem:[#allocation31_spill] sm:$0xff] %v13804_v6  ;;  %v6959_v27 = vcombine.high %v13796_v28, %v6943_v33  ;;  %v2537_v24 = vcombine.low %v2509_v53, %v2510_v60  ;;  %v2538_v56 = vcombine.high %v2509_v53, %v2510_v60  ;;  %v15338_v30 = vshrl.u32 %v15270_v35, 16 }
 0x1e6   : > { %v2479_v15 = vadd.f32 %v2478_v31, %v13491_v14  ;;  %v2511_v21 = vmax.f32 %v2477_v25, 0.0  ;;  %v13837_v32 = vadd.f32 %v5456_v10, %v13648_v63  ;;  %v15339_v28 = vcombine.high %v13450_v44, %v13453_v55  ;;  %v11569_v31 = vld [vmem:[#allocation8 + $0x340] ss:$8 sps:$4 sm:$0xff]   ;;  %v2484_v55 = vpop.f32.mrf.mxu0  ;;  %v11577_v10 = vld [vmem:[#allocation8 + $0x334] ss:$8 sps:$4 sm:$0xff]   ;;  %8439 = vmatpush2.bf16.msra.mxu1 %v11560_v59 }
 0x1e7   : > { %v13834_v43 = vrot.slane %v15338_v30, 1  ;;  %v6961_v14 = vcombine.high %v13816_v18, %v13827_v16  ;;  %v15340_v40 = vshll.u32 %v15270_v35, 16  ;;  %v2545_v53 = vrot.slane %v2537_v24, %v12199_v51  ;;  %8484 = vmatpush1.bf16.msra.mxu0 %v11563_v23  ;;  %v11566_v30 = vld [vmem:[#allocation8 + $0x2c0] ss:$8 sps:$4 sm:$0xff]   ;;  %8440 = vmatprep.subr.bf16.mxu1 %v11568_v42 }
 0x1e8   : > { %8400 = vmatmul.mubr.bf16.gmra.mxu0 %v15339_v28  ;;  %v2552_v36 = vrot.slane %v2538_v56, %v12199_v51  ;;  %v2512_v60 = vmax.f32 %v2479_v15, 0.0  ;;  %v13851_v25 = vadd.f32 %v2482_v38, %v13553_v9  ;;  %v15341_v44 = vcombine.high %v13632_v8, %v13632_v8  ;;  %8485 = vmatprep.subr.bf16.mxu0 %v11571_v17 }
 0x1e9   : > { %v13846_v33 = vrot.slane %v15340_v40, 2  ;;  %v13857_v35 = vadd.f32 %v5458_v34, %v13651_v39  ;;  %v13862_v56 = vrot.slane %v6959_v27, %v12199_v51  ;;  %v13865_v9 = vrot.slane %v6961_v14, %v12199_v51  ;;  %v2486_v27 = vpop.f32.mrf.mxu0  ;;  %v11574_v14 = vld [vmem:[#allocation8 + $0x2b4] ss:$8 sps:$4 sm:$0xff]  }
 0x1ea   : > { %8409 = vmatprep.mubr.bf16.mxu0 %v15341_v44  ;;  %v2553_v23 = vcombine.high %v2545_v53, %v2545_v53  ;;  %v2554_v15 = vcombine.high %v2552_v36, %v2552_v36  ;;  %v2568_v8 = vrot.slane %v2552_v36, %v12199_v51  ;;  %v13869_v17 = vrot.slane %v6958_v7, %v12199_v51  ;;  %v11575_v7 = vld [vmem:[#allocation8 + $0x330] ss:$8 sps:$4 sm:$0xff]  }
 0x1eb   : > { %15342 = vst [vmem:[#allocation40_spill] sm:$0xff] %v13862_v56  ;;  %15343 = vst [vmem:[#allocation17_spill] sm:$0xff] %v13865_v9  ;;  %v2561_v34 = vrot.slane %v2545_v53, %v12199_v51  ;;  %v2587_v38 = vcombine.low %v2511_v21, %v2512_v60  ;;  %v2588_v28 = vcombine.high %v2511_v21, %v2512_v60  ;;  %8486 = vmatpush1.bf16.msra.mxu0 %v11569_v31  ;;  %v13884_v60 = vpop.f32.mrf.mxu0 }
 0x1ec   : > { %15344 = vst [vmem:[#allocation18_spill] sm:$0xff] %v13869_v17  ;;  %v13873_v40 = vadd.f32 %v2484_v55, %v13565_v29  ;;  %v2575_v44 = vrot.slane %v2553_v23, %v12199_v51  ;;  %v2582_v2 = vrot.slane %v2554_v15, %v12199_v51  ;;  %v2584_v36 = vcombine.high %v2568_v8, %v2568_v8  ;;  %v11583_v55 = vld [vmem:[#allocation8 + $0x324] ss:$8 sps:$4 sm:$0xff]  }
 0x1ed   : > { %v13878_v59 = vadd.f32 %v2486_v27, %v13580_v62  ;;  %v2595_v53 = vrot.slane %v2587_v38, %v12199_v51  ;;  %v2602_v21 = vrot.slane %v2588_v28, %v12199_v51  ;;  %v2513_v29 = vmax.f32 %v13851_v25, 0.0  ;;  %8487 = vmatprep.subr.bf16.mxu0 %v11577_v10  ;;  %8441 = vmatpush2.bf16.msra.mxu1 %v11566_v30  ;;  %v11572_v62 = vld [vmem:[#allocation8 + $0x2b0] ss:$8 sps:$4 sm:$0xff]   ;;  %v13889_v25 = vpop.f32.mrf.mxu0  ;;  %v11628_v17 = vld [vmem:[#allocation8 + $0x3a4] ss:$8 sps:$4 sm:$0xff]  }
 0x1ee   : > { %v2514_v42 = vmax.f32 %v13873_v40, 0.0  ;;  %v2887_v23 = vcombine.low %v2561_v34, %v2575_v44  ;;  %v10424_v15 = vcombine.high %v2561_v34, %v2575_v44  ;;  %v2889_v58 = vcombine.low %v2568_v8, %v2582_v2  ;;  %8442 = vmatprep.subr.bf16.mxu1 %v11574_v14  ;;  %v11580_v40 = vld [vmem:[#allocation8 + $0x2a4] ss:$8 sps:$4 sm:$0xff]   ;;  %v11581_v34 = vld [vmem:[#allocation8 + $0x320] ss:$8 sps:$4 sm:$0xff]  }
 0x1ef   : > { %v2586_v27 = vcombine.high %v2582_v2, %v2582_v2  ;;  %v2603_v38 = vcombine.high %v2595_v53, %v2595_v53  ;;  %v2604_v1 = vcombine.high %v2602_v21, %v2602_v21  ;;  %v2611_v28 = vrot.slane %v2595_v53, %v12199_v51  ;;  %8488 = vmatpush1.bf16.msra.mxu0 %v11575_v7  ;;  %v13899_v31 = vpop.f32.mrf.mxu0  ;;  %v11589_v14 = vld [vmem:[#allocation8 + $0x314] ss:$8 sps:$4 sm:$0xff]  }
 0x1f0   : > { %v2896_v10 = vrot.slane %v2887_v23, %v12199_v51  ;;  %v2903_v24 = vrot.slane %v10424_v15, %v12199_v51  ;;  %v2910_v8 = vrot.slane %v2889_v58, %v12199_v51  ;;  %v2917_v30 = vrot.slane %v2584_v36, %v12199_v51  ;;  %8489 = vmatprep.subr.bf16.mxu0 %v11583_v55  ;;  %v11578_v58 = vld [vmem:[#allocation8 + $0x2a0] ss:$8 sps:$4 sm:$0xff]  }
 0x1f1   : > { %v2625_v2 = vrot.slane %v2603_v38, %v12199_v51  ;;  %v13897_v44 = vrot.slane %v2604_v1, %v12199_v51  ;;  %v2633_v53 = vcombine.high %v2611_v28, %v2611_v28  ;;  %v2952_v57 = vcombine.low %v2586_v27, %v2611_v28  ;;  %8443 = vmatpush2.bf16.msra.mxu1 %v11572_v62  ;;  %v13905_v6 = vpop.f32.mrf.mxu0  ;;  %v11586_v27 = vld [vmem:[#allocation8 + $0x294] ss:$8 sps:$4 sm:$0xff]  }
 0x1f2   : > { %v2918_v23 = vcombine.low %v2896_v10, %v2903_v24  ;;  %v2919_v26 = vcombine.high %v2896_v10, %v2903_v24  ;;  %v2920_v15 = vcombine.low %v2910_v8, %v2917_v30  ;;  %v2921_v50 = vcombine.high %v2910_v8, %v2917_v30  ;;  %8444 = vmatprep.subr.bf16.mxu1 %v11580_v40  ;;  %v11587_v10 = vld [vmem:[#allocation8 + $0x310] ss:$8 sps:$4 sm:$0xff]  }
 0x1f3   : > { %v13902_v36 = vrot.slane %v2602_v21, %v12199_v51  ;;  %v2635_v7 = vcombine.high %v2625_v2, %v2625_v2  ;;  %v2953_v38 = vcombine.low %v2625_v2, %v2633_v53  ;;  %v2961_v1 = vrot.slane %v2952_v57, %v12199_v51  ;;  %8490 = vmatpush1.bf16.msra.mxu0 %v11581_v34  ;;  %v13915_v40 = vpop.f32.mrf.mxu0  ;;  %v11595_v2 = vld [vmem:[#allocation8 + $0x304] ss:$8 sps:$4 sm:$0xff]   ;;  %v15346_v34 = vld [vmem:[#allocation41_spill] sm:$0xff] }
 0x1f4   : > { %v2928_v55 = vrot.slane %v2918_v23, %v12199_v51  ;;  %v2935_v28 = vrot.slane %v2919_v26, %v12199_v51  ;;  %v2942_v24 = vrot.slane %v2920_v15, %v12199_v51  ;;  %v2949_v62 = vrot.slane %v2921_v50, %v12199_v51  ;;  %8491 = vmatprep.subr.bf16.mxu0 %v11589_v14  ;;  %v11584_v15 = vld [vmem:[#allocation8 + $0x290] ss:$8 sps:$4 sm:$0xff]  }
 0x1f5   : > { %v2954_v21 = vcombine.low %v2635_v7, %v13902_v36  ;;  %v2968_v8 = vrot.slane %v2953_v38, %v12199_v51  ;;  %v2982_v57 = vrot.slane %v13897_v44, %v12199_v51  ;;  %v2637_v30 = vcombine.low %v2513_v29, %v2514_v42  ;;  %8445 = vmatpush2.bf16.msra.mxu1 %v11578_v58 }
 0x1f6   : > { %v2950_v53 = vcombine.low %v2928_v55, %v2942_v24  ;;  %v2951_v26 = vcombine.low %v2935_v28, %v2949_v62  ;;  %v2638_v23 = vcombine.high %v2513_v29, %v2514_v42  ;;  %v15345_v50 = vcombine.high %v13645_v13, %v13645_v13  ;;  %v13927_v55 = vpop.f32.mrf.mxu0  ;;  %8446 = vmatprep.subr.bf16.mxu1 %v11586_v27  ;;  %v11592_v29 = vld [vmem:[#allocation8 + $0x284] ss:$8 sps:$4 sm:$0xff]   ;;  %v11593_v24 = vld [vmem:[#allocation8 + $0x300] ss:$8 sps:$4 sm:$0xff]  }
 0x1f7   : > { %v15347_v7 = vshrl.u32 %v15346_v34, 16  ;;  %v2975_v52 = vrot.slane %v2954_v21, %v12199_v51  ;;  %v2983_v4 = vcombine.low %v2961_v1, %v2968_v8  ;;  %v2984_v37 = vcombine.high %v2961_v1, %v2968_v8  ;;  %8492 = vmatpush1.bf16.msra.mxu0 %v11587_v10  ;;  %v11598_v8 = vld [vmem:[#allocation8 + $0x3f4] ss:$8 sps:$4 sm:$0xff]   ;;  %v11590_v10 = vld [vmem:[#allocation8 + $0x280] ss:$8 sps:$4 sm:$0xff]  }
 0x1f8   : > { %8410 = vmatmul.mubr.bf16.gmra.mxu0 %v15345_v50  ;;  %v10425_v14 = vcombine.high %v13902_v36, %v13897_v44  ;;  %v3424_v42 = vsel %vm3423_vm0, %v2950_v53, -inf  ;;  %v3431_v13 = vsel %vm3423_vm0, %v2951_v26, -inf  ;;  %v2645_v58 = vrot.slane %v2637_v30, %v12199_v51  ;;  %v13936_v27 = vpop.f32.mrf.mxu0  ;;  %8493 = vmatprep.subr.bf16.mxu0 %v11595_v2 }
 0x1f9   : > { %v13922_v38 = vrot.slane %v15347_v7, 1  ;;  %v2652_v28 = vrot.slane %v2638_v23, %v12199_v51  ;;  %v15349_v1 = vcombine.high %v13515_v0, %v13518_v48  ;;  %v3425_v62 = vrot.slane %v3424_v42, 4  ;;  %8447 = vmatpush2.bf16.msra.mxu1 %v11584_v15  ;;  %v11596_v15 = vld [vmem:[#allocation8 + $0x3f0] ss:$8 sps:$4 sm:$0xff]  }
 0x1fa   : > { %v3432_v44 = vrot.slane %v3431_v13, 4  ;;  %v2985_v36 = vcombine.low %v2975_v52, %v2982_v57  ;;  %v2986_v21 = vcombine.high %v2975_v52, %v2982_v57  ;;  %v2993_v53 = vrot.slane %v2983_v4, %v12199_v51  ;;  %8448 = vmatprep.subr.bf16.mxu1 %v11592_v29  ;;  %v11601_v52 = vld [vmem:[#allocation8 + $0x474] ss:$8 sps:$4 sm:$0xff]   ;;  %v2506_v57 = vpop.f32.mrf.mxu0 }
 0x1fb   : > { %15348 = vst [vmem:[#allocation19_spill] sm:$0xff] %v13922_v38  ;;  %8511 = vmatprep.mubr.bf16.mxu0 %v15349_v1  ;;  %v3000_v30 = vrot.slane %v2984_v37, %v12199_v51  ;;  %v2653_v26 = vcombine.high %v2645_v58, %v2645_v58  ;;  %v2654_v23 = vcombine.high %v2652_v28, %v2652_v28 }
 0x1fc   : > { %v3426_v50 = vmax.f32 %v3424_v42, %v3425_v62  ;;  %v3433_v7 = vmax.f32 %v3431_v13, %v3432_v44  ;;  %v3007_v0 = vrot.slane %v2985_v36, %v12199_v51  ;;  %v3014_v48 = vrot.slane %v2986_v21, %v12199_v51  ;;  %8494 = vmatpush1.bf16.msra.mxu0 %v11593_v24  ;;  %v11604_v36 = vld [vmem:[#allocation8 + $0x3e4] ss:$8 sps:$4 sm:$0xff]   ;;  %v2507_v29 = vpop.f32.mrf.mxu0 }
 0x1fd   : > { %v2661_v2 = vrot.slane %v2645_v58, %v12199_v51  ;;  %v2668_v1 = vrot.slane %v2652_v28, %v12199_v51  ;;  %v2675_v4 = vrot.slane %v2653_v26, %v12199_v51  ;;  %v13946_v37 = vrot.slane %v2654_v23, %v12199_v51  ;;  %8495 = vmatprep.subr.bf16.mxu0 %v11598_v8  ;;  %v11599_v28 = vld [vmem:[#allocation8 + $0x470] ss:$8 sps:$4 sm:$0xff]   ;;  %v11605_v29 = vld [vmem:[#allocation8 + $0x460] ss:$8 sps:$4 sm:$0xff]  }
 0x1fe   : > { %v3427_v42 = vrot.slane %v3426_v50, 2  ;;  %v3434_v13 = vrot.slane %v3433_v7, 2  ;;  %v3015_v62 = vcombine.low %v2993_v53, %v3007_v0  ;;  %v3016_v44 = vcombine.low %v3000_v30, %v3014_v48  ;;  %8449 = vmatpush2.bf16.msra.mxu1 %v11590_v10  ;;  %v11607_v53 = vld [vmem:[#allocation8 + $0x464] ss:$8 sps:$4 sm:$0xff]   ;;  %v11602_v48 = vld [vmem:[#allocation8 + $0x3e0] ss:$8 sps:$4 sm:$0xff]  }
 0x1ff   : > { %v3026_v21 = vrot.slane %v10425_v14, %v12199_v51  ;;  %v2684_v57 = vcombine.high %v2668_v1, %v2668_v1  ;;  %v3018_v58 = vcombine.low %v2661_v2, %v2675_v4  ;;  %v10426_v3 = vcombine.high %v2661_v2, %v2675_v4  ;;  %8540 = vmatprep.subr.bf16.mxu1 %v11601_v52  ;;  %v15351_v4 = vld [vmem:[#allocation50_spill] sm:$0xff] }
 0x200   : > { %v3428_v26 = vmax.f32 %v3426_v50, %v3427_v42  ;;  %v13949_v49 = vmax.f32 %v3433_v7, %v3434_v13  ;;  %v3438_v24 = vsel %vm3423_vm0, %v3015_v62, -inf  ;;  %v3445_v23 = vsel %vm3423_vm0, %v3016_v44, -inf  ;;  %8496 = vmatpush2.bf16.msra.mxu0 %v11596_v15  ;;  %v11610_v42 = vld [vmem:[#allocation8 + $0x3d4] ss:$8 sps:$4 sm:$0xff]   ;;  %v13962_v13 = vpop.f32.mrf.mxu1 }
 0x201   : > { %v3439_v30 = vrot.slane %v3438_v24, 4  ;;  %v3446_v8 = vrot.slane %v3445_v23, 4  ;;  %v3033_v0 = vrot.slane %v3018_v58, %v12199_v51  ;;  %v3040_v14 = vrot.slane %v10426_v3, %v12199_v51  ;;  %8497 = vmatprep.subr.bf16.mxu0 %v11604_v36 }
 0x202   : > { %15350 = vst [vmem:[#allocation20_spill] sm:$0xff] %v13949_v49  ;;  %v3429_v2 = vrot.slane %v3428_v26, 1  ;;  %v3047_v10 = vrot.slane %v2668_v1, %v12199_v51  ;;  %v3082_v50 = vcombine.low %v13946_v37, %v2684_v57  ;;  %v2489_v7 = vadd.f32 %v13884_v60, %v13586_v45  ;;  %v11613_v60 = vld [vmem:[#allocation8 + $0x454] ss:$8 sps:$4 sm:$0xff]   ;;  %v11619_v1 = vld [vmem:[#allocation8 + $0x444] ss:$8 sps:$4 sm:$0xff]  }
 0x203   : > { %v15352_v52 = vcombine.low %v13521_v54, %v15351_v4  ;;  %v3440_v62 = vmax.f32 %v3438_v24, %v3439_v30  ;;  %v3447_v3 = vmax.f32 %v3445_v23, %v3446_v8  ;;  %v3048_v15 = vcombine.low %v3026_v21, %v3033_v0  ;;  %v11608_v24 = vld [vmem:[#allocation8 + $0x3d0] ss:$8 sps:$4 sm:$0xff]   ;;  %v15353_v23 = vld [vmem:[#allocation51_spill] sm:$0xff] }
 0x204   : > { %v3049_v44 = vcombine.high %v3026_v21, %v3033_v0  ;;  %v3050_v57 = vcombine.low %v3040_v14, %v3047_v10  ;;  %v3051_v58 = vcombine.high %v3040_v14, %v3047_v10  ;;  %v2515_v45 = vmax.f32 %v13878_v59, 0.0  ;;  %8498 = vmatpush2.bf16.msra.mxu0 %v11602_v48  ;;  %v15354_v21 = vld [vmem:[#allocation58_spill] sm:$0xff]  ;;  %v13975_v14 = vpop.f32.mrf.mxu1 }
 0x205   : > { %8451 = vmatmul.mubr.bf16.vlgmr.msra.gmra.mxu1 %v15352_v52  ;;  %v3441_v22 = vrot.slane %v3440_v62, 2  ;;  %v3448_v52 = vrot.slane %v3447_v3, 2  ;;  %v3058_v36 = vrot.slane %v3048_v15, %v12199_v51  ;;  %v13971_v30 = vmax.f32 %v3428_v26, %v3429_v2  ;;  %8499 = vmatprep.subr.bf16.mxu0 %v11610_v42  ;;  %v11616_v0 = vld [vmem:[#allocation8 + $0x3c4] ss:$8 sps:$4 sm:$0xff]   ;;  %v11611_v2 = vld [vmem:[#allocation8 + $0x450] ss:$8 sps:$4 sm:$0xff]  }
 0x206   : > { %8541 = vmatpush1.bf16.msra.mxu1 %v11599_v28  ;;  %v3065_v11 = vrot.slane %v3049_v44, %v12199_v51  ;;  %v15355_v28 = vcombine.low %v15353_v23, %v15354_v21  ;;  %v3072_v8 = vrot.slane %v3050_v57, %v12199_v51  ;;  %v3079_v59 = vrot.slane %v3051_v58, %v12199_v51  ;;  %v15357_v15 = vld [vmem:[#allocation27_spill] sm:$0xff] }
 0x207   : > { %8542 = vmatprep.subr.bf16.mxu1 %v11607_v53  ;;  %15356 = vst [vmem:[#allocation21_spill] sm:$0xff] %v13971_v30  ;;  %v2516_v53 = vmax.f32 %v2489_v7, 0.0  ;;  %v13977_v10 = vmax.f32 %v3440_v62, %v3441_v22  ;;  %v13980_v48 = vrot.slane %v3082_v50, %v12199_v51  ;;  %v2493_v44 = vadd.f32 %v13889_v25, %v15357_v15  ;;  %v11614_v25 = vld [vmem:[#allocation8 + $0x3c0] ss:$8 sps:$4 sm:$0xff]  }
 0x208   : > { %8460 = vmatprep.mubr.bf16.mxu1 %v15355_v28  ;;  %v15358_v28 = vld [vmem:[#allocation56_spill] sm:$0xff]  ;;  %v3080_v57 = vcombine.low %v3058_v36, %v3072_v8  ;;  %v3081_v58 = vcombine.low %v3065_v11, %v3079_v59  ;;  %v13986_v30 = vmax.f32 %v3447_v3, %v3448_v52  ;;  %v2686_v22 = vcombine.high %v13946_v37, %v13946_v37  ;;  %v13997_v36 = vpop.f32.mrf.mxu1 }
 0x209   : > { %v2495_v26 = vadd.f32 %v13899_v31, %v15358_v28  ;;  %v2687_v7 = vcombine.low %v2515_v45, %v2516_v53  ;;  %v2688_v42 = vcombine.high %v2515_v45, %v2516_v53  ;;  %v2517_v50 = vmax.f32 %v2493_v44, 0.0  ;;  %8500 = vmatpush2.bf16.msra.mxu0 %v11608_v24  ;;  %v15360_v45 = vld [vmem:[#allocation59_spill] sm:$0xff]  ;;  %v11622_v52 = vld [vmem:[#allocation8 + $0x3b4] ss:$8 sps:$4 sm:$0xff]  }
 0x20a   : > { %8543 = vmatpush1.bf16.msra.mxu1 %v11605_v29  ;;  %15359 = vst [vmem:[#allocation22_spill] sm:$0xff] %v13986_v30  ;;  %v3452_v15 = vsel %vm3423_vm0, %v3080_v57, -inf  ;;  %v3459_v31 = vsel %vm3423_vm0, %v3081_v58, -inf  ;;  %8501 = vmatprep.subr.bf16.mxu0 %v11616_v0  ;;  %v3443_v37 = vrot.slane %v13977_v10, 1  ;;  %v11617_v53 = vld [vmem:[#allocation8 + $0x440] ss:$8 sps:$4 sm:$0xff]  }
 0x20b   : > { %8544 = vmatprep.subr.bf16.mxu1 %v11613_v60  ;;  %v2518_v62 = vmax.f32 %v2495_v26, 0.0  ;;  %v2695_v29 = vrot.slane %v2687_v7, %v12199_v51  ;;  %v2702_v11 = vrot.slane %v2688_v42, %v12199_v51  ;;  %v15361_v60 = vld [vmem:[#allocation60_spill] sm:$0xff]  ;;  %v3453_v24 = vrot.slane %v3452_v15, 4  ;;  %v15363_v44 = vld [vmem:[#allocation47_spill] sm:$0xff] }
 0x20c   : > { %v15362_v3 = vcombine.low %v15360_v45, %v15361_v60  ;;  %v3460_v8 = vrot.slane %v3459_v31, 4  ;;  %v11625_v58 = vld [vmem:[#allocation8 + $0x434] ss:$8 sps:$4 sm:$0xff]  }
 0x20d   : > { %v2737_v59 = vcombine.low %v2517_v50, %v2518_v62  ;;  %v2703_v28 = vcombine.high %v2695_v29, %v2695_v29  ;;  %v2704_v26 = vcombine.high %v2702_v11, %v2702_v11  ;;  %v2711_v0 = vrot.slane %v2695_v29, %v12199_v51  ;;  %8502 = vmatpush2.bf16.msra.mxu0 %v11614_v25  ;;  %v14006_v29 = vpop.f32.mrf.mxu1 }
 0x20e   : > { %8461 = vmatmul.mubr.bf16.gmra.mxu1 %v15362_v3  ;;  %v2718_v57 = vrot.slane %v2702_v11, %v12199_v51  ;;  %v3454_v7 = vmax.f32 %v3452_v15, %v3453_v24  ;;  %v3461_v42 = vmax.f32 %v3459_v31, %v3460_v8  ;;  %v2738_v3 = vcombine.high %v2517_v50, %v2518_v62  ;;  %v11623_v62 = vld [vmem:[#allocation8 + $0x430] ss:$8 sps:$4 sm:$0xff]  }
 0x20f   : > { %8545 = vmatpush1.bf16.msra.mxu1 %v11611_v2  ;;  %8470 = vmatprep.mubr.bf16.mxu1 %v15363_v44  ;;  %v2745_v49 = vrot.slane %v2737_v59, %v12199_v51  ;;  %v2725_v2 = vrot.slane %v2703_v28, %v12199_v51  ;;  %v2732_v5 = vrot.slane %v2704_v26, %v12199_v51  ;;  %v11631_v59 = vld [vmem:[#allocation8 + $0x424] ss:$8 sps:$4 sm:$0xff]  }
 0x210   : > { %8546 = vmatprep.subr.bf16.mxu1 %v11619_v1  ;;  %v2733_v20 = vcombine.high %v2711_v0, %v2711_v0  ;;  %v3083_v38 = vcombine.low %v2686_v22, %v2711_v0  ;;  %8503 = vmatprep.subr.bf16.mxu0 %v11622_v52  ;;  %v3455_v11 = vrot.slane %v3454_v7, 2  ;;  %v3462_v15 = vrot.slane %v3461_v42, 2  ;;  %v11626_v0 = vld [vmem:[#allocation8 + $0x3a0] ss:$8 sps:$4 sm:$0xff]  }
 0x211   : > { %v2752_v50 = vrot.slane %v2738_v3, %v12199_v51  ;;  %v2735_v25 = vcombine.high %v2725_v2, %v2725_v2  ;;  %v3147_v8 = vcombine.low %v2718_v57, %v2732_v5  ;;  %v10427_v52 = vcombine.high %v2718_v57, %v2732_v5  ;;  %8504 = vmatpush2.bf16.msra.mxu0 %v11620_v12  ;;  %v11629_v57 = vld [vmem:[#allocation8 + $0x420] ss:$8 sps:$4 sm:$0xff]  }
 0x212   : > { %v3084_v31 = vcombine.low %v2725_v2, %v2733_v20  ;;  %v3098_v24 = vrot.slane %v3083_v38, %v12199_v51  ;;  %v3456_v22 = vmax.f32 %v3454_v7, %v3455_v11  ;;  %v2753_v28 = vcombine.high %v2745_v49, %v2745_v49  ;;  %8505 = vmatprep.subr.bf16.mxu0 %v11628_v17  ;;  %v11634_v20 = vld [vmem:[#allocation8 + $0x394] ss:$8 sps:$4 sm:$0xff]   ;;  %v14015_v38 = vpop.f32.mrf.mxu1 }
 0x213   : > { %8547 = vmatpush1.bf16.msra.mxu1 %v11617_v53  ;;  %v2754_v26 = vcombine.high %v2752_v50, %v2752_v50  ;;  %v3112_v30 = vrot.slane %v2735_v25, %v12199_v51  ;;  %v14018_v7 = vrot.slane %v3147_v8, %v12199_v51  ;;  %v14021_v5 = vrot.slane %v10427_v52, %v12199_v51  ;;  %v11637_v25 = vld [vmem:[#allocation8 + $0x414] ss:$8 sps:$4 sm:$0xff]  }
 0x214   : > { %8548 = vmatprep.subr.bf16.mxu1 %v11625_v58  ;;  %v3105_v1 = vrot.slane %v3084_v31, %v12199_v51  ;;  %v3113_v53 = vcombine.low %v13980_v48, %v3098_v24  ;;  %v3114_v3 = vcombine.high %v13980_v48, %v3098_v24  ;;  %v3457_v58 = vrot.slane %v3456_v22, 1 }
 0x215   : > { %v2761_v12 = vrot.slane %v2745_v49, %v12199_v51  ;;  %v14025_v2 = vmax.f32 %v13977_v10, %v3443_v37  ;;  %v14027_v11 = vmax.f32 %v3461_v42, %v3462_v15  ;;  %v2768_v52 = vrot.slane %v2752_v50, %v12199_v51  ;;  %8506 = vmatpush2.bf16.msra.mxu0 %v11626_v0  ;;  %v11640_v0 = vld [vmem:[#allocation8 + $0x384] ss:$8 sps:$4 sm:$0xff]  }
 0x216   : > { %v3115_v17 = vcombine.low %v3105_v1, %v3112_v30  ;;  %v3116_v48 = vcombine.high %v3105_v1, %v3112_v30  ;;  %v14029_v31 = vmax.f32 %v3456_v22, %v3457_v58  ;;  %v3123_v24 = vrot.slane %v3113_v53, %v12199_v51  ;;  %v11632_v30 = vld [vmem:[#allocation8 + $0x390] ss:$8 sps:$4 sm:$0xff]   ;;  %8507 = vmatprep.subr.bf16.mxu0 %v11634_v20  ;;  %v14040_v1 = vpop.f32.mrf.mxu1  ;;  %v11643_v58 = vld [vmem:[#allocation8 + $0x404] ss:$8 sps:$4 sm:$0xff]  }
 0x217   : > { %8549 = vmatpush1.bf16.msra.mxu1 %v11623_v62  ;;  %15364 = vst [vmem:[#allocation23_spill] sm:$0xff] %v14025_v2  ;;  %v3130_v8 = vrot.slane %v3114_v3, %v12199_v51  ;;  %v2775_v37 = vrot.slane %v2753_v28, %v12199_v51  ;;  %v14038_v42 = vrot.slane %v2754_v26, %v12199_v51  ;;  %v11635_v22 = vld [vmem:[#allocation8 + $0x410] ss:$8 sps:$4 sm:$0xff]   ;;  %v15367_v2 = vld [vmem:[#allocation38_spill] sm:$0xff] }
 0x218   : > { %8550 = vmatprep.subr.bf16.mxu1 %v11631_v59  ;;  %15365 = vst [vmem:[#allocation24_spill] sm:$0xff] %v14029_v31  ;;  %v3137_v49 = vrot.slane %v3115_v17, %v12199_v51  ;;  %v3144_v10 = vrot.slane %v3116_v48, %v12199_v51  ;;  %v3178_v15 = vcombine.low %v14018_v7, %v14021_v5  ;;  %v15366_v48 = vld [vmem:[#allocation45_spill] sm:$0xff] }
 0x219   : > { %v3179_v50 = vcombine.high %v14018_v7, %v14021_v5  ;;  %v2783_v62 = vcombine.high %v2761_v12, %v2761_v12  ;;  %v2784_v59 = vcombine.high %v2768_v52, %v2768_v52  ;;  %v2785_v3 = vcombine.high %v2775_v37, %v2775_v37  ;;  %8471 = vmatmul.mubr.bf16.gmra.mxu1 %v13668_v19 }
 0x21a   : > { %v3145_v53 = vcombine.low %v3123_v24, %v3137_v49  ;;  %v3146_v28 = vcombine.low %v3130_v8, %v3144_v10  ;;  %v3149_v26 = vcombine.low %v2761_v12, %v2775_v37  ;;  %v2497_v31 = vadd.f32 %v13905_v6, %v15366_v48  ;;  %8508 = vmatpush2.bf16.msra.mxu0 %v11632_v30  ;;  %v11638_v24 = vld [vmem:[#allocation8 + $0x380] ss:$8 sps:$4 sm:$0xff]   ;;  %v14056_v8 = vpop.f32.mrf.mxu1 }
 0x21b   : > { %8551 = vmatpush1.bf16.msra.mxu1 %v11629_v57  ;;  %v3177_v20 = vrot.slane %v2783_v62, %v12199_v51  ;;  %v3213_v17 = vcombine.low %v14038_v42, %v2784_v59  ;;  %v2499_v7 = vadd.f32 %v13915_v40, %v15367_v2  ;;  %v15368_v49 = vcombine.low %v13862_v56, %v13865_v9  ;;  %v11641_v37 = vld [vmem:[#allocation8 + $0x400] ss:$8 sps:$4 sm:$0xff]   ;;  %v11649_v62 = vld [vmem:[#allocation8 + $0x574] ss:$8 sps:$4 sm:$0xff]  }
 0x21c   : > { %8552 = vmatprep.subr.bf16.mxu1 %v11637_v25  ;;  %v3466_v5 = vsel %vm3423_vm0, %v3145_v53, -inf  ;;  %v3473_v57 = vsel %vm3423_vm0, %v3146_v28, -inf  ;;  %v3170_v12 = vrot.slane %v3149_v26, %v12199_v51  ;;  %v3212_v25 = vcombine.low %v2785_v3, %v2768_v52  ;;  %8509 = vmatprep.subr.bf16.mxu0 %v11640_v0  ;;  %v11646_v28 = vld [vmem:[#allocation8 + $0x4f4] ss:$8 sps:$4 sm:$0xff]  }
 0x21d   : > { %8572 = vmatprep.mubr.bf16.mxu1 %v15368_v49  ;;  %v3188_v6 = vrot.slane %v3178_v15, %v12199_v51  ;;  %v3467_v40 = vrot.slane %v3466_v5, 4  ;;  %v3474_v2 = vrot.slane %v3473_v57, 4  ;;  %v3228_v10 = vrot.slane %v3213_v17, %v12199_v51 }
 0x21e   : > { %v3180_v59 = vcombine.low %v3170_v12, %v3177_v20  ;;  %v3181_v52 = vcombine.high %v3170_v12, %v3177_v20  ;;  %v3221_v30 = vrot.slane %v3212_v25, %v12199_v51  ;;  %v2520_v53 = vmax.f32 %v2499_v7, 0.0  ;;  %8510 = vmatpush2.bf16.msra.mxu0 %v11638_v24  ;;  %v14069_v20 = vpop.f32.mrf.mxu1  ;;  %v11647_v12 = vld [vmem:[#allocation8 + $0x570] ss:$8 sps:$4 sm:$0xff]   ;;  %v11652_v24 = vld [vmem:[#allocation8 + $0x4e4] ss:$8 sps:$4 sm:$0xff]  }
 0x21f   : > { %8553 = vmatpush1.bf16.msra.mxu1 %v11635_v22  ;;  %v3195_v3 = vrot.slane %v3179_v50, %v12199_v51  ;;  %v3468_v26 = vmax.f32 %v3466_v5, %v3467_v40  ;;  %v2519_v48 = vmax.f32 %v2497_v31, 0.0  ;;  %v2503_v15 = vadd.f32 %v13927_v55, %v13751_v46  ;;  %v11644_v31 = vld [vmem:[#allocation8 + $0x4f0] ss:$8 sps:$4 sm:$0xff]   ;;  %8601 = vmatprep.subr.bf16.mxu0 %v11649_v62  ;;  %v11655_v5 = vld [vmem:[#allocation8 + $0x564] ss:$8 sps:$4 sm:$0xff]  }
 0x220   : > { %8554 = vmatprep.subr.bf16.mxu1 %v11643_v58  ;;  %v3202_v17 = vrot.slane %v3180_v59, %v12199_v51  ;;  %v3209_v22 = vrot.slane %v3181_v52, %v12199_v51  ;;  %v3243_v0 = vcombine.low %v3221_v30, %v3228_v10  ;;  %v3244_v49 = vcombine.high %v3221_v30, %v3228_v10  ;;  %v14075_v10 = vpop.f32.mrf.mxu0 }
 0x221   : > { %v3469_v7 = vrot.slane %v3468_v26, 2  ;;  %v14071_v58 = vmax.f32 %v3473_v57, %v3474_v2  ;;  %v2787_v25 = vcombine.low %v2519_v48, %v2520_v53  ;;  %v2788_v50 = vcombine.high %v2519_v48, %v2520_v53 }
 0x222   : > { %v3210_v46 = vcombine.low %v3188_v6, %v3202_v17  ;;  %v3211_v55 = vcombine.low %v3195_v3, %v3209_v22  ;;  %v2786_v40 = vcombine.high %v14038_v42, %v14038_v42  ;;  %v2521_v59 = vmax.f32 %v2503_v15, 0.0  ;;  %v14096_v3 = vpop.f32.mrf.mxu1  ;;  %v11650_v15 = vld [vmem:[#allocation8 + $0x4e0] ss:$8 sps:$4 sm:$0xff]   ;;  %v11661_v17 = vld [vmem:[#allocation8 + $0x554] ss:$8 sps:$4 sm:$0xff]  }
 0x223   : > { %15369 = vst [vmem:[#allocation25_spill] sm:$0xff] %v14071_v58  ;;  %8555 = vmatpush1.bf16.msra.mxu1 %v11641_v37  ;;  %v3470_v52 = vmax.f32 %v3468_v26, %v3469_v7  ;;  %v2795_v57 = vrot.slane %v2787_v25, %v12199_v51  ;;  %v2802_v2 = vrot.slane %v2788_v50, %v12199_v51  ;;  %v11658_v7 = vld [vmem:[#allocation8 + $0x4d4] ss:$8 sps:$4 sm:$0xff]  }
 0x224   : > { %8556 = vmatprep.subr.bf16.mxu1 %v11646_v28  ;;  %v2505_v37 = vadd.f32 %v13936_v27, %v13759_v61  ;;  %v15370_v6 = vcombine.high %v13521_v54, %v15351_v4  ;;  %v14085_v62 = vrot.slane %v3243_v0, %v12199_v51  ;;  %v14088_v42 = vrot.slane %v3244_v49, %v12199_v51  ;;  %v14094_v28 = vpop.f32.mrf.mxu0  ;;  %v11653_v61 = vld [vmem:[#allocation8 + $0x560] ss:$8 sps:$4 sm:$0xff]  }
 0x225   : > { %v3480_v30 = vsel %vm3423_vm0, %v3210_v46, -inf  ;;  %v14092_v53 = vsel %vm3423_vm0, %v3211_v55, -inf  ;;  %v15373_v54 = vcombine.high %v15353_v23, %v15354_v21  ;;  %v3471_v27 = vrot.slane %v3470_v52, 1  ;;  %v14112_v21 = vpop.f32.mrf.mxu1 }
 0x226   : > { %8512 = vmatmul.mubr.bf16.vlgmr.msra.gmra.mxu0 %v15370_v6  ;;  %15371 = vst [vmem:[#allocation30_spill] sm:$0xff] %v14088_v42  ;;  %15372 = vst [vmem:[#allocation32_spill] sm:$0xff] %v14092_v53  ;;  %v3481_v4 = vrot.slane %v3480_v30, 4  ;;  %v2803_v26 = vcombine.high %v2795_v57, %v2795_v57  ;;  %v14103_v48 = vadd.f32 %v13962_v13, %v13648_v63  ;;  %v2522_v49 = vmax.f32 %v2505_v37, 0.0  ;;  %v14110_v23 = vpop.f32.mrf.mxu0  ;;  %v11659_v6 = vld [vmem:[#allocation8 + $0x550] ss:$8 sps:$4 sm:$0xff]  }
 0x227   : > { %8602 = vmatpush1.bf16.msra.mxu0 %v11647_v12  ;;  %8521 = vmatprep.mubr.bf16.mxu0 %v15373_v54  ;;  %v2804_v22 = vcombine.high %v2802_v2, %v2802_v2  ;;  %v2811_v0 = vrot.slane %v2795_v57, %v12199_v51  ;;  %v14108_v12 = vadd.f32 %v13975_v14, %v13651_v39  ;;  %v14121_v37 = vpop.f32.mrf.mxu1 }
 0x228   : > { %8557 = vmatpush2.bf16.msra.mxu1 %v11644_v31  ;;  %8603 = vmatprep.subr.bf16.mxu0 %v11655_v5  ;;  %v14114_v13 = vmax.f32 %v3470_v52, %v3471_v27  ;;  %v3482_v25 = vmax.f32 %v3480_v30, %v3481_v4  ;;  %v2818_v50 = vrot.slane %v2802_v2, %v12199_v51  ;;  %v14119_v14 = vpop.f32.mrf.mxu0  ;;  %v11656_v30 = vld [vmem:[#allocation8 + $0x4d0] ss:$8 sps:$4 sm:$0xff]  }
 0x229   : > { %8558 = vmatprep.subr.bf16.mxu1 %v11652_v24  ;;  %v2825_v31 = vrot.slane %v2803_v26, %v12199_v51  ;;  %v2832_v5 = vrot.slane %v2804_v22, %v12199_v51  ;;  %v3214_v46 = vcombine.low %v2786_v40, %v2811_v0  ;;  %v2837_v55 = vcombine.low %v2521_v59, %v2522_v49  ;;  %v11667_v40 = vld [vmem:[#allocation8 + $0x544] ss:$8 sps:$4 sm:$0xff]  }
 0x22a   : > { %15374 = vst [vmem:[#allocation33_spill] sm:$0xff] %v14114_v13  ;;  %v2838_v57 = vcombine.high %v2521_v59, %v2522_v49  ;;  %v3483_v24 = vrot.slane %v3482_v25, 2  ;;  %v14126_v2 = vadd.f32 %v13997_v36, %v13648_v63  ;;  %v14130_v26 = vpop.f32.mrf.mxu0  ;;  %v11664_v22 = vld [vmem:[#allocation8 + $0x4c4] ss:$8 sps:$4 sm:$0xff]   ;;  %v11662_v13 = vld [vmem:[#allocation8 + $0x4c0] ss:$8 sps:$4 sm:$0xff]   ;;  %v15379_v53 = vcombine.high %v13668_v19, %v13668_v19 }
 0x22b   : > { %8604 = vmatpush1.bf16.msra.mxu0 %v11653_v61  ;;  %v3242_v52 = vrot.slane %v2825_v31, %v12199_v51  ;;  %v10428_v54 = vcombine.high %v2811_v0, %v2825_v31  ;;  %v3235_v59 = vrot.slane %v3214_v46, %v12199_v51  ;;  %v3278_v61 = vcombine.low %v2818_v50, %v2832_v5  ;;  %v11665_v46 = vld [vmem:[#allocation8 + $0x540] ss:$8 sps:$4 sm:$0xff]  }
 0x22c   : > { %8559 = vmatpush2.bf16.msra.mxu1 %v11650_v15  ;;  %8605 = vmatprep.subr.bf16.mxu0 %v11661_v17  ;;  %v10429_v27 = vcombine.high %v2818_v50, %v2832_v5  ;;  %v2845_v4 = vrot.slane %v2837_v55, %v12199_v51  ;;  %v14132_v49 = vmax.f32 %v3482_v25, %v3483_v24  ;;  %v14140_v17 = vpop.f32.mrf.mxu1  ;;  %v14147_v55 = vpop.f32.mrf.mxu0 }
 0x22d   : > { %8560 = vmatprep.subr.bf16.mxu1 %v11658_v7  ;;  %v3286_v0 = vrot.slane %v10428_v54, %v12199_v51  ;;  %v2852_v36 = vrot.slane %v2838_v57, %v12199_v51  ;;  %v14138_v15 = vadd.f32 %v14006_v29, %v13651_v39  ;;  %v15376_v50 = vcombine.high %v15360_v45, %v15361_v60 }
 0x22e   : > { %15375 = vst [vmem:[#allocation37_spill] sm:$0xff] %v14132_v49  ;;  %v3245_v7 = vcombine.low %v3235_v59, %v3242_v52  ;;  %v3246_v31 = vcombine.high %v3235_v59, %v3242_v52  ;;  %v3293_v5 = vrot.slane %v3278_v61, %v12199_v51  ;;  %v3300_v25 = vrot.slane %v10429_v27, %v12199_v51  ;;  %v14151_v45 = vpop.f32.mrf.mxu1  ;;  %v14157_v61 = vpop.f32.mrf.mxu0  ;;  %v11670_v27 = vld [vmem:[#allocation8 + $0x4b4] ss:$8 sps:$4 sm:$0xff]   ;;  %v11676_v49 = vld [vmem:[#allocation8 + $0x4a4] ss:$8 sps:$4 sm:$0xff]  }
 0x22f   : > { %8522 = vmatmul.mubr.bf16.gmra.mxu0 %v15376_v50  ;;  %v2853_v29 = vcombine.high %v2845_v4, %v2845_v4  ;;  %v2854_v24 = vcombine.high %v2852_v36, %v2852_v36  ;;  %v2861_v54 = vrot.slane %v2845_v4, %v12199_v51  ;;  %v11673_v50 = vld [vmem:[#allocation8 + $0x534] ss:$8 sps:$4 sm:$0xff]   ;;  %v2868_v57 = vrot.slane %v2852_v36, %v12199_v51  ;;  %v11671_v36 = vld [vmem:[#allocation8 + $0x530] ss:$8 sps:$4 sm:$0xff]  }
 0x230   : > { %8606 = vmatpush1.bf16.msra.mxu0 %v11659_v6  ;;  %8561 = vmatpush2.bf16.msra.mxu1 %v11656_v30  ;;  %v3267_v60 = vrot.slane %v3245_v7, %v12199_v51  ;;  %v14155_v52 = vrot.slane %v3246_v31, %v12199_v51  ;;  %v3308_v6 = vcombine.low %v3286_v0, %v3293_v5 }
 0x231   : > { %8607 = vmatprep.subr.bf16.mxu0 %v11667_v40  ;;  %v3309_v59 = vcombine.high %v3286_v0, %v3293_v5  ;;  %8562 = vmatprep.subr.bf16.mxu1 %v11664_v22  ;;  %v2875_v30 = vrot.slane %v2853_v29, %v12199_v51  ;;  %v2882_v40 = vrot.slane %v2854_v24, %v12199_v51  ;;  %v14173_v29 = vpop.f32.mrf.mxu0 }
 0x232   : > { %15377 = vst [vmem:[#allocation41_spill] sm:$0xff] %v14155_v52  ;;  %v2883_v4 = vcombine.high %v2861_v54, %v2861_v54  ;;  %v15378_v7 = vcombine.high %v15363_v44, %v15363_v44  ;;  %v3275_v0 = vcombine.low %v14085_v62, %v3267_v60  ;;  %v14171_v5 = vadd.f32 %v14015_v38, %v13648_v63  ;;  %v11668_v62 = vld [vmem:[#allocation8 + $0x4b0] ss:$8 sps:$4 sm:$0xff]  }
 0x233   : > { %v2884_v24 = vcombine.high %v2868_v57, %v2868_v57  ;;  %v2885_v56 = vcombine.high %v2875_v30, %v2875_v30  ;;  %v2886_v9 = vcombine.high %v2882_v40, %v2882_v40  ;;  %v3307_v44 = vrot.slane %v2861_v54, %v12199_v51  ;;  %v14183_v22 = vpop.f32.mrf.mxu0 }
 0x234   : > { %8531 = vmatprep.mubr.bf16.mxu0 %v15378_v7  ;;  %8608 = vmatpush1.bf16.msra.mxu0 %v11665_v46  ;;  %v14176_v7 = vpop.f32.mrf.mxu1  ;;  %v3318_v60 = vrot.slane %v3308_v6, %v12199_v51  ;;  %v14180_v31 = vrot.slane %v3309_v59, %v12199_v51  ;;  %v3494_v38 = vsel %vm3423_vm0, %v3275_v0, -inf  ;;  %v3342_v46 = vcombine.low %v2875_v30, %v2883_v4  ;;  %v11679_v6 = vld [vmem:[#allocation8 + $0x524] ss:$8 sps:$4 sm:$0xff]  }
 0x235   : > { %8563 = vmatpush2.bf16.msra.mxu1 %v11662_v13  ;;  %8609 = vmatprep.subr.bf16.mxu0 %v11673_v50  ;;  %v3495_v52 = vrot.slane %v3494_v38, 4  ;;  %v3310_v42 = vcombine.low %v3300_v25, %v3307_v44  ;;  %v3311_v54 = vcombine.high %v3300_v25, %v3307_v44  ;;  %v3343_v13 = vcombine.low %v2885_v56, %v2868_v57  ;;  %v11677_v50 = vld [vmem:[#allocation8 + $0x520] ss:$8 sps:$4 sm:$0xff]   ;;  %v5537_v4 = vpop.f32.mrf.mxu0 }
 0x236   : > { %8564 = vmatprep.subr.bf16.mxu1 %v11670_v27  ;;  %v3344_v58 = vcombine.low %v2882_v40, %v2884_v24  ;;  %v3351_v59 = vrot.slane %v3342_v46, %v12199_v51  ;;  %v3372_v0 = vrot.slane %v2886_v9, %v12199_v51  ;;  %v14192_v27 = vadd.f32 %v14040_v1, %v13651_v39  ;;  %v11674_v57 = vld [vmem:[#allocation8 + $0x4a0] ss:$8 sps:$4 sm:$0xff]   ;;  %v11685_v40 = vld [vmem:[#allocation8 + $0x514] ss:$8 sps:$4 sm:$0xff]  }
 0x237   : > { %8532 = vmatmul.mubr.bf16.gmra.mxu0 %v15379_v53  ;;  %v3496_v30 = vmax.f32 %v3494_v38, %v3495_v52  ;;  %v3332_v25 = vrot.slane %v3310_v42, %v12199_v51  ;;  %v14196_v56 = vrot.slane %v3311_v54, %v12199_v51  ;;  %v3358_v19 = vrot.slane %v3343_v13, %v12199_v51  ;;  %v14199_v53 = vpop.f32.mrf.mxu1  ;;  %v11680_v54 = vld [vmem:[#allocation8 + $0x490] ss:$8 sps:$4 sm:$0xff]  }
 0x238   : > { %8610 = vmatpush1.bf16.msra.mxu0 %v11671_v36  ;;  %v3365_v9 = vrot.slane %v3344_v58, %v12199_v51  ;;  %v14204_v1 = vadd.f32 %v14056_v8, %v13648_v63  ;;  %v5516_v52 = vadd.f32 %v14075_v10, %v13813_v47  ;;  %v5518_v42 = vadd.f32 %v14094_v28, %v13824_v41  ;;  %v11682_v36 = vld [vmem:[#allocation8 + $0x494] ss:$8 sps:$4 sm:$0xff]   ;;  %v11683_v41 = vld [vmem:[#allocation8 + $0x510] ss:$8 sps:$4 sm:$0xff]  }
 0x239   : > { %8565 = vmatpush2.bf16.msra.mxu1 %v11668_v62  ;;  %v3497_v24 = vrot.slane %v3496_v30, 2  ;;  %v3340_v44 = vcombine.low %v3318_v60, %v3332_v25  ;;  %v3341_v62 = vcombine.low %v14180_v31, %v14196_v56  ;;  %v3373_v38 = vcombine.low %v3351_v59, %v3358_v19  ;;  %8611 = vmatprep.subr.bf16.mxu0 %v11679_v6  ;;  %v5594_v60 = vpop.f32.mrf.mxu1  ;;  %v11688_v6 = vld [vmem:[#allocation8 + $0x484] ss:$8 sps:$4 sm:$0xff]  }
 0x23a   : > { %8566 = vmatprep.subr.bf16.mxu1 %v11676_v49  ;;  %v3374_v58 = vcombine.high %v3351_v59, %v3358_v19  ;;  %v3375_v46 = vcombine.low %v3365_v9, %v3372_v0  ;;  %v5479_v63 = vadd.f32 %v14069_v20, %v13651_v39  ;;  %v5520_v47 = vadd.f32 %v14110_v23, %v13837_v32  ;;  %v5539_v23 = vpop.f32.mrf.mxu0  ;;  %v11691_v59 = vld [vmem:[#allocation8 + $0x504] ss:$8 sps:$4 sm:$0xff]  }
 0x23b   : > { %v3376_v8 = vcombine.high %v3365_v9, %v3372_v0  ;;  %v3383_v10 = vrot.slane %v3373_v38, %v12199_v51  ;;  %v3508_v28 = vsel %vm3423_vm0, %v3340_v44, -inf  ;;  %v14219_v49 = vadd.f32 %v14096_v3, %v5516_v52  ;;  %v11729_v31 = vld [vmem:[#allocation8 + $0x584] ss:$8 sps:$4 sm:$0xff]  }
 0x23c   : > { %8612 = vmatpush1.bf16.msra.mxu0 %v11677_v50  ;;  %v14221_v13 = vmax.f32 %v3496_v30, %v3497_v24  ;;  %v3397_v39 = vrot.slane %v3375_v46, %v12199_v51  ;;  %v3509_v20 = vrot.slane %v3508_v28, 4  ;;  %v14225_v32 = vadd.f32 %v14112_v21, %v5518_v42 }
 0x23d   : > { %8567 = vmatpush2.bf16.msra.mxu1 %v11674_v57  ;;  %8613 = vmatprep.subr.bf16.mxu0 %v11685_v40  ;;  %v14228_v0 = vrot.slane %v3374_v58, %v12199_v51  ;;  %v5522_v3 = vadd.f32 %v14119_v14, %v13857_v35  ;;  %v5526_v50 = vadd.f32 %v14130_v26, %v14103_v48  ;;  %v11689_v40 = vld [vmem:[#allocation8 + $0x500] ss:$8 sps:$4 sm:$0xff]   ;;  %v5598_v14 = vpop.f32.mrf.mxu1  ;;  %v11694_v26 = vld [vmem:[#allocation8 + $0x5f4] ss:$8 sps:$4 sm:$0xff]  }
 0x23e   : > { %8568 = vmatprep.subr.bf16.mxu1 %v11682_v36  ;;  %v5528_v30 = vadd.f32 %v14147_v55, %v14108_v12  ;;  %v3405_v25 = vcombine.low %v3383_v10, %v3397_v39  ;;  %v3510_v19 = vmax.f32 %v3508_v28, %v3509_v20  ;;  %v5530_v21 = vadd.f32 %v14157_v61, %v14126_v2  ;;  %v11686_v2 = vld [vmem:[#allocation8 + $0x480] ss:$8 sps:$4 sm:$0xff]   ;;  %v11700_v10 = vld [vmem:[#allocation10 + $0x70] sm:$0xff]  }
 0x23f   : > { %v5532_v57 = vadd.f32 %v14173_v29, %v14138_v15  ;;  %v14241_v9 = vrot.slane %v3376_v8, %v12199_v51  ;;  %v14244_v35 = vadd.f32 %v14121_v37, %v5520_v47  ;;  %v14247_v48 = vadd.f32 %v14140_v17, %v5522_v3  ;;  %v5541_v37 = vpop.f32.mrf.mxu0  ;;  %v11695_v17 = vld [vmem:[#allocation10 + $0x78] sm:$0xff]   ;;  %v5600_v58 = vpop.f32.mrf.mxu1  ;;  %v15383_v28 = vld [vmem:[#allocation42_spill] sm:$0xff]  ;;  %v15386_v20 = vld [vmem:[#allocation19_spill] sm:$0xff] }
 0x240   : > { %8614 = vmatpush1.bf16.msra.mxu0 %v11683_v41  ;;  %v5536_v12 = vadd.f32 %v14183_v22, %v14171_v5  ;;  %v3511_v55 = vrot.slane %v3510_v19, 2  ;;  %v3522_v15 = vsel %vm3423_vm0, %v3405_v25, -inf  ;;  %v14253_v61 = vadd.f32 %v14151_v45, %v5526_v50  ;;  %v15390_v3 = vld [vmem:[#allocation46_spill] sm:$0xff]  ;;  %v15391_v50 = vld [vmem:[#allocation61_spill] sm:$0xff] }
 0x241   : > { %8569 = vmatpush2.bf16.msra.mxu1 %v11680_v54  ;;  %v14256_v29 = vadd.f32 %v14176_v7, %v5528_v30  ;;  %8615 = vmatprep.subr.bf16.mxu0 %v11691_v59  ;;  %v3523_v52 = vrot.slane %v3522_v15, 4  ;;  %v14259_v22 = vadd.f32 %v14199_v53, %v5530_v21  ;;  %v14261_v5 = vadd.f32 %v5594_v60, %v5532_v57  ;;  %v11692_v53 = vld [vmem:[#allocation8 + $0x5f0] ss:$8 sps:$4 sm:$0xff]   ;;  %v11697_v25 = vld [vmem:[#allocation8 + $0x5e0] ss:$8 sps:$4 sm:$0xff]  }
 0x242   : > { %8570 = vmatprep.subr.bf16.mxu1 %v11688_v6  ;;  %v5538_v42 = vadd.f32 %v5537_v4, %v14192_v27  ;;  %v14264_v36 = vmax.f32 %v3510_v19, %v3511_v55  ;;  %v14266_v24 = vadd.f32 %v5598_v14, %v5536_v12  ;;  %v14269_v45 = vadd.f32 %v5539_v23, %v14204_v1  ;;  %v11696_v27 = vld [vmem:[#allocation10 + $0x38] sm:$0xff]   ;;  %v11699_v4 = vld [vmem:[#allocation8 + $0x5e4] ss:$8 sps:$4 sm:$0xff]   ;;  %v15394_v12 = vld [vmem:[#allocation28_spill] sm:$0xff] }
 0x243   : > { %v15380_v7 = vcombine.low %v13816_v18, %v13827_v16  ;;  %v14277_v38 = vmax.f32 %v3522_v15, %v3523_v52  ;;  %v14279_v46 = vadd.f32 %v5541_v37, %v5479_v63  ;;  %v6183_v1 = vor.u32 %v13846_v33, %v13834_v43  ;;  %v15382_v18 = vld [vmem:[#allocation18_spill] sm:$0xff]  ;;  %v15387_v6 = vld [vmem:[#allocation43_spill] sm:$0xff]  ;;  %v15392_v21 = vld [vmem:[#allocation53_spill] sm:$0xff] }
 0x244   : > { %8616 = vmatpush1.bf16.msra.mxu0 %v11689_v40  ;;  %v15381_v47 = vshll.u32 %v15346_v34, 16  ;;  %v14285_v8 = vadd.f32 %v5600_v58, %v5538_v42  ;;  %v15384_v63 = vshrl.u32 %v15383_v28, 16  ;;  %v15385_v54 = vshll.u32 %v15383_v28, 16  ;;  %v15393_v40 = vld [vmem:[#allocation26_spill] sm:$0xff]  ;;  %v11701_v37 = vld [vmem:[#allocation10 + $0x30] sm:$0xff]   ;;  %v15398_v42 = vld [vmem:[#allocation49_spill] sm:$0xff] }
 0x245   : > { %v14275_v44 = vrot.slane %v15380_v7, %v12199_v51  ;;  %8571 = vmatpush2.bf16.msra.mxu1 %v11686_v2  ;;  %8617 = vmatprep.subr.bf16.mxu0 %v11694_v26  ;;  %v15388_v43 = vshrl.u32 %v15387_v6, 16  ;;  %v15389_v34 = vshll.u32 %v15387_v6, 16  ;;  %v6318_v30 = vcombine.high %v15391_v50, %v15390_v3  ;;  %v15396_v2 = vld [vmem:[#allocation34_spill] sm:$0xff]  ;;  %v15399_v7 = vld [vmem:[#allocation36_spill] sm:$0xff]  ;;  %v15401_v58 = vld [vmem:[#allocation29_spill] sm:$0xff] }
 0x246   : > { %v6185_v41 = vrot.slane %v15381_v47, 2  ;;  %10879 = vmatprep.subr.bf16.mxu1 %v11695_v17  ;;  %v6187_v60 = vrot.slane %v15384_v63, 1  ;;  %v6188_v39 = vrot.slane %v15385_v54, 2  ;;  %v6333_v57 = vcombine.high %v15392_v21, %v15392_v21  ;;  %v15402_v47 = vld [vmem:[#allocation48_spill] sm:$0xff]  ;;  %v15404_v28 = vld [vmem:[#allocation54_spill] sm:$0xff] }
 0x247   : > { %v6990_v16 = vcombine.low %v15382_v18, %v14275_v44  ;;  %v6190_v33 = vrot.slane %v15388_v43, 1  ;;  %v6191_v59 = vrot.slane %v15389_v34, 2  ;;  %v15395_v14 = vor.u32 %v15393_v40, %v15394_v12  ;;  %v11704_v34 = vld [vmem:[#allocation8 + $0x5d4] ss:$8 sps:$4 sm:$0xff]  }
 0x248   : > { %v6186_v23 = vor.u32 %v6185_v41, %v15386_v20  ;;  %8618 = vmatpush2.bf16.msra.mxu0 %v11692_v53  ;;  %v6189_v19 = vor.u32 %v6188_v39, %v6187_v60  ;;  %v15397_v26 = vrot.slane %v15396_v2, 1  ;;  %v6499_v15 = vunpack.i.h.s16 %v15392_v21  ;;  %v11702_v2 = vld [vmem:[#allocation8 + $0x5d0] ss:$8 sps:$4 sm:$0xff]  }
 0x249   : > { %8573 = vmatmul.mubr.bf16.vlgmr.msra.gmra.mxu1 %v6990_v16  ;;  %8619 = vmatprep.subr.bf16.mxu0 %v11699_v4  ;;  %v6192_v17 = vor.u32 %v6191_v59, %v6190_v33  ;;  %v6332_v52 = vrot.slane %v6318_v30, %v12199_v51  ;;  %v15400_v53 = vor.u32 %v15398_v42, %v15399_v7  ;;  %v15405_v63 = vshrl.u32 %v15404_v28, 16  ;;  %v15407_v4 = vld [vmem:[#allocation44_spill] sm:$0xff]  ;;  %v11705_v59 = vld [vmem:[#allocation10 + $0x68] sm:$0xff]  }
 0x24a   : > { %v6334_v55 = vcombine.low %v15397_v26, %v15395_v14  ;;  %10880 = vmatpush3.bf16.msra.mxu1 %v11696_v27  ;;  %v15403_v41 = vor.u32 %v15401_v58, %v15402_v47  ;;  %v15406_v27 = vld [vmem:[#allocation31_spill] sm:$0xff]  ;;  %v15409_v43 = vrot.slane %v15387_v6, 1  ;;  %v15410_v3 = vshll.u32 %v15404_v28, 16  ;;  %v11710_v58 = vld [vmem:[#allocation10 + $0x60] sm:$0xff]  }
 0x24b   : > { %v14317_v60 = vrot.slane %v15405_v63, 1  ;;  %10881 = vmatprep.subr.bf16.mxu1 %v11700_v10  ;;  %v15408_v39 = vor.u32 %v15406_v27, %v15407_v4  ;;  %v6401_v21 = vcombine.low %v6189_v19, %v6192_v17  ;;  %v6503_v40 = vunpack.i.h.s16 %v6332_v52  ;;  %v15411_v6 = vld [vmem:[#allocation55_spill] sm:$0xff] }
 0x24c   : > { %v6335_v16 = vcombine.low %v15403_v41, %v15400_v53  ;;  %v6342_v54 = vrot.slane %v6334_v55, %v12199_v51  ;;  %v6400_v33 = vcombine.low %v15409_v43, %v6186_v23  ;;  %v6194_v50 = vrot.slane %v15410_v3, 2  ;;  %8620 = vmatpush2.bf16.msra.mxu0 %v11697_v25  ;;  %v11706_v19 = vld [vmem:[#allocation10 + $0x28] sm:$0xff]  }
 0x24d   : > { %v6368_v20 = vcombine.low %v15408_v39, %v6183_v1  ;;  %v10607_v12 = vpack.i.b16 %v6332_v52, %v6499_v15  ;;  %v15412_v23 = vshrl.u32 %v15411_v6, 16  ;;  %v6415_v7 = vrot.slane %v6401_v21, %v12199_v51  ;;  %v15413_v17 = vld [vmem:[#allocation35_spill] sm:$0xff]  ;;  %8621 = vmatprep.subr.bf16.mxu0 %v11704_v34  ;;  %v11714_v21 = vld [vmem:[#allocation8 + $0x5b4] ss:$8 sps:$4 sm:$0xff]  }
 0x24e   : > { %v6349_v30 = vrot.slane %v6335_v16, %v12199_v51  ;;  %v6408_v14 = vrot.slane %v6400_v33, %v12199_v51  ;;  %v6195_v1 = vor.u32 %v6194_v50, %v14317_v60  ;;  %10882 = vmatpush3.bf16.msra.mxu1 %v11701_v37  ;;  %v10609_v53 = vpack.i.b16 %v6333_v57, %v6503_v40  ;;  %v11709_v52 = vld [vmem:[#allocation8 + $0x5c4] ss:$8 sps:$4 sm:$0xff]   ;;  %v15415_v16 = vld [vmem:[#allocation57_spill] sm:$0xff]  ;;  %v11707_v39 = vld [vmem:[#allocation8 + $0x5c0] ss:$8 sps:$4 sm:$0xff]  }
 0x24f   : > { %v6382_v10 = vrot.slane %v6368_v20, %v12199_v51  ;;  %v6196_v26 = vrot.slane %v15412_v23, 1  ;;  %10883 = vmatprep.subr.bf16.mxu1 %v11705_v59  ;;  %v15414_v47 = vshll.u32 %v15411_v6, 16  ;;  %v15416_v28 = vshrl.u32 %v15415_v16, 16  ;;  %v11715_v6 = vld [vmem:[#allocation10 + $0x58] sm:$0xff]  }
 0x250   : > { %v6350_v55 = vcombine.low %v6342_v54, %v6349_v30  ;;  %v6351_v42 = vcombine.high %v6342_v54, %v6349_v30  ;;  %v6416_v57 = vcombine.low %v6408_v14, %v6415_v7  ;;  %v7130_v54 = vcombine.low %v10607_v12, %v10609_v53  ;;  %8622 = vmatpush2.bf16.msra.mxu0 %v11702_v2  ;;  %v11711_v30 = vld [vmem:[#allocation10 + $0x20] sm:$0xff]  }
 0x251   : > { %v6383_v15 = vcombine.low %v15413_v17, %v6382_v10  ;;  %v6384_v25 = vcombine.high %v15413_v17, %v6382_v10  ;;  %v6197_v41 = vrot.slane %v15414_v47, 2  ;;  %v6199_v37 = vrot.slane %v15416_v28, 1  ;;  %8623 = vmatprep.subr.bf16.mxu0 %v11709_v52  ;;  %v11712_v47 = vld [vmem:[#allocation8 + $0x5b0] ss:$8 sps:$4 sm:$0xff]  }
 0x252   : > { %v6358_v63 = vrot.slane %v6350_v55, %v12199_v51  ;;  %v6365_v60 = vrot.slane %v6351_v42, %v12199_v51  ;;  %v15417_v43 = vshll.u32 %v15415_v16, 16  ;;  %v14347_v59 = vrot.slane %v6416_v57, %v12199_v51  ;;  %10884 = vmatpush3.bf16.msra.mxu1 %v11706_v19  ;;  %v11716_v28 = vld [vmem:[#allocation10 + $0x18] sm:$0xff]   ;;  %v11720_v57 = vld [vmem:[#allocation10 + $0x50] sm:$0xff]  }
 0x253   : > { %v6391_v27 = vrot.slane %v6383_v15, %v12199_v51  ;;  %v6398_v4 = vrot.slane %v6384_v25, %v12199_v51  ;;  %v6198_v20 = vor.u32 %v6197_v41, %v6196_v26  ;;  %v7140_v50 = vrot.slane %v7130_v54, %v12199_v51  ;;  %10885 = vmatprep.subr.bf16.mxu1 %v11710_v58 }
 0x254   : > { %v6200_v33 = vrot.slane %v15417_v43, 2  ;;  %v6366_v34 = vcombine.high %v6358_v63, %v6358_v63  ;;  %v7131_v3 = vcombine.low %v6358_v63, %v6365_v60  ;;  %v6417_v55 = vcombine.high %v6408_v14, %v6415_v7  ;;  %8624 = vmatpush2.bf16.msra.mxu0 %v11707_v39  ;;  %v11719_v7 = vld [vmem:[#allocation8 + $0x5a4] ss:$8 sps:$4 sm:$0xff]   ;;  %v15419_v39 = vld [vmem:[#allocation20_spill] sm:$0xff] }
 0x255   : > { %v6399_v40 = vcombine.high %v6391_v27, %v6391_v27  ;;  %v6519_v12 = vunpack.i.h.s16 %v6391_v27  ;;  %v6523_v10 = vunpack.i.h.s16 %v6398_v4  ;;  %v6432_v42 = vcombine.high %v14347_v59, %v14347_v59  ;;  %8625 = vmatprep.subr.bf16.mxu0 %v11714_v21 }
 0x256   : > { %v6201_v2 = vor.u32 %v6200_v33, %v6199_v37  ;;  %v10611_v23 = vpack.i.b16 %v6391_v27, %v6366_v34  ;;  %v7147_v26 = vrot.slane %v7131_v3, %v12199_v51  ;;  %v15418_v19 = vrot.slane %v15415_v16, 1  ;;  %10886 = vmatpush3.bf16.msra.mxu1 %v11711_v30  ;;  %v14359_v37 = vpop.f32.mrf.mxu1  ;;  %v15421_v30 = vld [vmem:[#allocation22_spill] sm:$0xff] }
 0x257   : > { %v10613_v53 = vpack.i.b16 %v6398_v4, %v6519_v12  ;;  %v10615_v17 = vpack.i.b16 %v6399_v40, %v6523_v10  ;;  %v14356_v58 = vrot.slane %v6417_v55, %v12199_v51  ;;  %v3464_v14 = vrot.slane %v14027_v11, 1  ;;  %10887 = vmatprep.subr.bf16.mxu1 %v11715_v6  ;;  %v15424_v10 = vld [vmem:[#allocation32_spill] sm:$0xff] }
 0x258   : > { %v6433_v15 = vcombine.low %v15418_v19, %v6195_v1  ;;  %v6434_v25 = vcombine.low %v6198_v20, %v6201_v2  ;;  %v7163_v41 = vcombine.high %v7140_v50, %v7147_v26  ;;  %v7162_v52 = vcombine.low %v7140_v50, %v7147_v26  ;;  %8626 = vmatpush2.bf16.msra.mxu0 %v11712_v47  ;;  %v11717_v50 = vld [vmem:[#allocation8 + $0x5a0] ss:$8 sps:$4 sm:$0xff]   ;;  %v11724_v26 = vld [vmem:[#allocation8 + $0x594] ss:$8 sps:$4 sm:$0xff]   ;;  %v14391_v55 = vpop.f32.mrf.mxu1 }
 0x259   : > { %v7132_v63 = vcombine.low %v10611_v23, %v10613_v53  ;;  %v7133_v60 = vcombine.low %v10615_v17, %v14347_v59  ;;  %v3406_v4 = vcombine.low %v14228_v0, %v14241_v9  ;;  %v15420_v20 = vrot.slane %v15419_v39, 1  ;;  %v15423_v9 = vld [vmem:[#allocation25_spill] sm:$0xff]  ;;  %8627 = vmatprep.subr.bf16.mxu0 %v11719_v7  ;;  %v11721_v23 = vld [vmem:[#allocation10 + $0x10] sm:$0xff]  }
 0x25a   : > { %v6441_v1 = vrot.slane %v6433_v15, %v12199_v51  ;;  %v6448_v16 = vrot.slane %v6434_v25, %v12199_v51  ;;  %v14365_v54 = vrot.slane %v7163_v41, %v12199_v51  ;;  %v14368_v27 = vrot.slane %v7162_v52, %v12199_v51  ;;  %10888 = vmatpush3.bf16.msra.mxu1 %v11716_v28  ;;  %v15426_v41 = vld [vmem:[#allocation30_spill] sm:$0xff]  ;;  %v15427_v52 = vld [vmem:[#allocation41_spill] sm:$0xff] }
 0x25b   : > { %v14375_v43 = vmax.f32 %v15419_v39, %v15420_v20  ;;  %v7154_v33 = vrot.slane %v7132_v63, %v12199_v51  ;;  %v7161_v34 = vrot.slane %v7133_v60, %v12199_v51  ;;  %v15422_v21 = vrot.slane %v15421_v30, 1  ;;  %10889 = vmatprep.subr.bf16.mxu1 %v11720_v57  ;;  %v11722_v57 = vld [vmem:[#allocation8 + $0x590] ss:$8 sps:$4 sm:$0xff]   ;;  %v14410_v39 = vpop.f32.mrf.mxu1 }
 0x25c   : > { %v6449_v59 = vcombine.low %v6441_v1, %v6448_v16  ;;  %v6450_v3 = vcombine.high %v6441_v1, %v6448_v16  ;;  %v14385_v0 = vmax.f32 %v14027_v11, %v3464_v14  ;;  %v3476_v12 = vrot.slane %v15423_v9, 2  ;;  %v11725_v11 = vld [vmem:[#allocation10 + $0x48] sm:$0xff]   ;;  %8628 = vmatpush2.bf16.msra.mxu0 %v11717_v50 }
 0x25d   : > { %v14382_v40 = vmax.f32 %v15421_v30, %v15422_v21  ;;  %v15425_v2 = vrot.slane %v15424_v10, 4  ;;  %v7165_v53 = vcombine.high %v7154_v33, %v7161_v34  ;;  %v7164_v17 = vcombine.low %v7154_v33, %v7161_v34  ;;  %8629 = vmatprep.subr.bf16.mxu0 %v11724_v26  ;;  %v11726_v50 = vld [vmem:[#allocation10 + $0x8] sm:$0xff]   ;;  %v14418_v26 = vpop.f32.mrf.mxu1 }
 0x25e   : > { %v6457_v19 = vrot.slane %v6449_v59, %v12199_v51  ;;  %v6464_v15 = vrot.slane %v6450_v3, %v12199_v51  ;;  %v3477_v25 = vmax.f32 %v15423_v9, %v3476_v12  ;;  %v15428_v28 = vcombine.low %v15426_v41, %v15427_v52  ;;  %10890 = vmatpush3.bf16.msra.mxu1 %v11721_v23  ;;  %v11731_v41 = vld [vmem:[#allocation10] sm:$0xff]  }
 0x25f   : > { %v3489_v6 = vmax.f32 %v15424_v10, %v15425_v2  ;;  %v3515_v7 = vsel %vm3423_vm0, %v3341_v62, -inf  ;;  %v14405_v63 = vrot.slane %v7165_v53, %v12199_v51  ;;  %v14408_v60 = vrot.slane %v7164_v17, %v12199_v51  ;;  %10891 = vmatprep.subr.bf16.mxu1 %v11725_v11  ;;  %v11730_v10 = vld [vmem:[#allocation10 + $0x40] sm:$0xff]  }
 0x260   : > { %v3501_v14 = vsel %vm3423_vm0, %v15428_v28, -inf  ;;  %v6465_v1 = vcombine.high %v6457_v19, %v6457_v19  ;;  %v6539_v16 = vunpack.i.h.s16 %v6457_v19  ;;  %v6543_v20 = vunpack.i.h.s16 %v6464_v15  ;;  %8630 = vmatpush2.bf16.msra.mxu0 %v11722_v57  ;;  %v11727_v53 = vld [vmem:[#allocation8 + $0x580] ss:$8 sps:$4 sm:$0xff]  }
 0x261   : > { %v3490_v47 = vrot.slane %v3489_v6, 2  ;;  %v10617_v33 = vpack.i.b16 %v6457_v19, %v6432_v42  ;;  %v3478_v34 = vrot.slane %v3477_v25, 1  ;;  %v7196_v56 = vcombine.low %v14365_v54, %v14405_v63  ;;  %8631 = vmatprep.subr.bf16.mxu0 %v11729_v31  ;;  %v15429_v31 = vld [vmem:[#allocation17_spill] sm:$0xff] }
 0x262   : > { %v7194_v62 = vcombine.low %v14368_v27, %v14408_v60  ;;  %v10619_v3 = vpack.i.b16 %v6464_v15, %v6539_v16  ;;  %v3502_v30 = vrot.slane %v3501_v14, 4  ;;  %v10621_v21 = vpack.i.b16 %v6465_v1, %v6543_v20  ;;  %10892 = vmatpush3.bf16.msra.mxu1 %v11726_v50  ;;  %v14422_v1 = vpop.f32.mrf.mxu1 }
 0x263   : > { %v3491_v59 = vmax.f32 %v3489_v6, %v3490_v47  ;;  %v7266_v9 = vcombine.low %v14356_v58, %v10617_v33  ;;  %v3479_v12 = vmax.f32 %v3477_v25, %v3478_v34  ;;  %8582 = vmatprep.mubr.bf16.mxu1 %v7196_v56  ;;  %v3516_v6 = vrot.slane %v3515_v7, 4  ;;  %v11732_v58 = vld [vmem:[#allocation10 + $0xf8] sm:$0xff]   ;;  %10893 = vmatprep.subr.bf16.mxu1 %v11730_v10  ;;  %v15430_v56 = vld [vmem:[#allocation40_spill] sm:$0xff] }
 0x264   : > { %v3503_v2 = vmax.f32 %v3501_v14, %v3502_v30  ;;  %v3529_v23 = vsel %vm3423_vm0, %v3406_v4, -inf  ;;  %8583 = vmatmul.mubr.bf16.gmra.mxu1 %v7194_v62  ;;  %v7267_v17 = vcombine.low %v10619_v3, %v10621_v21  ;;  %8632 = vmatpush2.bf16.msra.mxu0 %v11727_v53  ;;  %v9539_v20 = vsel %vm9525_vm1, %v14382_v40, %v14375_v43  ;;  %v5641_v3 = vpop.f32.mrf.mxu0  ;;  %v5710_v10 = vpop.f32.mrf.mxu1 }
 0x265   : > { %v3492_v42 = vrot.slane %v3491_v59, 1  ;;  %v7274_v19 = vrot.slane %v7266_v9, %v12199_v51  ;;  %v3530_v11 = vrot.slane %v3529_v23, 4  ;;  %v3517_v47 = vmax.f32 %v3515_v7, %v3516_v6  ;;  %10901 = vmatprep.subr.bf16.mxu0 %v11732_v58  ;;  %v11733_v6 = vld [vmem:[#allocation10 + $0xb8] sm:$0xff]   ;;  %v11734_v58 = vld [vmem:[#allocation10 + $0xf0] sm:$0xff]  }
 0x266   : > { %v3504_v25 = vrot.slane %v3503_v2, 2  ;;  %v7281_v4 = vrot.slane %v7267_v17, %v12199_v51  ;;  %10894 = vmatpush3.bf16.msra.mxu1 %v11731_v41  ;;  %v6993_v62 = vcombine.high %v15430_v56, %v15429_v31  ;;  %v6991_v53 = vcombine.high %v15382_v18, %v14275_v44  ;;  %v15431_v17 = vld [vmem:[#allocation37_spill] sm:$0xff] }
 0x267   : > { %v3493_v15 = vmax.f32 %v3491_v59, %v3492_v42  ;;  %v3531_v52 = vmax.f32 %v3529_v23, %v3530_v11  ;;  %v3518_v14 = vrot.slane %v3517_v47, 2  ;;  %v9540_v59 = vsel %vm9527_vm2, %v14385_v0, %v9539_v20  ;;  %v15435_v20 = vld [vmem:[#allocation24_spill] sm:$0xff]  ;;  %v15436_v31 = vld [vmem:[#allocation33_spill] sm:$0xff] }
 0x268   : > { %v3505_v28 = vmax.f32 %v3503_v2, %v3504_v25  ;;  %v7283_v16 = vcombine.high %v7274_v19, %v7281_v4  ;;  %v7282_v57 = vcombine.low %v7274_v19, %v7281_v4  ;;  %v9541_v43 = vsel %vm9529_vm3, %v3479_v12, %v9540_v59  ;;  %8633 = vmatprep.mubr.bf16.mxu0 %v6993_v62  ;;  %v5643_v2 = vpop.f32.mrf.mxu0  ;;  %v5714_v4 = vpop.f32.mrf.mxu1 }
 0x269   : > { %v3532_v7 = vrot.slane %v3531_v52, 2  ;;  %v3519_v34 = vmax.f32 %v3517_v47, %v3518_v14  ;;  %v9542_v42 = vsel %vm9531_vm4, %v3493_v15, %v9541_v43  ;;  %v5642_v0 = vadd.f32 %v5641_v3, %v14219_v49  ;;  %8634 = vmatmul.mubr.bf16.vlgmr.msra.gmra.mxu0 %v6991_v53  ;;  %v15434_v14 = vld [vmem:[#allocation23_spill] sm:$0xff] }
 0x26a   : > { %v3506_v33 = vrot.slane %v3505_v28, 1  ;;  %v14432_v30 = vrot.slane %v7283_v16, %v12199_v51  ;;  %v14435_v50 = vrot.slane %v7282_v57, %v12199_v51  ;;  %v15432_v19 = vrot.slane %v15431_v17, 1  ;;  %v5645_v41 = vpop.f32.mrf.mxu0  ;;  %10902 = vmatpush3.bf16.msra.mxu0 %v11733_v6  ;;  %v5716_v43 = vpop.f32.mrf.mxu1  ;;  %v11736_v6 = vld [vmem:[#allocation10 + $0xe8] sm:$0xff]  }
 0x26b   : > { %v3533_v21 = vmax.f32 %v3531_v52, %v3532_v7  ;;  %v3520_v9 = vrot.slane %v3519_v34, 1  ;;  %v3499_v11 = vrot.slane %v14221_v13, 1  ;;  %v5705_v25 = vadd.f32 %v14410_v39, %v5642_v0  ;;  %10903 = vmatprep.subr.bf16.mxu0 %v11734_v58 }
 0x26c   : > { %v3507_v40 = vmax.f32 %v3505_v28, %v3506_v33  ;;  %8592 = vmatprep.mubr.bf16.mxu1 %v14432_v30  ;;  %v3486_v12 = vmax.f32 %v15431_v17, %v15432_v19  ;;  %v3513_v47 = vrot.slane %v14264_v36, 1  ;;  %v3525_v18 = vrot.slane %v14277_v38, 2  ;;  %v15433_v28 = vld [vmem:[#allocation21_spill] sm:$0xff] }
 0x26d   : > { %v3534_v23 = vrot.slane %v3533_v21, 1  ;;  %8593 = vmatmul.mubr.bf16.gmra.mxu1 %v14435_v50  ;;  %v3521_v15 = vmax.f32 %v3519_v34, %v3520_v9  ;;  %v3500_v44 = vmax.f32 %v14221_v13, %v3499_v11  ;;  %v9526_v16 = vsel %vm9525_vm1, %v15434_v14, %v15433_v28  ;;  %v5647_v34 = vpop.f32.mrf.mxu0 }
 0x26e   : > { %v9543_v49 = vsel %vm9533_vm5, %v3507_v40, %v9542_v42  ;;  %v14458_v57 = vadd.f32 %v14359_v37, %v14269_v45  ;;  %v3514_v7 = vmax.f32 %v14264_v36, %v3513_v47  ;;  %v9528_v33 = vsel %vm9527_vm2, %v15435_v20, %v9526_v16  ;;  %v11735_v45 = vld [vmem:[#allocation10 + $0xb0] sm:$0xff]   ;;  %v5718_v47 = vpop.f32.mrf.mxu1 }
 0x26f   : > { %v3535_v52 = vmax.f32 %v3533_v21, %v3534_v23  ;;  %v9544_v39 = vsel %vm9535_vm6, %v3521_v15, %v9543_v49  ;;  %v3526_v59 = vmax.f32 %v14277_v38, %v3525_v18  ;;  %v9530_v56 = vsel %vm9529_vm3, %v15436_v31, %v9528_v33  ;;  %v5651_v21 = vpop.f32.mrf.mxu0  ;;  %10904 = vmatpush3.bf16.msra.mxu0 %v11735_v45 }
 0x270   : > { %v5644_v62 = vadd.f32 %v5643_v2, %v14225_v32  ;;  %v5733_v3 = vmax.f32 %v5705_v25, 0.0  ;;  %v9532_v36 = vsel %vm9531_vm4, %v3486_v12, %v9530_v56  ;;  %v11983_v0 = vmov 1983009808   ;;  %10905 = vmatprep.subr.bf16.mxu0 %v11736_v6 }
 0x271   : > { %v9545_v13 = vsel %vm9537_vm7, %v3535_v52, %v9544_v39  ;;  %v3527_v40 = vrot.slane %v3526_v59, 1  ;;  %v9534_v9 = vsel %vm9533_vm5, %v3500_v44, %v9532_v36  ;;  %v5760_v38 = vunpack.c.l.s4 %v11983_v0  ;;  %v5653_v17 = vpop.f32.mrf.mxu0  ;;  %v15437_v44 = vld [vmem:[#allocation16_spill] sm:$0xff]  ;;  %v11739_v39 = vld [vmem:[#allocation10 + $0xa0] sm:$0xff]  }
 0x272   : > { %v9613_v37 = vpack.c.bf16 %v9545_v13, %v9545_v13  ;;  %v5707_v42 = vadd.f32 %v14418_v26, %v5644_v62  ;;  %v9536_v23 = vsel %vm9535_vm6, %v3514_v7, %v9534_v9  ;;  %v5646_v32 = vadd.f32 %v5645_v41, %v14244_v35  ;;  %v11737_v26 = vld [vmem:[#allocation10 + $0xa8] sm:$0xff]   ;;  %v5720_v13 = vpop.f32.mrf.mxu1 }
 0x273   : > { %v5648_v2 = vadd.f32 %v5647_v34, %v14247_v48  ;;  %v7197_v53 = vcombine.high %v14365_v54, %v14405_v63  ;;  %v3528_v19 = vmax.f32 %v3526_v59, %v3527_v40  ;;  %v5761_v11 = vunpack.c.0.s8 %v5760_v38  ;;  %v5655_v25 = vpop.f32.mrf.mxu0  ;;  %v11738_v54 = vld [vmem:[#allocation10 + $0xe0] sm:$0xff]   ;;  %10906 = vmatpush3.bf16.msra.mxu0 %v11737_v26  ;;  %v11741_v40 = vld [vmem:[#allocation10 + $0x98] sm:$0xff]  }
 0x274   : > { %10041 = vmatprep.mubr.bf16.mxu1 %v9613_v37  ;;  %v5734_v12 = vmax.f32 %v5707_v42, 0.0  ;;  %v5652_v58 = vadd.f32 %v5651_v21, %v14253_v61  ;;  %v5709_v15 = vadd.f32 %v14422_v1, %v5646_v32  ;;  %v7195_v35 = vcombine.high %v14368_v27, %v14408_v60  ;;  %10907 = vmatprep.subr.bf16.mxu0 %v11738_v54  ;;  %v14501_v0 = vpop.f32.mrf.mxu1  ;;  %v11742_v32 = vld [vmem:[#allocation10 + $0xd0] sm:$0xff]  }
 0x275   : > { %v5711_v49 = vadd.f32 %v5710_v10, %v5648_v2  ;;  %8643 = vmatprep.mubr.bf16.mxu0 %v7197_v53  ;;  %v5654_v48 = vadd.f32 %v5653_v17, %v14256_v29  ;;  %v9538_v63 = vsel %vm9537_vm7, %v3528_v19, %v9536_v23  ;;  %v14484_v61 = vsub.s32 %v5761_v11, %v15437_v44  ;;  %v5657_v14 = vpop.f32.mrf.mxu0 }
 0x276   : > { %v5757_v41 = vcombine.low %v5733_v3, %v5734_v12  ;;  %v5758_v52 = vcombine.high %v5733_v3, %v5734_v12  ;;  %v9612_v18 = vpack.c.bf16 %v9538_v63, %v9538_v63  ;;  %v5735_v1 = vmax.f32 %v5709_v15, 0.0  ;;  %8644 = vmatmul.mubr.bf16.gmra.mxu0 %v7195_v35  ;;  %v11743_v15 = vld [vmem:[#allocation10 + $0x90] sm:$0xff]  }
 0x277   : > { %v5736_v10 = vmax.f32 %v5711_v49, 0.0  ;;  %v5715_v28 = vadd.f32 %v5714_v4, %v5652_v58  ;;  %v5656_v60 = vadd.f32 %v5655_v25, %v14259_v22  ;;  %v5717_v16 = vadd.f32 %v5716_v43, %v5654_v48  ;;  %v11740_v4 = vld [vmem:[#allocation10 + $0xd8] sm:$0xff]   ;;  %10908 = vmatpush3.bf16.msra.mxu0 %v11739_v39  ;;  %v14515_v25 = vpop.f32.mrf.mxu1 }
 0x278   : > { %v5765_v27 = vrot.slane %v5757_v41, %v14484_v61  ;;  %v5772_v29 = vrot.slane %v5758_v52, %v14484_v61  ;;  %v14491_v7 = vadd.f32 %v14391_v55, %v14279_v46  ;;  %10042 = vmatmul.mubr.bf16.vlgmr.msra.gmra.mxu1 %v9612_v18  ;;  %v5658_v62 = vadd.f32 %v5657_v14, %v14261_v5  ;;  %v5661_v55 = vpop.f32.mrf.mxu0 }
 0x279   : > { %v5775_v20 = vcombine.low %v5735_v1, %v5736_v10  ;;  %v5776_v33 = vcombine.high %v5735_v1, %v5736_v10  ;;  %v5737_v34 = vmax.f32 %v5715_v28, 0.0  ;;  %v5738_v56 = vmax.f32 %v5717_v16, 0.0  ;;  %10909 = vmatprep.subr.bf16.mxu0 %v11740_v4 }
 0x27a   : > { %v5773_v59 = vcombine.high %v5765_v27, %v5765_v27  ;;  %v5774_v31 = vcombine.high %v5772_v29, %v5772_v29  ;;  %v5879_v22 = vrot.slane %v5772_v29, %v14484_v61  ;;  %v7299_v46 = vcombine.high %v14432_v30, %v14432_v30  ;;  %v11745_v29 = vld [vmem:[#allocation10 + $0x88] sm:$0xff]  }
 0x27b   : > { %v5783_v45 = vrot.slane %v5775_v20, %v14484_v61  ;;  %v5790_v37 = vrot.slane %v5776_v33, %v14484_v61  ;;  %v5793_v36 = vcombine.low %v5737_v34, %v5738_v56  ;;  %v5794_v21 = vcombine.high %v5737_v34, %v5738_v56  ;;  %10910 = vmatpush3.bf16.msra.mxu0 %v11741_v40  ;;  %v14525_v33 = vpop.f32.mrf.mxu1  ;;  %v11746_v34 = vld [vmem:[#allocation10 + $0xc0] sm:$0xff]  }
 0x27c   : > { %v5865_v3 = vcombine.low %v5765_v27, %v5773_v59  ;;  %v14499_v43 = vadd.f32 %v5718_v47, %v5656_v60  ;;  %8653 = vmatprep.mubr.bf16.mxu0 %v7299_v46  ;;  %v14507_v23 = vadd.f32 %v5661_v55, %v14266_v24  ;;  %v7298_v19 = vcombine.high %v14435_v50, %v14435_v50  ;;  %v11744_v47 = vld [vmem:[#allocation10 + $0xc8] sm:$0xff]  }
 0x27d   : > { %v5791_v9 = vcombine.high %v5783_v45, %v5783_v45  ;;  %v5792_v5 = vcombine.high %v5790_v37, %v5790_v37  ;;  %v5882_v42 = vcombine.low %v5774_v31, %v5783_v45  ;;  %v5801_v30 = vrot.slane %v5793_v36, %v14484_v61  ;;  %10911 = vmatprep.subr.bf16.mxu0 %v11742_v32  ;;  %v11747_v36 = vld [vmem:[#allocation10 + $0x80] sm:$0xff]  }
 0x27e   : > { %v5872_v38 = vrot.slane %v5865_v3, %v14484_v61  ;;  %v5808_v6 = vrot.slane %v5794_v21, %v14484_v61  ;;  %8654 = vmatmul.mubr.bf16.gmra.mxu0 %v7298_v19  ;;  %v14519_v41 = vadd.f32 %v5720_v13, %v5658_v62 }
 0x27f   : > { %v5889_v2 = vrot.slane %v5882_v42, %v14484_v61  ;;  %v5896_v53 = vrot.slane %v5791_v9, %v14484_v61  ;;  %v5899_v17 = vcombine.low %v5790_v37, %v5792_v5  ;;  %v5809_v58 = vcombine.high %v5801_v30, %v5801_v30  ;;  %10912 = vmatpush3.bf16.msra.mxu0 %v11743_v15  ;;  %v14531_v42 = vpop.f32.mrf.mxu1 }
 0x280   : > { %v5880_v12 = vcombine.low %v5872_v38, %v5879_v22  ;;  %v5881_v11 = vcombine.high %v5872_v38, %v5879_v22  ;;  %v5810_v26 = vcombine.high %v5808_v6, %v5808_v6  ;;  %v5913_v48 = vrot.slane %v5801_v30, %v14484_v61  ;;  %10913 = vmatprep.subr.bf16.mxu0 %v11744_v47 }
 0x281   : > { %v5897_v49 = vcombine.low %v5889_v2, %v5896_v53  ;;  %v5898_v35 = vcombine.high %v5889_v2, %v5896_v53  ;;  %v5906_v24 = vrot.slane %v5899_v17, %v14484_v61  ;;  %v5916_v63 = vcombine.low %v5809_v58, %v5808_v6  ;;  %v5663_v2 = vpop.f32.mrf.mxu0 }
 0x282   : > { %v6018_v54 = vsel %vm6017_vm8, %v5880_v12, -inf  ;;  %v6025_v50 = vsel %vm6017_vm8, %v5881_v11, -inf  ;;  %v5930_v20 = vrot.slane %v5810_v26, %v14484_v61  ;;  %v5740_v12 = vmax.f32 %v14519_v41, 0.0  ;;  %v14534_v11 = vpop.f32.mrf.mxu1 }
 0x283   : > { %v6019_v52 = vrot.slane %v6018_v54, 4  ;;  %v6026_v44 = vrot.slane %v6025_v50, 4  ;;  %v6032_v18 = vsel %vm6017_vm8, %v5897_v49, -inf  ;;  %v6039_v1 = vsel %vm6017_vm8, %v5898_v35, -inf  ;;  %10914 = vmatpush3.bf16.msra.mxu0 %v11745_v29 }
 0x284   : > { %v6033_v10 = vrot.slane %v6032_v18, 4  ;;  %v6040_v28 = vrot.slane %v6039_v1, 4  ;;  %v5914_v14 = vcombine.low %v5906_v24, %v5913_v48  ;;  %v5915_v27 = vcombine.high %v5906_v24, %v5913_v48  ;;  %10915 = vmatprep.subr.bf16.mxu0 %v11746_v34 }
 0x285   : > { %v6020_v60 = vmax.f32 %v6018_v54, %v6019_v52  ;;  %v6027_v16 = vmax.f32 %v6025_v50, %v6026_v44  ;;  %v5923_v39 = vrot.slane %v5916_v63, %v14484_v61  ;;  %v5739_v49 = vmax.f32 %v14499_v43, 0.0  ;;  %v14537_v54 = vpop.f32.mrf.mxu1 }
 0x286   : > { %v6034_v13 = vmax.f32 %v6032_v18, %v6033_v10  ;;  %v6041_v4 = vmax.f32 %v6039_v1, %v6040_v28  ;;  %v6046_v59 = vsel %vm6017_vm8, %v5914_v14, -inf  ;;  %v6053_v31 = vsel %vm6017_vm8, %v5915_v27, -inf  ;;  %v5665_v18 = vpop.f32.mrf.mxu0 }
 0x287   : > { %v6021_v56 = vrot.slane %v6020_v60, 2  ;;  %v6028_v62 = vrot.slane %v6027_v16, 2  ;;  %v5931_v22 = vcombine.low %v5923_v39, %v5930_v20  ;;  %v5932_v45 = vcombine.high %v5923_v39, %v5930_v20  ;;  %10916 = vmatpush3.bf16.msra.mxu0 %v11747_v36  ;;  %v14539_v14 = vpop.f32.mrf.mxu1 }
 0x288   : > { %v6035_v37 = vrot.slane %v6034_v13, 2  ;;  %v6042_v46 = vrot.slane %v6041_v4, 2  ;;  %v6047_v55 = vrot.slane %v6046_v59, 4  ;;  %v6054_v3 = vrot.slane %v6053_v31, 4 }
 0x289   : > { %v6022_v21 = vmax.f32 %v6020_v60, %v6021_v56  ;;  %v6029_v40 = vmax.f32 %v6027_v16, %v6028_v62  ;;  %v6060_v9 = vsel %vm6017_vm8, %v5931_v22, -inf  ;;  %v6067_v5 = vsel %vm6017_vm8, %v5932_v45, -inf  ;;  %v5667_v62 = vpop.f32.mrf.mxu0 }
 0x28a   : > { %v6036_v38 = vmax.f32 %v6034_v13, %v6035_v37  ;;  %v6043_v30 = vmax.f32 %v6041_v4, %v6042_v46  ;;  %v6048_v6 = vmax.f32 %v6046_v59, %v6047_v55  ;;  %v6055_v32 = vmax.f32 %v6053_v31, %v6054_v3  ;;  %v14545_v13 = vpop.f32.mrf.mxu1 }
 0x28b   : > { %v6023_v53 = vrot.slane %v6022_v21, 1  ;;  %v6061_v17 = vrot.slane %v6060_v9, 4  ;;  %v6068_v19 = vrot.slane %v6067_v5, 4  ;;  %v6030_v35 = vrot.slane %v6029_v40, 1 }
 0x28c   : > { %v6037_v58 = vrot.slane %v6036_v38, 1  ;;  %v6049_v26 = vrot.slane %v6048_v6, 2  ;;  %v6056_v15 = vrot.slane %v6055_v32, 2  ;;  %v6044_v24 = vrot.slane %v6043_v30, 1  ;;  %v14550_v46 = vpop.f32.mrf.mxu1 }
 0x28d   : > { %v6062_v48 = vmax.f32 %v6060_v9, %v6061_v17  ;;  %v6069_v47 = vmax.f32 %v6067_v5, %v6068_v19  ;;  %v6024_v50 = vmax.f32 %v6022_v21, %v6023_v53  ;;  %v5811_v10 = vcombine.low %v5739_v49, %v5740_v12  ;;  %v15438_v53 = vld [vmem:[#allocation39_spill] sm:$0xff] }
 0x28e   : > { %v6038_v63 = vmax.f32 %v6036_v38, %v6037_v58  ;;  %v6050_v52 = vmax.f32 %v6048_v6, %v6049_v26  ;;  %v6057_v44 = vmax.f32 %v6055_v32, %v6056_v15  ;;  %v5812_v28 = vcombine.high %v5739_v49, %v5740_v12  ;;  %v14560_v38 = vpop.f32.mrf.mxu1 }
 0x28f   : > { %v6063_v41 = vrot.slane %v6062_v48, 2  ;;  %v6070_v1 = vrot.slane %v6069_v47, 2  ;;  %v5664_v60 = vadd.f32 %v5663_v2, %v14285_v8  ;;  %v5819_v20 = vrot.slane %v5811_v10, %v14484_v61 }
 0x290   : > { %v6051_v27 = vrot.slane %v6050_v52, 1  ;;  %v6058_v43 = vrot.slane %v6057_v44, 1  ;;  %v9564_v29 = vsel %vm9525_vm1, %v6038_v63, %v6024_v50  ;;  %v5826_v34 = vrot.slane %v5812_v28, %v14484_v61  ;;  %v14569_v12 = vpop.f32.mrf.mxu1 }
 0x291   : > { %v6064_v16 = vmax.f32 %v6062_v48, %v6063_v41  ;;  %v6071_v39 = vmax.f32 %v6069_v47, %v6070_v1  ;;  %v6045_v4 = vmax.f32 %v6043_v30, %v6044_v24  ;;  %v5725_v31 = vadd.f32 %v14501_v0, %v14507_v23  ;;  %v6738_v0 = vld [vmem:[%s14889_s6] sm:$0x3] }
 0x292   : > { %v6052_v59 = vmax.f32 %v6050_v52, %v6051_v27  ;;  %v5666_v56 = vadd.f32 %v5665_v18, %v14458_v57  ;;  %v6059_v22 = vmax.f32 %v6057_v44, %v6058_v43  ;;  %v5827_v8 = vcombine.high %v5819_v20, %v5819_v20 }
 0x293   : > { %v6065_v45 = vrot.slane %v6064_v16, 1  ;;  %v6072_v37 = vrot.slane %v6071_v39, 1  ;;  %v6031_v55 = vmax.f32 %v6029_v40, %v6030_v35  ;;  %v5947_v36 = vrot.slane %v5826_v34, %v14484_v61 }
 0x294   : > { %v9565_v3 = vsel %vm9527_vm2, %v6052_v59, %v9564_v29  ;;  %v5727_v21 = vadd.f32 %v14515_v25, %v5664_v60  ;;  %v5933_v57 = vcombine.low %v5819_v20, %v5827_v8  ;;  %v5668_v9 = vadd.f32 %v5667_v62, %v14491_v7 }
 0x295   : > { %v6066_v23 = vmax.f32 %v6064_v16, %v6065_v45  ;;  %v5729_v5 = vadd.f32 %v14525_v33, %v5666_v56  ;;  %v5741_v30 = vmax.f32 %v5725_v31, 0.0  ;;  %v6073_v6 = vmax.f32 %v6071_v39, %v6072_v37 }
 0x296   : > { %v5742_v40 = vmax.f32 %v5727_v21, 0.0  ;;  %v9571_v32 = vsel %vm9525_vm1, %v6045_v4, %v6031_v55  ;;  %v5940_v2 = vrot.slane %v5933_v57, %v14484_v61  ;;  %v5731_v25 = vadd.f32 %v14531_v42, %v5668_v9  ;;  %v14577_v42 = vpop.f32.mrf.mxu1 }
 0x297   : > { %v14566_v17 = vrot.slane %v6738_v0, %v15438_v53  ;;  %v9572_v19 = vsel %vm9527_vm2, %v6059_v22, %v9571_v32  ;;  %v5743_v58 = vmax.f32 %v5729_v5, 0.0  ;;  %v14575_v24 = vsel %vm9529_vm3, %v6066_v23, %v9565_v3  ;;  %v15439_v3 = vld [vmem:[#allocation52_spill] sm:$0xff] }
 0x298   : > { %v5829_v7 = vcombine.low %v5741_v30, %v5742_v40  ;;  %v5830_v33 = vcombine.high %v5741_v30, %v5742_v40  ;;  %v14572_v26 = vsel %vm9529_vm3, %v6073_v6, %v9572_v19  ;;  %v5948_v15 = vcombine.low %v5940_v2, %v5947_v36  ;;  %v14583_v41 = vpop.f32.mrf.mxu1 }
 0x299   : > { %v5949_v49 = vcombine.high %v5940_v2, %v5947_v36  ;;  %v5744_v35 = vmax.f32 %v5731_v25, 0.0  ;;  %v5828_v48 = vcombine.high %v5826_v34, %v5826_v34  ;;  %v8331_v16 = vadd.f32 %v14534_v11, %v14566_v17 }
 0x29a   : > { %v5837_v47 = vrot.slane %v5829_v7, %v14484_v61  ;;  %v5844_v50 = vrot.slane %v5830_v33, %v14484_v61  ;;  %v6074_v63 = vsel %vm6017_vm8, %v5948_v15, -inf  ;;  %v14589_v39 = vpop.f32.mrf.mxu1  ;;  %v14596_v11 = vrot.slane %v6738_v0, %v15439_v3 }
 0x29b   : > { %v6081_v52 = vsel %vm6017_vm8, %v5949_v49, -inf  ;;  %v5847_v44 = vcombine.low %v5743_v58, %v5744_v35  ;;  %v5848_v18 = vcombine.high %v5743_v58, %v5744_v35  ;;  %v6075_v1 = vrot.slane %v6074_v63, 4 }
 0x29c   : > { %v6082_v10 = vrot.slane %v6081_v52, 4  ;;  %v5845_v28 = vcombine.high %v5837_v47, %v5837_v47  ;;  %v5846_v27 = vcombine.high %v5844_v50, %v5844_v50  ;;  %v5950_v43 = vcombine.low %v5828_v48, %v5837_v47  ;;  %v8354_v45 = vpop.f32.mrf.mxu1 }
 0x29d   : > { %v5855_v29 = vrot.slane %v5847_v44, %v14484_v61  ;;  %v5862_v60 = vrot.slane %v5848_v18, %v14484_v61  ;;  %v6076_v20 = vmax.f32 %v6074_v63, %v6075_v1  ;;  %v8335_v57 = vadd.f32 %v14539_v14, %v14566_v17 }
 0x29e   : > { %v6083_v34 = vmax.f32 %v6081_v52, %v6082_v10  ;;  %v5964_v4 = vrot.slane %v5845_v28, %v14484_v61  ;;  %v5967_v59 = vcombine.low %v5844_v50, %v5846_v27  ;;  %v5957_v31 = vrot.slane %v5950_v43, %v14484_v61  ;;  %v8355_v9 = vpop.f32.mrf.mxu1 }
 0x29f   : > { %v5863_v56 = vcombine.high %v5855_v29, %v5855_v29  ;;  %v5864_v62 = vcombine.high %v5862_v60, %v5862_v60  ;;  %v5981_v22 = vrot.slane %v5855_v29, %v14484_v61  ;;  %v6077_v37 = vrot.slane %v6076_v20, 2 }
 0x2a0   : > { %v6084_v8 = vrot.slane %v6083_v34, 2  ;;  %v5974_v55 = vrot.slane %v5967_v59, %v14484_v61  ;;  %v5965_v36 = vcombine.low %v5957_v31, %v5964_v4  ;;  %v5966_v21 = vcombine.high %v5957_v31, %v5964_v4 }
 0x2a1   : > { %v5984_v23 = vcombine.low %v5863_v56, %v5862_v60  ;;  %v6078_v5 = vmax.f32 %v6076_v20, %v6077_v37  ;;  %v5998_v0 = vrot.slane %v5864_v62, %v14484_v61  ;;  %v8333_v50 = vadd.f32 %v14537_v54, %v14596_v11  ;;  %v8391_v60 = vpop.f32.mrf.mxu0 }
 0x2a2   : > { %v6085_v30 = vmax.f32 %v6083_v34, %v6084_v8  ;;  %v5982_v40 = vcombine.low %v5974_v55, %v5981_v22  ;;  %v5983_v6 = vcombine.high %v5974_v55, %v5981_v22  ;;  %v6088_v32 = vsel %vm6017_vm8, %v5965_v36, -inf }
 0x2a3   : > { %v6095_v2 = vsel %vm6017_vm8, %v5966_v21, -inf  ;;  %v5991_v25 = vrot.slane %v5984_v23, %v14484_v61  ;;  %v6079_v53 = vrot.slane %v6078_v5, 1  ;;  %v6089_v7 = vrot.slane %v6088_v32, 4  ;;  %v8393_v45 = vpop.f32.mrf.mxu0 }
 0x2a4   : > { %v6086_v19 = vrot.slane %v6085_v30, 1  ;;  %v6096_v33 = vrot.slane %v6095_v2, 4  ;;  %v6102_v14 = vsel %vm6017_vm8, %v5982_v40, -inf  ;;  %v6109_v49 = vsel %vm6017_vm8, %v5983_v6, -inf }
 0x2a5   : > { %v5999_v58 = vcombine.low %v5991_v25, %v5998_v0  ;;  %v6000_v15 = vcombine.high %v5991_v25, %v5998_v0  ;;  %v6090_v35 = vmax.f32 %v6088_v32, %v6089_v7  ;;  %v6103_v47 = vrot.slane %v6102_v14, 4  ;;  %v8395_v9 = vpop.f32.mrf.mxu0 }
 0x2a6   : > { %v6097_v48 = vmax.f32 %v6095_v2, %v6096_v33  ;;  %v6110_v63 = vrot.slane %v6109_v49, 4  ;;  %v6087_v44 = vmax.f32 %v6085_v30, %v6086_v19  ;;  %v6080_v27 = vmax.f32 %v6078_v5, %v6079_v53 }
 0x2a7   : > { %v6116_v52 = vsel %vm6017_vm8, %v5999_v58, -inf  ;;  %v6123_v61 = vsel %vm6017_vm8, %v6000_v15, -inf  ;;  %v6091_v18 = vrot.slane %v6090_v35, 2  ;;  %v6104_v10 = vmax.f32 %v6102_v14, %v6103_v47  ;;  %v8397_v25 = vpop.f32.mrf.mxu0 }
 0x2a8   : > { %v6098_v1 = vrot.slane %v6097_v48, 2  ;;  %v6117_v28 = vrot.slane %v6116_v52, 4  ;;  %v6111_v43 = vmax.f32 %v6109_v49, %v6110_v63  ;;  %v6124_v29 = vrot.slane %v6123_v61, 4 }
 0x2a9   : > { %v8341_v20 = vadd.f32 %v14550_v46, %v14566_v17  ;;  %v6092_v34 = vmax.f32 %v6090_v35, %v6091_v18  ;;  %v6105_v4 = vrot.slane %v6104_v10, 2  ;;  %v9574_v62 = vsel %vm9531_vm4, %v6087_v44, %v14572_v26  ;;  %v8401_v14 = vpop.f32.mrf.mxu0 }
 0x2aa   : > { %v6118_v54 = vmax.f32 %v6116_v52, %v6117_v28  ;;  %v6099_v59 = vmax.f32 %v6097_v48, %v6098_v1  ;;  %v6112_v31 = vrot.slane %v6111_v43, 2  ;;  %v6125_v56 = vmax.f32 %v6123_v61, %v6124_v29 }
 0x2ab   : > { %v8392_v22 = vadd.f32 %v8391_v60, %v8331_v16  ;;  %v6093_v37 = vrot.slane %v6092_v34, 1  ;;  %v6106_v8 = vmax.f32 %v6104_v10, %v6105_v4  ;;  %v9567_v46 = vsel %vm9531_vm4, %v6080_v27, %v14575_v24  ;;  %v8403_v47 = vpop.f32.mrf.mxu0 }
 0x2ac   : > { %v6119_v55 = vrot.slane %v6118_v54, 2  ;;  %v6100_v3 = vrot.slane %v6099_v59, 1  ;;  %v6113_v36 = vmax.f32 %v6111_v43, %v6112_v31  ;;  %v6126_v21 = vrot.slane %v6125_v56, 2 }
 0x2ad   : > { %v8394_v23 = vadd.f32 %v8393_v45, %v8333_v50  ;;  %v6094_v5 = vmax.f32 %v6092_v34, %v6093_v37  ;;  %v6107_v30 = vrot.slane %v6106_v8, 1  ;;  %v8337_v26 = vadd.f32 %v14545_v13, %v14596_v11  ;;  %v8405_v18 = vpop.f32.mrf.mxu0 }
 0x2ae   : > { %v6120_v40 = vmax.f32 %v6118_v54, %v6119_v55  ;;  %v6101_v6 = vmax.f32 %v6099_v59, %v6100_v3  ;;  %v6114_v32 = vrot.slane %v6113_v36, 1  ;;  %v6127_v2 = vmax.f32 %v6125_v56, %v6126_v21 }
 0x2af   : > { %v8396_v16 = vadd.f32 %v8395_v9, %v8335_v57  ;;  %v6108_v0 = vmax.f32 %v6106_v8, %v6107_v30  ;;  %v9568_v19 = vsel %vm9533_vm5, %v6094_v5, %v9567_v46  ;;  %v8343_v24 = vadd.f32 %v14560_v38, %v14596_v11 }
 0x2b0   : > { %v6121_v53 = vrot.slane %v6120_v40, 1  ;;  %v6115_v7 = vmax.f32 %v6113_v36, %v6114_v32  ;;  %v6128_v33 = vrot.slane %v6127_v2, 1  ;;  %v9575_v58 = vsel %vm9533_vm5, %v6101_v6, %v9574_v62 }
 0x2b1   : > { %v8398_v15 = vadd.f32 %v8397_v25, %v8337_v26  ;;  %v8345_v35 = vadd.f32 %v14569_v12, %v14566_v17  ;;  %v8402_v13 = vadd.f32 %v8401_v14, %v8341_v20  ;;  %v9569_v48 = vsel %vm9535_vm6, %v6108_v0, %v9568_v19  ;;  %v8407_v12 = vpop.f32.mrf.mxu0 }
 0x2b2   : > { %v6122_v49 = vmax.f32 %v6120_v40, %v6121_v53  ;;  %v6129_v57 = vmax.f32 %v6127_v2, %v6128_v33  ;;  %v9576_v50 = vsel %vm9535_vm6, %v6115_v7, %v9575_v58  ;;  %v8347_v38 = vadd.f32 %v14577_v42, %v14596_v11 }
 0x2b3   : > { %v8404_v52 = vadd.f32 %v8403_v47, %v8343_v24  ;;  %v8406_v10 = vadd.f32 %v8405_v18, %v8345_v35  ;;  %v8351_v27 = vadd.f32 %v14583_v41, %v14566_v17  ;;  %v8353_v43 = vadd.f32 %v14589_v39, %v14596_v11  ;;  %v11749_v35 = vld [vmem:[#allocation10 + $0x138] sm:$0xff]   ;;  %v11754_v18 = vld [vmem:[#allocation10 + $0x160] sm:$0xff]  }
 0x2b4   : > { %v9570_v63 = vsel %vm9537_vm7, %v6122_v49, %v9569_v48  ;;  %v9577_v61 = vsel %vm9537_vm7, %v6129_v57, %v9576_v50  ;;  %v8408_v28 = vadd.f32 %v8407_v12, %v8347_v38  ;;  %v11748_v49 = vld [vmem:[#allocation10 + $0x178] sm:$0xff]   ;;  %v11751_v50 = vld [vmem:[#allocation10 + $0x130] sm:$0xff]   ;;  %v11752_v38 = vld [vmem:[#allocation10 + $0x168] sm:$0xff]  }
 0x2b5   : > { %v9614_v44 = vpack.c.bf16 %v9570_v63, %v9570_v63  ;;  %v9615_v1 = vpack.c.bf16 %v9577_v61, %v9577_v61  ;;  %10923 = vmatprep.subr.bf16.mxu1 %v11748_v49  ;;  %v11757_v12 = vld [vmem:[#allocation10 + $0x118] sm:$0xff]  }
 0x2b6   : > { %10924 = vmatpush3.bf16.msra.mxu1 %v11749_v35 }
 0x2b7   : > { %10081 = vmatprep.mubr.bf16.mxu0 %v9615_v1  ;;  %v11755_v1 = vld [vmem:[#allocation10 + $0x120] sm:$0xff]  }
 0x2b8   : > { %10082 = vmatmul.mubr.bf16.vlgmr.msra.gmra.mxu0 %v9614_v44  ;;  %v8411_v29 = vpop.f32.mrf.mxu0  ;;  %v11753_v44 = vld [vmem:[#allocation10 + $0x128] sm:$0xff]  }
 0x2b9   : > { %v8412_v60 = vadd.f32 %v8411_v29, %v8351_v27  ;;  %v11759_v27 = vld [vmem:[#allocation10 + $0x110] sm:$0xff]   ;;  %v11761_v29 = vld [vmem:[#allocation10 + $0x108] sm:$0xff]  }
 0x2ba   : > { %v8413_v42 = vpop.f32.mrf.mxu0 }
 0x2bb   : > { %v8414_v20 = vadd.f32 %v8413_v42, %v8353_v43  ;;  %v11760_v43 = vld [vmem:[#allocation10 + $0x148] sm:$0xff]  }
 0x2bc   : > { %v8415_v34 = vpop.f32.mrf.mxu0 }
 0x2be   : > { %v8416_v4 = vpop.f32.mrf.mxu0 }
 0x2c5   : > { %v8452_v54 = vpop.f32.mrf.mxu1 }
 0x2c6   : > { %v8453_v59 = vadd.f32 %v8452_v54, %v8392_v22 }
 0x2c7   : > { %v8454_v31 = vpop.f32.mrf.mxu1 }
 0x2c8   : > { %v8455_v56 = vadd.f32 %v8454_v31, %v8394_v23 }
 0x2c9   : > { %v8456_v62 = vpop.f32.mrf.mxu1 }
 0x2ca   : > { %v8457_v45 = vadd.f32 %v8456_v62, %v8396_v16 }
 0x2cb   : > { %v8458_v37 = vpop.f32.mrf.mxu1 }
 0x2cc   : > { %v8459_v8 = vadd.f32 %v8458_v37, %v8398_v15 }
 0x2ce   : > { %v8462_v55 = vpop.f32.mrf.mxu1 }
 0x2cf   : > { %v8463_v3 = vadd.f32 %v8462_v55, %v8402_v13  ;;  %v11750_v13 = vld [vmem:[#allocation10 + $0x170] sm:$0xff]  }
 0x2d0   : > { %v8464_v17 = vpop.f32.mrf.mxu1  ;;  %10925 = vmatprep.subr.bf16.mxu1 %v11750_v13 }
 0x2d1   : > { %v8465_v41 = vadd.f32 %v8464_v17, %v8404_v52  ;;  %10926 = vmatpush3.bf16.msra.mxu1 %v11751_v50 }
 0x2d2   : > { %v8466_v36 = vpop.f32.mrf.mxu1  ;;  %10927 = vmatprep.subr.bf16.mxu1 %v11752_v38 }
 0x2d3   : > { %v8467_v39 = vadd.f32 %v8466_v36, %v8406_v10  ;;  %v11756_v10 = vld [vmem:[#allocation10 + $0x158] sm:$0xff]  }
 0x2d4   : > { %v8468_v11 = vpop.f32.mrf.mxu1 }
 0x2d5   : > { %v8469_v21 = vadd.f32 %v8468_v11, %v8408_v28  ;;  %10928 = vmatpush3.bf16.msra.mxu1 %v11753_v44  ;;  %v11758_v28 = vld [vmem:[#allocation10 + $0x150] sm:$0xff]  }
 0x2d6   : > { %10929 = vmatprep.subr.bf16.mxu1 %v11754_v18 }
 0x2d9   : > { %v8472_v46 = vpop.f32.mrf.mxu1  ;;  %10930 = vmatpush3.bf16.msra.mxu1 %v11755_v1  ;;  %v10826_v1 = vld [vmem:[%s14891_s8] ss:$0 sm:$0xff] }
 0x2da   : > { %v8473_v9 = vadd.f32 %v8472_v46, %v8412_v60  ;;  %10931 = vmatprep.subr.bf16.mxu1 %v11756_v10  ;;  %v11762_v60 = vld [vmem:[#allocation10 + $0x140] sm:$0xff]  }
 0x2db   : > { %v8474_v5 = vpop.f32.mrf.mxu1 }
 0x2dc   : > { %v8475_v30 = vadd.f32 %v8474_v5, %v8414_v20  ;;  %v11763_v20 = vld [vmem:[#allocation10 + $0x100] sm:$0xff]  }
 0x2dd   : > { %v8476_v40 = vpop.f32.mrf.mxu1  ;;  %10932 = vmatpush3.bf16.msra.mxu1 %v11757_v12 }
 0x2de   : > { %10933 = vmatprep.subr.bf16.mxu1 %v11758_v28 }
 0x2df   : > { %v8477_v22 = vpop.f32.mrf.mxu1 }
 0x2e1   : > { %10934 = vmatpush3.bf16.msra.mxu1 %v11759_v27 }
 0x2e2   : > { %10935 = vmatprep.subr.bf16.mxu1 %v11760_v43 }
 0x2e5   : > { %10936 = vmatpush3.bf16.msra.mxu1 %v11761_v29 }
 0x2e6   : > { %v8513_v6 = vpop.f32.mrf.mxu0  ;;  %10937 = vmatprep.subr.bf16.mxu1 %v11762_v60 }
 0x2e7   : > { %v8514_v23 = vadd.f32 %v8513_v6, %v8453_v59 }
 0x2e8   : > { %v8515_v32 = vpop.f32.mrf.mxu0 }
 0x2e9   : > { %v8516_v2 = vadd.f32 %v8515_v32, %v8455_v56  ;;  %10938 = vmatpush3.bf16.msra.mxu1 %v11763_v20 }
 0x2ea   : > { %v8517_v26 = vpop.f32.mrf.mxu0 }
 0x2eb   : > { %v14634_v16 = vadd.f32 %v8517_v26, %v8457_v45 }
 0x2ec   : > { %v8519_v25 = vpop.f32.mrf.mxu0 }
 0x2ed   : > { %v14636_v0 = vadd.f32 %v8519_v25, %v8459_v8 }
 0x2ef   : > { %v8523_v53 = vpop.f32.mrf.mxu0 }
 0x2f0   : > { %v14638_v19 = vadd.f32 %v8523_v53, %v8463_v3 }
 0x2f1   : > { %v8525_v24 = vpop.f32.mrf.mxu0 }
 0x2f2   : > { %v14640_v7 = vadd.f32 %v8525_v24, %v8465_v41 }
 0x2f3   : > { %v8527_v33 = vpop.f32.mrf.mxu0 }
 0x2f4   : > { %v14642_v58 = vadd.f32 %v8527_v33, %v8467_v39 }
 0x2f5   : > { %v8529_v15 = vpop.f32.mrf.mxu0 }
 0x2f6   : > { %v14644_v14 = vadd.f32 %v8529_v15, %v8469_v21 }
 0x2f7   : > { %v8533_v57 = vpop.f32.mrf.mxu0 }
 0x2f8   : > { %v14646_v48 = vadd.f32 %v8533_v57, %v8473_v9 }
 0x2f9   : > { %v8535_v47 = vpop.f32.mrf.mxu0 }
 0x2fa   : > { %v14648_v63 = vadd.f32 %v8535_v47, %v8475_v30 }
 0x2fb   : > { %v8537_v52 = vpop.f32.mrf.mxu0 }
 0x2fd   : > { %v8538_v61 = vpop.f32.mrf.mxu0 }
 0x309   : > { %v8574_v42 = vpop.f32.mrf.mxu1 }
 0x30a   : > { %v8575_v45 = vadd.f32 %v8574_v42, %v8514_v23 }
 0x30b   : > { %v8576_v34 = vpop.f32.mrf.mxu1 }
 0x30c   : > { %v8577_v55 = vadd.f32 %v8576_v34, %v8516_v2 }
 0x30d   : > { %v8578_v4 = vpop.f32.mrf.mxu1 }
 0x30e   : > { %v8579_v11 = vadd.f32 %v8578_v4, %v14634_v16 }
 0x30f   : > { %v8580_v54 = vpop.f32.mrf.mxu1 }
 0x310   : > { %v8581_v46 = vadd.f32 %v8580_v54, %v14636_v0 }
 0x324   : > { %v8584_v59 = vpop.f32.mrf.mxu1 }
 0x325   : > { %v8585_v2 = vadd.f32 %v8584_v59, %v14638_v19 }
 0x326   : > { %v8586_v31 = vpop.f32.mrf.mxu1 }
 0x327   : > { %v8587_v26 = vadd.f32 %v8586_v31, %v14640_v7 }
 0x328   : > { %v8588_v56 = vpop.f32.mrf.mxu1 }
 0x329   : > { %v8635_v8 = vpop.f32.mrf.mxu0  ;;  %v14655_v25 = vadd.f32 %v8588_v56, %v14642_v58 }
 0x32a   : > { %v8590_v62 = vpop.f32.mrf.mxu1  ;;  %v8636_v17 = vadd.f32 %v8635_v8, %v8575_v45 }
 0x32b   : > { %v8637_v41 = vpop.f32.mrf.mxu0  ;;  %v14658_v16 = vadd.f32 %v8590_v62, %v14644_v14 }
 0x32c   : > { %v8638_v39 = vadd.f32 %v8637_v41, %v8577_v55  ;;  %v8662_v5 = vmax.f32 %v8636_v17, 0.0 }
 0x32d   : > { %v8594_v37 = vpop.f32.mrf.mxu1  ;;  %v8639_v21 = vpop.f32.mrf.mxu0 }
 0x32e   : > { %v8663_v30 = vmax.f32 %v8638_v39, 0.0  ;;  %v8640_v40 = vadd.f32 %v8639_v21, %v8579_v11  ;;  %v14663_v15 = vadd.f32 %v8594_v37, %v14646_v48 }
 0x32f   : > { %v8596_v3 = vpop.f32.mrf.mxu1  ;;  %v8641_v22 = vpop.f32.mrf.mxu0 }
 0x330   : > { %v8682_v6 = vcombine.low %v8662_v5, %v8663_v30  ;;  %v8683_v23 = vcombine.high %v8662_v5, %v8663_v30  ;;  %v8642_v32 = vadd.f32 %v8641_v22, %v8581_v46  ;;  %v14666_v49 = vadd.f32 %v8596_v3, %v14648_v63 }
 0x331   : > { %v8598_v36 = vpop.f32.mrf.mxu1  ;;  %v8664_v19 = vmax.f32 %v8640_v40, 0.0 }
 0x332   : > { %v8690_v0 = vrot.slane %v8682_v6, %v12199_v51  ;;  %v8697_v53 = vrot.slane %v8683_v23, %v12199_v51  ;;  %v8665_v24 = vmax.f32 %v8642_v32, 0.0 }
 0x333   : > { %v8599_v9 = vpop.f32.mrf.mxu1 }
 0x334   : > { %v8698_v35 = vcombine.high %v8690_v0, %v8690_v0  ;;  %v8699_v13 = vcombine.high %v8697_v53, %v8697_v53  ;;  %v8706_v14 = vrot.slane %v8690_v0, %v12199_v51  ;;  %v8713_v57 = vrot.slane %v8697_v53, %v12199_v51 }
 0x335   : > { %v8732_v50 = vcombine.low %v8664_v19, %v8665_v24  ;;  %v8733_v38 = vcombine.high %v8664_v19, %v8665_v24 }
 0x336   : > { %v8645_v33 = vpop.f32.mrf.mxu0  ;;  %v8720_v61 = vrot.slane %v8698_v35, %v12199_v51  ;;  %v8727_v63 = vrot.slane %v8699_v13, %v12199_v51  ;;  %v8729_v44 = vcombine.high %v8713_v57, %v8713_v57  ;;  %v8954_v18 = vrot.slane %v8713_v57, %v12199_v51 }
 0x337   : > { %v14668_v7 = vadd.f32 %v8645_v33, %v8585_v2  ;;  %v8740_v27 = vrot.slane %v8732_v50, %v12199_v51  ;;  %v8747_v43 = vrot.slane %v8733_v38, %v12199_v51 }
 0x338   : > { %v10895_v58 = vpop.f32.mrf.mxu1  ;;  %v8647_v47 = vpop.f32.mrf.mxu0  ;;  %v8932_v60 = vcombine.low %v8706_v14, %v8720_v61  ;;  %v10822_v42 = vcombine.high %v8706_v14, %v8720_v61  ;;  %v8957_v20 = vcombine.high %v8954_v18, %v8954_v18  ;;  %v8978_v34 = vrot.slane %v8954_v18, %v12199_v51 }
 0x339   : > { %v8666_v52 = vmax.f32 %v14668_v7, 0.0  ;;  %v8648_v48 = vadd.f32 %v8647_v47, %v8587_v26  ;;  %v8988_v59 = vcombine.low %v8727_v63, %v8729_v44  ;;  %v8731_v56 = vcombine.high %v8727_v63, %v8727_v63 }
 0x33a   : > { %v10896_v10 = vpop.f32.mrf.mxu1  ;;  %v14679_v12 = vpop.f32.mrf.mxu0  ;;  %v8748_v62 = vcombine.high %v8740_v27, %v8740_v27  ;;  %v8940_v45 = vrot.slane %v8932_v60, %v12199_v51  ;;  %v8947_v37 = vrot.slane %v10822_v42, %v12199_v51  ;;  %v8985_v8 = vrot.slane %v8957_v20, %v12199_v51 }
 0x33b   : > { %v10897_v28 = vadd.f32 %v10896_v10, %v10895_v58  ;;  %v8667_v29 = vmax.f32 %v8648_v48, 0.0  ;;  %v8749_v55 = vcombine.high %v8747_v43, %v8747_v43  ;;  %v8996_v17 = vrot.slane %v8988_v59, %v12199_v51 }
 0x33c   : > { %v10898_v4 = vpop.f32.mrf.mxu1  ;;  %v14684_v54 = vpop.f32.mrf.mxu0  ;;  %v8756_v41 = vrot.slane %v8740_v27, %v12199_v51  ;;  %v8763_v36 = vrot.slane %v8747_v43, %v12199_v51  ;;  %v8770_v39 = vrot.slane %v8748_v62, %v12199_v51  ;;  %v8955_v11 = vcombine.low %v8940_v45, %v8947_v37 }
 0x33d   : > { %v14686_v31 = vadd.f32 %v10897_v28, %v10826_v1  ;;  %v8956_v21 = vcombine.high %v8940_v45, %v8947_v37  ;;  %v14696_v46 = vrot.slane %v8749_v55, %v12199_v51  ;;  %v8782_v9 = vcombine.low %v8666_v52, %v8667_v29 }
 0x33e   : > { %v10899_v3 = vpop.f32.mrf.mxu1  ;;  %v14698_v5 = vpop.f32.mrf.mxu0  ;;  %v8779_v30 = vcombine.high %v8763_v36, %v8763_v36  ;;  %v8989_v40 = vcombine.low %v8731_v56, %v8756_v41  ;;  %v9010_v22 = vrot.slane %v8770_v39, %v12199_v51  ;;  %v10823_v6 = vcombine.high %v8756_v41, %v8770_v39 }
 0x33f   : > { %v8964_v23 = vrot.slane %v8955_v11, %v12199_v51  ;;  %v8971_v32 = vrot.slane %v8956_v21, %v12199_v51  ;;  %v9045_v2 = vcombine.low %v8763_v36, %v14696_v46  ;;  %v8781_v26 = vcombine.high %v14696_v46, %v14696_v46 }
 0x340   : > { %v14706_v0 = vpop.f32.mrf.mxu0  ;;  %v9003_v53 = vrot.slane %v8989_v40, %v12199_v51  ;;  %v9013_v24 = vcombine.high %v9010_v22, %v9010_v22  ;;  %v9034_v33 = vrot.slane %v9010_v22, %v12199_v51  ;;  %v9052_v19 = vrot.slane %v10823_v6, %v12199_v51 }
 0x341   : > { %v8986_v7 = vcombine.low %v8964_v23, %v8978_v34  ;;  %v8987_v58 = vcombine.low %v8971_v32, %v8985_v8  ;;  %v9059_v35 = vrot.slane %v9045_v2, %v12199_v51  ;;  %v9066_v13 = vrot.slane %v8779_v30, %v12199_v51 }
 0x342   : > { %v8659_v14 = vpop.f32.mrf.mxu0  ;;  %v9011_v57 = vcombine.low %v8996_v17, %v9003_v53  ;;  %v9012_v47 = vcombine.high %v8996_v17, %v9003_v53  ;;  %v9041_v50 = vrot.slane %v9013_v24, %v12199_v51  ;;  %v8783_v38 = vcombine.high %v8666_v52, %v8667_v29 }
 0x343   : > { %v9397_v48 = vsel %vm9396_vm9, %v8986_v7, -inf  ;;  %v9404_v61 = vsel %vm9396_vm9, %v8987_v58, -inf  ;;  %v9067_v63 = vcombine.low %v9052_v19, %v9059_v35  ;;  %v9068_v44 = vcombine.high %v9052_v19, %v9059_v35 }
 0x344   : > { %v8660_v18 = vpop.f32.mrf.mxu0  ;;  %v9398_v1 = vrot.slane %v9397_v48, 4  ;;  %v9405_v10 = vrot.slane %v9404_v61, 4  ;;  %v9020_v28 = vrot.slane %v9011_v57, %v12199_v51  ;;  %v9027_v27 = vrot.slane %v9012_v47, %v12199_v51 }
 0x345   : > { %v9069_v43 = vcombine.high %v9066_v13, %v9066_v13  ;;  %v9076_v60 = vrot.slane %v9067_v63, %v12199_v51  ;;  %v9083_v42 = vrot.slane %v9068_v44, %v12199_v51  ;;  %v9090_v52 = vrot.slane %v9066_v13, %v12199_v51 }
 0x346   : > { %v9399_v29 = vmax.f32 %v9397_v48, %v9398_v1  ;;  %v9406_v20 = vmax.f32 %v9404_v61, %v9405_v10  ;;  %v9042_v34 = vcombine.low %v9020_v28, %v9034_v33  ;;  %v9043_v4 = vcombine.low %v9027_v27, %v9041_v50 }
 0x347   : > { %v9097_v59 = vrot.slane %v9069_v43, %v12199_v51  ;;  %v9098_v56 = vcombine.low %v9076_v60, %v9090_v52  ;;  %v8790_v62 = vrot.slane %v8782_v9, %v12199_v51  ;;  %v8797_v45 = vrot.slane %v8783_v38, %v12199_v51 }
 0x348   : > { %v9400_v37 = vrot.slane %v9399_v29, 2  ;;  %v9407_v8 = vrot.slane %v9406_v20, 2  ;;  %v9411_v55 = vsel %vm9396_vm9, %v9042_v34, -inf  ;;  %v9418_v3 = vsel %vm9396_vm9, %v9043_v4, -inf }
 0x349   : > { %v9099_v17 = vcombine.low %v9083_v42, %v9097_v59  ;;  %v9412_v41 = vrot.slane %v9411_v55, 4  ;;  %v9419_v36 = vrot.slane %v9418_v3, 4  ;;  %v9425_v39 = vsel %vm9396_vm9, %v9098_v56, -inf }
 0x34a   : > { %v9401_v11 = vmax.f32 %v9399_v29, %v9400_v37  ;;  %v9408_v21 = vmax.f32 %v9406_v20, %v9407_v8  ;;  %v9426_v30 = vrot.slane %v9425_v39, 4  ;;  %v8798_v40 = vcombine.high %v8790_v62, %v8790_v62 }
 0x34b   : > { %v9413_v22 = vmax.f32 %v9411_v55, %v9412_v41  ;;  %v9420_v6 = vmax.f32 %v9418_v3, %v9419_v36  ;;  %v9432_v9 = vsel %vm9396_vm9, %v9099_v17, -inf  ;;  %v8799_v23 = vcombine.high %v8797_v45, %v8797_v45 }
 0x34c   : > { %v9402_v32 = vrot.slane %v9401_v11, 1  ;;  %v9409_v2 = vrot.slane %v9408_v21, 1  ;;  %v9427_v53 = vmax.f32 %v9425_v39, %v9426_v30  ;;  %v9433_v24 = vrot.slane %v9432_v9, 4 }
 0x34d   : > { %v9414_v33 = vrot.slane %v9413_v22, 2  ;;  %v9421_v19 = vrot.slane %v9420_v6, 2  ;;  %v8806_v7 = vrot.slane %v8790_v62, %v12199_v51  ;;  %v8813_v58 = vrot.slane %v8797_v45, %v12199_v51 }
 0x34e   : > { %v9403_v35 = vmax.f32 %v9401_v11, %v9402_v32  ;;  %v9410_v13 = vmax.f32 %v9408_v21, %v9409_v2  ;;  %v9428_v14 = vrot.slane %v9427_v53, 2  ;;  %v9434_v57 = vmax.f32 %v9432_v9, %v9433_v24 }
 0x34f   : > { %v9415_v47 = vmax.f32 %v9413_v22, %v9414_v33  ;;  %v9422_v50 = vmax.f32 %v9420_v6, %v9421_v19  ;;  %v8820_v38 = vrot.slane %v8798_v40, %v12199_v51  ;;  %v8827_v48 = vrot.slane %v8799_v23, %v12199_v51 }
 0x350   : > { %v9429_v61 = vmax.f32 %v9427_v53, %v9428_v14  ;;  %v9435_v63 = vrot.slane %v9434_v57, 2  ;;  %v8828_v44 = vcombine.high %v8806_v7, %v8806_v7  ;;  %v9100_v18 = vcombine.low %v8781_v26, %v8806_v7 }
 0x351   : > { %v9416_v1 = vrot.slane %v9415_v47, 1  ;;  %v9423_v10 = vrot.slane %v9422_v50, 1  ;;  %v8830_v28 = vcombine.high %v8820_v38, %v8820_v38  ;;  %v9156_v27 = vcombine.low %v8813_v58, %v8827_v48 }
 0x352   : > { %v9430_v43 = vrot.slane %v9429_v61, 1  ;;  %v9101_v60 = vcombine.low %v8820_v38, %v8828_v44  ;;  %v9108_v42 = vrot.slane %v9100_v18, %v12199_v51  ;;  %v10824_v52 = vcombine.high %v8813_v58, %v8827_v48 }
 0x353   : > { %v9417_v29 = vmax.f32 %v9415_v47, %v9416_v1  ;;  %v9122_v20 = vrot.slane %v8830_v28, %v12199_v51  ;;  %v9164_v34 = vrot.slane %v9156_v27, %v12199_v51  ;;  %v8650_v4 = vadd.f32 %v14679_v12, %v14655_v25 }
 0x354   : > { %v14740_v59 = vmax.f32 %v9429_v61, %v9430_v43  ;;  %v9115_v46 = vrot.slane %v9101_v60, %v12199_v51  ;;  %v9171_v26 = vrot.slane %v10824_v52, %v12199_v51  ;;  %v8652_v56 = vadd.f32 %v14684_v54, %v14658_v16 }
 0x355   : > { %v9125_v62 = vcombine.high %v9122_v20, %v9122_v20  ;;  %v9146_v45 = vrot.slane %v9122_v20, %v12199_v51  ;;  %v8668_v37 = vmax.f32 %v8650_v4, 0.0  ;;  %v8656_v8 = vadd.f32 %v14698_v5, %v14663_v15 }
 0x356   : > { %v9123_v55 = vcombine.low %v9108_v42, %v9115_v46  ;;  %v9124_v3 = vcombine.high %v9108_v42, %v9115_v46  ;;  %v9179_v17 = vcombine.low %v9164_v34, %v9171_v26  ;;  %v9180_v25 = vcombine.high %v9164_v34, %v9171_v26 }
 0x357   : > { %v9153_v12 = vrot.slane %v9125_v62, %v12199_v51  ;;  %v8669_v41 = vmax.f32 %v8652_v56, 0.0  ;;  %v8670_v36 = vmax.f32 %v8656_v8, 0.0  ;;  %v8658_v39 = vadd.f32 %v14706_v0, %v14666_v49 }
 0x358   : > { %v9132_v16 = vrot.slane %v9123_v55, %v12199_v51  ;;  %v9139_v54 = vrot.slane %v9124_v3, %v12199_v51  ;;  %v14755_v11 = vrot.slane %v9180_v25, %v12199_v51  ;;  %v9188_v15 = vrot.slane %v9179_v17, %v12199_v51 }
 0x359   : > { %v8832_v5 = vcombine.low %v8668_v37, %v8669_v41  ;;  %v8833_v21 = vcombine.high %v8668_v37, %v8669_v41  ;;  %v8671_v30 = vmax.f32 %v8658_v39, 0.0  ;;  %v9424_v40 = vmax.f32 %v9422_v50, %v9423_v10 }
 0x35a   : > { %v9154_v22 = vcombine.low %v9132_v16, %v9146_v45  ;;  %v9155_v6 = vcombine.low %v9139_v54, %v9153_v12  ;;  %v14758_v9 = vmax.f32 %v9434_v57, %v9435_v63  ;;  %v14761_v23 = vsel %vm9525_vm1, %v9417_v29, %v9403_v35 }
 0x35b   : > { %v8840_v49 = vrot.slane %v8832_v5, %v12199_v51  ;;  %v8847_v0 = vrot.slane %v8833_v21, %v12199_v51  ;;  %v8882_v32 = vcombine.low %v8670_v36, %v8671_v30  ;;  %v8883_v2 = vcombine.high %v8670_v36, %v8671_v30 }
 0x35c   : > { %v9439_v53 = vsel %vm9396_vm9, %v9154_v22, -inf  ;;  %v9446_v24 = vsel %vm9396_vm9, %v9155_v6, -inf  ;;  %v9437_v33 = vrot.slane %v14758_v9, 1  ;;  %v14769_v19 = vsel %vm9525_vm1, %v9424_v40, %v9410_v13 }
 0x35d   : > { %v9440_v7 = vrot.slane %v9439_v53, 4  ;;  %v9447_v58 = vrot.slane %v9446_v24, 4  ;;  %v8848_v14 = vcombine.high %v8840_v49, %v8840_v49  ;;  %v8849_v35 = vcombine.high %v8847_v0, %v8847_v0 }
 0x35e   : > { %v8856_v57 = vrot.slane %v8840_v49, %v12199_v51  ;;  %v8863_v47 = vrot.slane %v8847_v0, %v12199_v51  ;;  %v8890_v50 = vrot.slane %v8882_v32, %v12199_v51  ;;  %v8897_v38 = vrot.slane %v8883_v2, %v12199_v51 }
 0x35f   : > { %v9441_v48 = vmax.f32 %v9439_v53, %v9440_v7  ;;  %v14775_v61 = vmax.f32 %v9446_v24, %v9447_v58  ;;  %v8870_v63 = vrot.slane %v8848_v14, %v12199_v51  ;;  %v8877_v13 = vrot.slane %v8849_v35, %v12199_v51 }
 0x360   : > { %v8878_v44 = vcombine.high %v8856_v57, %v8856_v57  ;;  %v9178_v18 = vrot.slane %v8856_v57, %v12199_v51  ;;  %v8898_v1 = vcombine.high %v8890_v50, %v8890_v50  ;;  %v8899_v10 = vcombine.high %v8897_v38, %v8897_v38 }
 0x361   : > { %v9442_v28 = vrot.slane %v9441_v48, 2  ;;  %v8880_v27 = vcombine.high %v8870_v63, %v8870_v63  ;;  %v9234_v43 = vrot.slane %v8877_v13, %v12199_v51  ;;  %v10825_v60 = vcombine.high %v8863_v47, %v8877_v13 }
 0x362   : > { %v9181_v42 = vcombine.high %v9178_v18, %v9178_v18  ;;  %v9202_v52 = vrot.slane %v9178_v18, %v12199_v51  ;;  %v9212_v29 = vcombine.low %v8870_v63, %v8878_v44  ;;  %v8906_v20 = vrot.slane %v8890_v50, %v12199_v51 }
 0x363   : > { %v14783_v34 = vmax.f32 %v9441_v48, %v9442_v28  ;;  %v9213_v4 = vcombine.low %v8880_v27, %v8863_v47  ;;  %v9237_v46 = vcombine.high %v9234_v43, %v9234_v43  ;;  %v9258_v26 = vrot.slane %v9234_v43, %v12199_v51 }
 0x364   : > { %v9209_v56 = vrot.slane %v9181_v42, %v12199_v51  ;;  %v9210_v62 = vcombine.low %v9188_v15, %v9202_v52  ;;  %v9220_v45 = vrot.slane %v9212_v29, %v12199_v51  ;;  %v9276_v37 = vrot.slane %v10825_v60, %v12199_v51 }
 0x365   : > { %v9227_v8 = vrot.slane %v9213_v4, %v12199_v51  ;;  %v9265_v55 = vrot.slane %v9237_v46, %v12199_v51  ;;  %v8913_v3 = vrot.slane %v8897_v38, %v12199_v51  ;;  %v8920_v17 = vrot.slane %v8898_v1, %v12199_v51 }
 0x366   : > { %v9211_v25 = vcombine.low %v14755_v11, %v9209_v56  ;;  %v9453_v12 = vsel %vm9396_vm9, %v9210_v62, -inf  ;;  %v8927_v41 = vrot.slane %v8899_v10, %v12199_v51  ;;  %v8928_v36 = vcombine.high %v8906_v20, %v8906_v20 }
 0x367   : > { %v9235_v39 = vcombine.low %v9220_v45, %v9227_v8  ;;  %v9236_v16 = vcombine.high %v9220_v45, %v9227_v8  ;;  %v9454_v54 = vrot.slane %v9453_v12, 4  ;;  %v8929_v15 = vcombine.high %v8913_v3, %v8913_v3 }
 0x368   : > { %v9460_v5 = vsel %vm9396_vm9, %v9211_v25, -inf  ;;  %v8930_v21 = vcombine.high %v8920_v17, %v8920_v17  ;;  %v8931_v30 = vcombine.high %v8927_v41, %v8927_v41  ;;  %v9269_v40 = vcombine.low %v8906_v20, %v8920_v17 }
 0x369   : > { %v9244_v22 = vrot.slane %v9235_v39, %v12199_v51  ;;  %v9251_v6 = vrot.slane %v9236_v16, %v12199_v51  ;;  %v9455_v49 = vmax.f32 %v9453_v12, %v9454_v54  ;;  %v9461_v11 = vrot.slane %v9460_v5, 4 }
 0x36a   : > { %v9283_v0 = vrot.slane %v9269_v40, %v12199_v51  ;;  %v9290_v32 = vrot.slane %v8928_v36, %v12199_v51  ;;  %v9324_v2 = vcombine.low %v8930_v21, %v8913_v3  ;;  %v9325_v53 = vcombine.low %v8927_v41, %v8929_v15 }
 0x36b   : > { %v9266_v24 = vcombine.low %v9244_v22, %v9258_v26  ;;  %v9267_v7 = vcombine.low %v9251_v6, %v9265_v55  ;;  %v9456_v58 = vrot.slane %v9455_v49, 2  ;;  %v9462_v14 = vmax.f32 %v9460_v5, %v9461_v11 }
 0x36c   : > { %v9291_v35 = vcombine.low %v9276_v37, %v9283_v0  ;;  %v9292_v57 = vcombine.high %v9276_v37, %v9283_v0  ;;  %v9293_v47 = vcombine.high %v9290_v32, %v9290_v32  ;;  %v9314_v50 = vrot.slane %v9290_v32, %v12199_v51 }
 0x36d   : > { %v9457_v38 = vmax.f32 %v9455_v49, %v9456_v58  ;;  %v9467_v48 = vsel %vm9396_vm9, %v9266_v24, -inf  ;;  %v9332_v63 = vrot.slane %v9324_v2, %v12199_v51  ;;  %v9339_v13 = vrot.slane %v9325_v53, %v12199_v51 }
 0x36e   : > { %v9468_v44 = vrot.slane %v9467_v48, 4  ;;  %v9300_v18 = vrot.slane %v9291_v35, %v12199_v51  ;;  %v9307_v1 = vrot.slane %v9292_v57, %v12199_v51  ;;  %v9321_v10 = vrot.slane %v9293_v47, %v12199_v51 }
 0x36f   : > { %v9458_v28 = vrot.slane %v9457_v38, 1  ;;  %v9346_v27 = vrot.slane %v8931_v30, %v12199_v51  ;;  %v9347_v43 = vcombine.low %v9332_v63, %v9339_v13  ;;  %v9348_v60 = vcombine.high %v9332_v63, %v9339_v13 }
 0x370   : > { %v9469_v42 = vmax.f32 %v9467_v48, %v9468_v44  ;;  %v9322_v52 = vcombine.low %v9300_v18, %v9314_v50  ;;  %v9323_v29 = vcombine.low %v9307_v1, %v9321_v10  ;;  %v9438_v20 = vmax.f32 %v14758_v9, %v9437_v33 }
 0x371   : > { %v9349_v4 = vcombine.high %v9346_v27, %v9346_v27  ;;  %v9356_v46 = vrot.slane %v9347_v43, %v12199_v51  ;;  %v9363_v26 = vrot.slane %v9348_v60, %v12199_v51  ;;  %v9370_v56 = vrot.slane %v9346_v27, %v12199_v51 }
 0x372   : > { %v9470_v62 = vrot.slane %v9469_v42, 2  ;;  %v9481_v45 = vsel %vm9396_vm9, %v9322_v52, -inf  ;;  %v9449_v37 = vrot.slane %v14775_v61, 2  ;;  %v9463_v8 = vrot.slane %v9462_v14, 2 }
 0x373   : > { %v9377_v55 = vrot.slane %v9349_v4, %v12199_v51  ;;  %v9378_v3 = vcombine.low %v9356_v46, %v9370_v56  ;;  %v9482_v17 = vrot.slane %v9481_v45, 4  ;;  %v9474_v25 = vsel %vm9396_vm9, %v9267_v7, -inf }
 0x374   : > { %v9450_v9 = vmax.f32 %v14775_v61, %v9449_v37  ;;  %v9464_v33 = vmax.f32 %v9462_v14, %v9463_v8  ;;  %v9475_v12 = vrot.slane %v9474_v25, 4  ;;  %v9488_v41 = vsel %vm9396_vm9, %v9323_v29, -inf }
 0x375   : > { %v9483_v36 = vmax.f32 %v9481_v45, %v9482_v17  ;;  %v9379_v16 = vcombine.low %v9363_v26, %v9377_v55  ;;  %v9489_v54 = vrot.slane %v9488_v41, 4  ;;  %v9604_v15 = vsel %vm9527_vm2, %v9438_v20, %v14769_v19 }
 0x376   : > { %v9451_v5 = vrot.slane %v9450_v9, 1  ;;  %v9465_v21 = vrot.slane %v9464_v33, 1  ;;  %v9476_v51 = vmax.f32 %v9474_v25, %v9475_v12  ;;  %v9444_v30 = vrot.slane %v14783_v34, 1 }
 0x377   : > { %v9490_v40 = vmax.f32 %v9488_v41, %v9489_v54  ;;  %v9502_v22 = vsel %vm9396_vm9, %v9379_v16, -inf  ;;  %v9459_v6 = vmax.f32 %v9457_v38, %v9458_v28  ;;  %v9471_v49 = vmax.f32 %v9469_v42, %v9470_v62 }
 0x378   : > { %v10917_v39 = vpop.f32.mrf.mxu0  ;;  %v9452_v11 = vmax.f32 %v9450_v9, %v9451_v5  ;;  %v9466_v0 = vmax.f32 %v9464_v33, %v9465_v21  ;;  %v9477_v32 = vrot.slane %v9476_v51, 2  ;;  %v9503_v2 = vrot.slane %v9502_v22, 4 }
 0x379   : > { %v9491_v53 = vrot.slane %v9490_v40, 2  ;;  %v9445_v7 = vmax.f32 %v14783_v34, %v9444_v30  ;;  %v9472_v19 = vrot.slane %v9471_v49, 1  ;;  %v9484_v47 = vrot.slane %v9483_v36, 2 }
 0x37a   : > { %v10918_v61 = vpop.f32.mrf.mxu0  ;;  %v9478_v14 = vmax.f32 %v9476_v51, %v9477_v32  ;;  %v9504_v35 = vmax.f32 %v9502_v22, %v9503_v2  ;;  %v9605_v57 = vsel %vm9529_vm3, %v9452_v11, %v9604_v15  ;;  %v9495_v10 = vsel %vm9396_vm9, %v9378_v3, -inf }
 0x37b   : > { %v10919_v24 = vadd.f32 %v10918_v61, %v10917_v39  ;;  %v9492_v50 = vmax.f32 %v9490_v40, %v9491_v53  ;;  %v9606_v48 = vsel %vm9531_vm4, %v9466_v0, %v9605_v57  ;;  %v9473_v63 = vmax.f32 %v9471_v49, %v9472_v19 }
 0x37c   : > { %v10920_v58 = vpop.f32.mrf.mxu0  ;;  %v9479_v44 = vrot.slane %v9478_v14, 1  ;;  %v9505_v18 = vrot.slane %v9504_v35, 2  ;;  %v9485_v1 = vmax.f32 %v9483_v36, %v9484_v47  ;;  %v9496_v28 = vrot.slane %v9495_v10, 4 }
 0x37d   : > { %v10084_v38 = vadd.f32 %v10919_v24, %v14686_v31  ;;  %v9493_v34 = vrot.slane %v9492_v50, 1  ;;  %v9597_v27 = vsel %vm9527_vm2, %v14740_v59, %v14761_v23 }
 0x37e   : > { %v10921_v13 = vpop.f32.mrf.mxu0  ;;  %v9480_v43 = vmax.f32 %v9478_v14, %v9479_v44  ;;  %v9506_v60 = vmax.f32 %v9504_v35, %v9505_v18  ;;  %v9486_v42 = vrot.slane %v9485_v1, 1  ;;  %v9598_v52 = vsel %vm9529_vm3, %v9445_v7, %v9597_v27 }
 0x37f   : > { %v9494_v29 = vmax.f32 %v9492_v50, %v9493_v34  ;;  %v9497_v31 = vmax.f32 %v9495_v10, %v9496_v28  ;;  %v9599_v20 = vsel %vm9531_vm4, %v9459_v6, %v9598_v52 }
 0x380   : > { %v9507_v4 = vrot.slane %v9506_v60, 1  ;;  %v9607_v46 = vsel %vm9533_vm5, %v9480_v43, %v9606_v48  ;;  %v9487_v26 = vmax.f32 %v9485_v1, %v9486_v42  ;;  %v9600_v56 = vsel %vm9533_vm5, %v9473_v63, %v9599_v20 }
 0x381   : > { %v9608_v62 = vsel %vm9535_vm6, %v9494_v29, %v9607_v46  ;;  %v9498_v59 = vrot.slane %v9497_v31, 2 }
 0x382   : > { %v9508_v23 = vmax.f32 %v9506_v60, %v9507_v4  ;;  %v9601_v45 = vsel %vm9535_vm6, %v9487_v26, %v9600_v56 }
 0x383   : > { %v9499_v37 = vmax.f32 %v9497_v31, %v9498_v59 }
 0x384   : > { %v9609_v8 = vsel %vm9537_vm7, %v9508_v23, %v9608_v62 }
 0x385   : > { %v9617_v55 = vpack.c.bf16 %v9609_v8, %v9609_v8  ;;  %v9500_v3 = vrot.slane %v9499_v37, 1 }
 0x387   : > { %10121 = vmatprep.mubr.bf16.mxu1 %v9617_v55  ;;  %v9501_v17 = vmax.f32 %v9499_v37, %v9500_v3 }
 0x389   : > { %v9602_v25 = vsel %vm9537_vm7, %v9501_v17, %v9601_v45 }
 0x38a   : > { %v9616_v9 = vpack.c.bf16 %v9602_v25, %v9602_v25 }
 0x38c   : > { %10122 = vmatmul.mubr.bf16.vlgmr.msra.gmra.mxu1 %v9616_v9 }
 0x44c   : > { %v10939_v33 = vpop.f32.mrf.mxu1 }
 0x44e   : > { %v10940_v12 = vpop.f32.mrf.mxu1 }
 0x44f   : > { %v10941_v41 = vadd.f32 %v10940_v12, %v10939_v33 }
 0x450   : > { %v10942_v36 = vpop.f32.mrf.mxu1 }
 0x451   : > { %v10124_v39 = vadd.f32 %v10941_v41, %v10084_v38 }
 0x452   : > { %v10943_v16 = vpop.f32.mrf.mxu1 }
 0x453   : > { %10129 = vst [vmem:[%s409_s5] sm:$0xff] %v10124_v39 }
 0x454   : > { %11909 = shalt.err (!%p11906_p10)
}
 0x455   : > { %s11910_s19 = scalar_lea.hbm %s14846_s15, 128  ;;  %s11914_s27 = scalar_lea.hbm %s14892_s9, 256 }
 0x456   : > { %p11911_p3 = scmp.ne.s32.totalorder %s14846_s15, %s11910_s19  ;;  %p11915_p11 = scmp.lt.s32.totalorder %s14846_s15, %s14892_s9 }
 0x457   : > { %p11916_p4 = scmp.lt.s32.totalorder %s11914_s27, %s11910_s19 }
 0x458   : > { %p11912_p8 = pnand %p11911_p3, %p15440_p1 }
 0x459   : > { %p11917_p7 = por %p11916_p4, %p11915_p11 }
 0x45a   : > { %p11913_p6 = pneg %p11912_p8 }
 0x45c   : > { %p11918_p12 = pnand %p11917_p7, %p11913_p6 }
 0x45e   : > { %11921 = shalt.err (!%p11918_p12)
}
 0x45f   : > { %10966 = dma.vmem_to_hbm [thread:$0]  (%p15440_p1), %s10145_s28, 128, %s14846_s15, %s10131_s17  }
 0x460 PF: > { %s10156_s5 = sand.u32 1, %s11956_s30   ;;  %p15441_p9 = scmp.ne.s32.totalorder %s15093_s16, 0 }
 0x461   : > { %p15442_p13 = scmp.ge.s32.totalorder %s11968_s12, 2  ;;  %s10157_s24 = scalar_lea.sflag [#allocation4], %s10156_s5 }
 0x463   : > { %p10986_p2 = pnand %p15442_p13, %p15441_p9 }
 0x465   : > { %p10987_p0 = pneg %p10986_p2 }
 0x467   : > { %11951 = dma.done.wait (%p10987_p0), %s10157_s24, 128  }
 0x468   : > { %11953 = vsyncadd (%p10987_p0), %s10157_s24, 4294967168  ;;  %p24_p5 = scmp.ge.s32.totalorder %s12123_s18, 4   ;;  %s15443_s30 = smov %s11960_s10 }
 0x469   : > { %s15444_s10 = smov %s11964_s11  ;;  %s15445_s11 = smov %s12132_s23 }
 0x46a   : > { %s15446_s12 = smov %s12123_s18  ;;  %26 = sbr.rel (!%p24_p5) target bundleno = 11 (0xb), region = 117 }
 0x46f   :  { %10162 = vsyncpa [#allocation3], 1 }
 0x470   :  { %10164 = vsyncpa [#allocation3 + $0x1], 1 }
 0x471   :  { %10165 = vsyncpa [#allocation6], 1 }
 0x472   :  { %10166 = vsyncpa [#allocation9], 1 }
 0x473   :  { %10167 = vsyncpa [#allocation4], 1 }
 0x474   :  { %10169 = vsyncpa [#allocation4 + $0x1], 1 }

</bundles_post_ra>
